<compile_context>
chip_gen: v7x
topology: tpu7x:2x2x1
jax: 0.10.0
libtpu: 0.0.40
codegen_flags: <defaults>
</compile_context>

<pallas_src>
import functools

import jax
import jax.numpy as jnp
from jax.experimental import pallas as pl
from jax.experimental.pallas import tpu as pltpu

CIN0 = 3          # RGB
CIN0_PAD = 16     # pad RGB -> 16 so layer-1 K matches bf16 sublane packing


def _round_up(x, m):
    return (x + m - 1) // m * m


@functools.lru_cache(maxsize=None)
def _vmem_limit():
    """Generation-aware VMEM budget (<=48 MiB on 64 MiB parts, <=96 MiB else)."""
    try:
        cap = int(pltpu.get_tpu_info().vmem_capacity_bytes)
    except Exception:
        cap = 64 * 1024 * 1024
    return min(cap * 3 // 4, 96 * 1024 * 1024)


# -----------------------------------------------------------------------------
# Fused 3x3 / stride-2 conv + bias + ReLU
# -----------------------------------------------------------------------------
def build_conv_slabs(x):
    """x: (B, H, W, C) -> slabs (B, 6*(Ho+1)*Wo, C) and (Ho, Wo).

    Zero-pads spatially (pad=1, reference conv boundary behaviour) and
    extracts, for every (row-parity, kw) pair, the stride-2 sub-grid the conv
    needs.  Inside the kernel each of the 9 taps is then a contiguous 2-D row
    range of this tensor -- no im2col patch matrix (9x bytes) is ever
    materialized in HBM; the slabs hold ~1.5x the activation bytes.
    """
    bsz, h, w, c = x.shape
    ho, wo = (h + 1) // 2, (w + 1) // 2
    hp, wp = 2 * (ho + 1), 2 * (wo + 1)
    xp = jnp.pad(x, ((0, 0), (1, hp - h - 1), (1, wp - w - 1), (0, 0)))
    slabs = []
    for a in (0, 1):            # row parity (= kh % 2)
        for j in (0, 1, 2):     # kw
            s = xp[:, a::2, j::2, :][:, :ho + 1, :wo, :]
            slabs.append(s.reshape(bsz, (ho + 1) * wo, c))
    return jnp.concatenate(slabs, axis=1), (ho, wo)


def _conv3x3s2_relu_kernel(x_ref, w_ref, b_ref, o_ref, *, ho, wo):
    """One image of the fused conv.

    x_ref: (6*(Ho+1)*Wo, Cin) bf16 slabs (see build_conv_slabs)
    w_ref: (9, Cin, Cout) bf16  (resident across the batch grid)
    b_ref: (1, Cout) f32        (resident)
    o_ref: (Ho*Wo, Cout) bf16
    """
    cout = o_ref.shape[-1]
    slab = (ho + 1) * wo
    acc = jnp.zeros((ho * wo, cout), jnp.float32)
    for i in range(3):          # kh
        for j in range(3):      # kw
            start = ((i % 2) * 3 + j) * slab + (i // 2) * wo
            xt = x_ref[start:start + ho * wo, :]                 # contiguous tap
            acc = acc + jnp.dot(xt, w_ref[3 * i + j],
                                preferred_element_type=jnp.float32)
    acc = jnp.maximum(acc + b_ref[...], 0.0)
    o_ref[...] = acc.astype(o_ref.dtype)


def conv3x3s2_relu(slabs, w, b, ho, wo):
    """slabs: (B, 6*(Ho+1)*Wo, Cin) bf16 -> features (B, Ho*Wo, Cout) bf16."""
    bsz, rows, cin = slabs.shape
    cout = w.shape[-1]
    kernel = functools.partial(_conv3x3s2_relu_kernel, ho=ho, wo=wo)
    return pl.pallas_call(
        kernel,
        out_shape=jax.ShapeDtypeStruct((bsz, ho * wo, cout), jnp.bfloat16),
        grid=(bsz,),
        in_specs=[
            pl.BlockSpec((None, rows, cin), lambda nb: (nb, 0, 0)),
            pl.BlockSpec((9, cin, cout), lambda nb: (0, 0, 0)),   # resident weights
            pl.BlockSpec((1, cout), lambda nb: (0, 0)),           # resident bias
        ],
        out_specs=pl.BlockSpec((None, ho * wo, cout), lambda nb: (nb, 0, 0)),
        compiler_params=pltpu.CompilerParams(
            dimension_semantics=("parallel",),     # batch-parallel (megacore)
            vmem_limit_bytes=_vmem_limit(),
        ),
    )(slabs, w, b)


# -----------------------------------------------------------------------------
# LPIPS per-layer compare: normalize / diff^2 / lin / spatial mean
# -----------------------------------------------------------------------------
def _lpips_compare_kernel(fp_ref, fg_ref, w_ref, o_ref, acc_ref, *, hw_true):
    """fp/fg: (N, THW, C) bf16 (pred / gt halves of the same feature tensor),
    w: (1, C) f32 lin weights, o: (N, 1) f32, acc: (N, C) f32 scratch."""
    step = pl.program_id(0)

    @pl.when(step == 0)
    def _():
        acc_ref[...] = jnp.zeros_like(acc_ref)

    eps = 1e-10  # lpips.normalize_tensor: x / (sqrt(sum_c x^2) + eps)
    fp = fp_ref[...].astype(jnp.float32)
    fg = fg_ref[...].astype(jnp.float32)
    np_ = fp / (jnp.sqrt(jnp.sum(fp * fp, axis=-1, keepdims=True)) + eps)
    ng_ = fg / (jnp.sqrt(jnp.sum(fg * fg, axis=-1, keepdims=True)) + eps)
    d = (np_ - ng_) ** 2                          # (N, THW, C)
    # per-channel partial sum; lin weights applied only once, at finalize
    acc_ref[...] += jnp.sum(d, axis=1)            # (N, C)

    @pl.when(step == pl.num_programs(0) - 1)
    def _():
        # lin 1x1 conv (per-channel weights) + spatial average over true HW
        o_ref[...] = jnp.sum(acc_ref[...] * w_ref[...], axis=-1,
                             keepdims=True) * (1.0 / hw_true)


def lpips_compare(feats, lin_w, n_img, *, tile_hw=None):
    """feats: (2*n_img, HW, C) bf16 (rows [0:n] = pred, [n:2n] = gt),
    lin_w: (1, C) f32 -> per-layer LPIPS distance (n_img, 1) f32."""
    two_n, hw, c = feats.shape
    assert two_n == 2 * n_img
    if tile_hw is None:
        # HW tile derived from the VMEM budget: 2 feature inputs x 2 buffers.
        budget = _vmem_limit() // 4
        tile_hw = max(512, budget // (2 * 2 * n_img * c * 2))
    nblk = -(-hw // tile_hw)
    thw = _round_up(-(-hw // nblk), 8)
    hw_pad = thw * nblk
    if hw_pad != hw:
        # padded rows are all-zero -> contribute exactly 0 to the sum
        feats = jnp.pad(feats, ((0, 0), (0, hw_pad - hw), (0, 0)))

    kernel = functools.partial(_lpips_compare_kernel, hw_true=float(hw))
    return pl.pallas_call(
        kernel,
        out_shape=jax.ShapeDtypeStruct((n_img, 1), jnp.float32),
        grid=(nblk,),
        in_specs=[
            # pred / gt halves selected via the batch *block* index: no XLA
            # slices (and no extra feature copies in HBM).
            pl.BlockSpec((n_img, thw, c), lambda i: (0, i, 0)),
            pl.BlockSpec((n_img, thw, c), lambda i: (1, i, 0)),
            pl.BlockSpec((1, c), lambda i: (0, 0)),               # resident lin w
        ],
        out_specs=pl.BlockSpec((n_img, 1), lambda i: (0, 0)),     # accumulator out
        scratch_shapes=[pltpu.VMEM((n_img, c), jnp.float32)],
        compiler_params=pltpu.CompilerParams(
            dimension_semantics=("arbitrary",),    # HW is a reduction axis
            vmem_limit_bytes=_vmem_limit(),
        ),
    )(feats, feats, lin_w)


# -----------------------------------------------------------------------------
# Parameters & forward pass (glue in plain JAX)
# -----------------------------------------------------------------------------
def init_params(key):
    """Deterministic synthetic weights (stand-in for pretrained alex/vgg + lins).

    Channel counts stay at their real values (no 128-lane padding carried
    through the chain); only the RGB input channel is padded 3->16 for the
    first conv's contraction dim (padded rows have zero weights: exact).
    """
    # TODO(synk): real LPIPS uses a pretrained backbone + learned lin weights;
    # this is a deterministic synthetic initialization with identical structure.
    chans_out = [16, 32, 64]
    scale = jnp.array([0.458, 0.448, 0.450], jnp.float32)
    convs, lins = [], []
    cin, cin_pad = CIN0, CIN0_PAD
    for li, cout in enumerate(chans_out):
        key, k_w, k_l = jax.random.split(key, 3)
        fan_in = 9 * cin
        w_real = jax.random.normal(k_w, (9, cin, cout), jnp.float32) * (2.0 / fan_in) ** 0.5
        if li == 0:
            # fold ScalingLayer 1/scale into conv1 weights (exact; shift stays
            # explicit so zero conv padding matches the reference boundary)
            w_real = w_real / scale[None, :, None]
        w = jnp.zeros((9, cin_pad, cout), jnp.float32).at[:, :cin, :].set(w_real)
        b = jnp.zeros((1, cout), jnp.float32)
        lin = jnp.abs(jax.random.normal(k_l, (1, cout), jnp.float32)) * 0.1
        convs.append((w, b))
        lins.append(lin)
        cin, cin_pad = cout, cout
    shift = jnp.array([-0.030, -0.088, -0.188], jnp.float32)
    return {"convs": convs, "lins": lins, "shift": shift}


def feature_net(x, convs):
    """x: (B, H, W, C) bf16 -> list of per-layer features (B, Ho*Wo, Cout) bf16."""
    feats, h = [], x
    for (w, b) in convs:
        slabs, (ho, wo) = build_conv_slabs(h)                      # XLA, ~1.5x bytes
        f = conv3x3s2_relu(slabs, w.astype(jnp.bfloat16), b, ho, wo)  # Pallas MXU
        feats.append(f)
        h = f.reshape(f.shape[0], ho, wo, f.shape[-1])             # free XLA reshape
    return feats


@jax.jit
def lpips_forward(pred_nchw, gt_nchw, params):
    """pred/gt: (N, 3, H, W) in [-1, 1]; returns (N, 1, 1, 1) like lpips.LPIPS."""
    n = pred_nchw.shape[0]
    # one batched conv pass over [pred; gt] (shared weights, 2x M per matmul)
    x = jnp.concatenate([pred_nchw, gt_nchw], axis=0)
    x = jnp.transpose(x, (0, 2, 3, 1)).astype(jnp.float32)         # NCHW -> NHWC
    # ScalingLayer: shift explicit, 1/scale folded into conv1 weights
    x = x - params["shift"].reshape(1, 1, 1, CIN0)
    x = jnp.pad(x, ((0, 0), (0, 0), (0, 0), (0, CIN0_PAD - CIN0)))  # 3 -> 16 channels
    x = x.astype(jnp.bfloat16)

    feats = feature_net(x, params["convs"])                        # (2N, HW, C) bf16

    total = jnp.zeros((n, 1), jnp.float32)
    for f, lin in zip(feats, params["lins"]):
        total = total + lpips_compare(f, lin, n)                   # Pallas kernel
    # match lpips output shape [N, 1, 1, 1]
    return total.reshape(n, 1, 1, 1)


# -----------------------------------------------------------------------------
if __name__ == "__main__":
    key = jax.random.PRNGKey(0)
    k_pred, k_gt, k_params = jax.random.split(key, 3)

    N, C, H, W = 2, 3, 16, 16
    pred = jax.random.uniform(k_pred, (N, C, H, W), jnp.float32, -1.0, 1.0)
    gt = jax.random.uniform(k_gt, (N, C, H, W), jnp.float32, -1.0, 1.0)

    params = init_params(k_params)

    loss = lpips_forward(pred, gt, params)
    loss = jax.block_until_ready(loss)

    assert loss.shape == (N, 1, 1, 1), loss.shape
    assert bool(jnp.all(jnp.isfinite(loss)))
    print("KERNEL_OK")
</pallas_src>

<mosaic_0001>
module attributes {stable_mosaic.version = 11 : i64} {
  func.func @_conv3x3s2_relu_kernel(%arg0: i32, %arg1: memref<1x432x16xbf16, #tpu.memory_space<vmem>>, %arg2: memref<9x16x16xbf16, #tpu.memory_space<vmem>>, %arg3: memref<1x16xf32, #tpu.memory_space<vmem>>, %arg4: memref<1x64x16xbf16, #tpu.memory_space<vmem>>) attributes {dimension_semantics = [#tpu.dimension_semantics<parallel>], iteration_bounds = array<i64: 4>, scalar_prefetch = 0 : i64, scratch_operands = 0 : i64, tpu.core_type = #tpu.core_type<tc>, window_params = [{transform_indices = @transform_0, window_bounds = array<i64: 1, 432, 16>}, {pipeline_mode = #tpu.pipeline_mode<synchronous>, transform_indices = @transform_1, window_bounds = array<i64: 9, 16, 16>}, {pipeline_mode = #tpu.pipeline_mode<synchronous>, transform_indices = @transform_2, window_bounds = array<i64: 1, 16>}, {transform_indices = @transform_3, window_bounds = array<i64: 1, 64, 16>}]} {
    %cst = arith.constant 0.000000e+00 : f32
    %0 = vector.broadcast %cst : f32 to vector<64x16xf32>
    %c0 = arith.constant 0 : index
    %c0_0 = arith.constant 0 : index
    %c0_1 = arith.constant 0 : index
    %1 = vector.load %arg1[%c0, %c0_0, %c0_1] : memref<1x432x16xbf16, #tpu.memory_space<vmem>>, vector<1x64x16xbf16>
    %2 = vector.shape_cast %1 : vector<1x64x16xbf16> to vector<64x16xbf16>
    %c0_2 = arith.constant 0 : index
    %c0_3 = arith.constant 0 : index
    %c0_4 = arith.constant 0 : index
    %3 = vector.load %arg2[%c0_2, %c0_3, %c0_4] : memref<9x16x16xbf16, #tpu.memory_space<vmem>>, vector<1x16x16xbf16>
    %4 = vector.shape_cast %3 : vector<1x16x16xbf16> to vector<16x16xbf16>
    %cst_5 = arith.constant dense<0.000000e+00> : vector<64x16xf32>
    %5 = tpu.matmul %2, %4, %cst_5 {dimension_numbers = #tpu.dot_dimension_numbers<[1], [0], [0], [1], [0, 0, 1, 1], [], []>} : vector<64x16xbf16>, vector<16x16xbf16>, vector<64x16xf32> -> vector<64x16xf32>
    %6 = arith.addf %0, %5 : vector<64x16xf32>
    %c0_6 = arith.constant 0 : index
    %c72 = arith.constant 72 : index
    %c0_7 = arith.constant 0 : index
    %7 = vector.load %arg1[%c0_6, %c72, %c0_7] : memref<1x432x16xbf16, #tpu.memory_space<vmem>>, vector<1x64x16xbf16>
    %8 = vector.shape_cast %7 : vector<1x64x16xbf16> to vector<64x16xbf16>
    %c1 = arith.constant 1 : index
    %c0_8 = arith.constant 0 : index
    %c0_9 = arith.constant 0 : index
    %9 = vector.load %arg2[%c1, %c0_8, %c0_9] : memref<9x16x16xbf16, #tpu.memory_space<vmem>>, vector<1x16x16xbf16>
    %10 = vector.shape_cast %9 : vector<1x16x16xbf16> to vector<16x16xbf16>
    %cst_10 = arith.constant dense<0.000000e+00> : vector<64x16xf32>
    %11 = tpu.matmul %8, %10, %cst_10 {dimension_numbers = #tpu.dot_dimension_numbers<[1], [0], [0], [1], [0, 0, 1, 1], [], []>} : vector<64x16xbf16>, vector<16x16xbf16>, vector<64x16xf32> -> vector<64x16xf32>
    %12 = arith.addf %6, %11 : vector<64x16xf32>
    %c0_11 = arith.constant 0 : index
    %c144 = arith.constant 144 : index
    %c0_12 = arith.constant 0 : index
    %13 = vector.load %arg1[%c0_11, %c144, %c0_12] : memref<1x432x16xbf16, #tpu.memory_space<vmem>>, vector<1x64x16xbf16>
    %14 = vector.shape_cast %13 : vector<1x64x16xbf16> to vector<64x16xbf16>
    %c2 = arith.constant 2 : index
    %c0_13 = arith.constant 0 : index
    %c0_14 = arith.constant 0 : index
    %15 = vector.load %arg2[%c2, %c0_13, %c0_14] : memref<9x16x16xbf16, #tpu.memory_space<vmem>>, vector<1x16x16xbf16>
    %16 = vector.shape_cast %15 : vector<1x16x16xbf16> to vector<16x16xbf16>
    %cst_15 = arith.constant dense<0.000000e+00> : vector<64x16xf32>
    %17 = tpu.matmul %14, %16, %cst_15 {dimension_numbers = #tpu.dot_dimension_numbers<[1], [0], [0], [1], [0, 0, 1, 1], [], []>} : vector<64x16xbf16>, vector<16x16xbf16>, vector<64x16xf32> -> vector<64x16xf32>
    %18 = arith.addf %12, %17 : vector<64x16xf32>
    %c0_16 = arith.constant 0 : index
    %c216 = arith.constant 216 : index
    %c0_17 = arith.constant 0 : index
    %19 = vector.load %arg1[%c0_16, %c216, %c0_17] : memref<1x432x16xbf16, #tpu.memory_space<vmem>>, vector<1x64x16xbf16>
    %20 = vector.shape_cast %19 : vector<1x64x16xbf16> to vector<64x16xbf16>
    %c3 = arith.constant 3 : index
    %c0_18 = arith.constant 0 : index
    %c0_19 = arith.constant 0 : index
    %21 = vector.load %arg2[%c3, %c0_18, %c0_19] : memref<9x16x16xbf16, #tpu.memory_space<vmem>>, vector<1x16x16xbf16>
    %22 = vector.shape_cast %21 : vector<1x16x16xbf16> to vector<16x16xbf16>
    %cst_20 = arith.constant dense<0.000000e+00> : vector<64x16xf32>
    %23 = tpu.matmul %20, %22, %cst_20 {dimension_numbers = #tpu.dot_dimension_numbers<[1], [0], [0], [1], [0, 0, 1, 1], [], []>} : vector<64x16xbf16>, vector<16x16xbf16>, vector<64x16xf32> -> vector<64x16xf32>
    %24 = arith.addf %18, %23 : vector<64x16xf32>
    %c0_21 = arith.constant 0 : index
    %c288 = arith.constant 288 : index
    %c0_22 = arith.constant 0 : index
    %25 = vector.load %arg1[%c0_21, %c288, %c0_22] : memref<1x432x16xbf16, #tpu.memory_space<vmem>>, vector<1x64x16xbf16>
    %26 = vector.shape_cast %25 : vector<1x64x16xbf16> to vector<64x16xbf16>
    %c4 = arith.constant 4 : index
    %c0_23 = arith.constant 0 : index
    %c0_24 = arith.constant 0 : index
    %27 = vector.load %arg2[%c4, %c0_23, %c0_24] : memref<9x16x16xbf16, #tpu.memory_space<vmem>>, vector<1x16x16xbf16>
    %28 = vector.shape_cast %27 : vector<1x16x16xbf16> to vector<16x16xbf16>
    %cst_25 = arith.constant dense<0.000000e+00> : vector<64x16xf32>
    %29 = tpu.matmul %26, %28, %cst_25 {dimension_numbers = #tpu.dot_dimension_numbers<[1], [0], [0], [1], [0, 0, 1, 1], [], []>} : vector<64x16xbf16>, vector<16x16xbf16>, vector<64x16xf32> -> vector<64x16xf32>
    %30 = arith.addf %24, %29 : vector<64x16xf32>
    %c0_26 = arith.constant 0 : index
    %c360 = arith.constant 360 : index
    %c0_27 = arith.constant 0 : index
    %31 = vector.load %arg1[%c0_26, %c360, %c0_27] : memref<1x432x16xbf16, #tpu.memory_space<vmem>>, vector<1x64x16xbf16>
    %32 = vector.shape_cast %31 : vector<1x64x16xbf16> to vector<64x16xbf16>
    %c5 = arith.constant 5 : index
    %c0_28 = arith.constant 0 : index
    %c0_29 = arith.constant 0 : index
    %33 = vector.load %arg2[%c5, %c0_28, %c0_29] : memref<9x16x16xbf16, #tpu.memory_space<vmem>>, vector<1x16x16xbf16>
    %34 = vector.shape_cast %33 : vector<1x16x16xbf16> to vector<16x16xbf16>
    %cst_30 = arith.constant dense<0.000000e+00> : vector<64x16xf32>
    %35 = tpu.matmul %32, %34, %cst_30 {dimension_numbers = #tpu.dot_dimension_numbers<[1], [0], [0], [1], [0, 0, 1, 1], [], []>} : vector<64x16xbf16>, vector<16x16xbf16>, vector<64x16xf32> -> vector<64x16xf32>
    %36 = arith.addf %30, %35 : vector<64x16xf32>
    %c0_31 = arith.constant 0 : index
    %c8 = arith.constant 8 : index
    %c0_32 = arith.constant 0 : index
    %37 = vector.load %arg1[%c0_31, %c8, %c0_32] : memref<1x432x16xbf16, #tpu.memory_space<vmem>>, vector<1x64x16xbf16>
    %38 = vector.shape_cast %37 : vector<1x64x16xbf16> to vector<64x16xbf16>
    %c6 = arith.constant 6 : index
    %c0_33 = arith.constant 0 : index
    %c0_34 = arith.constant 0 : index
    %39 = vector.load %arg2[%c6, %c0_33, %c0_34] : memref<9x16x16xbf16, #tpu.memory_space<vmem>>, vector<1x16x16xbf16>
    %40 = vector.shape_cast %39 : vector<1x16x16xbf16> to vector<16x16xbf16>
    %cst_35 = arith.constant dense<0.000000e+00> : vector<64x16xf32>
    %41 = tpu.matmul %38, %40, %cst_35 {dimension_numbers = #tpu.dot_dimension_numbers<[1], [0], [0], [1], [0, 0, 1, 1], [], []>} : vector<64x16xbf16>, vector<16x16xbf16>, vector<64x16xf32> -> vector<64x16xf32>
    %42 = arith.addf %36, %41 : vector<64x16xf32>
    %c0_36 = arith.constant 0 : index
    %c80 = arith.constant 80 : index
    %c0_37 = arith.constant 0 : index
    %43 = vector.load %arg1[%c0_36, %c80, %c0_37] : memref<1x432x16xbf16, #tpu.memory_space<vmem>>, vector<1x64x16xbf16>
    %44 = vector.shape_cast %43 : vector<1x64x16xbf16> to vector<64x16xbf16>
    %c7 = arith.constant 7 : index
    %c0_38 = arith.constant 0 : index
    %c0_39 = arith.constant 0 : index
    %45 = vector.load %arg2[%c7, %c0_38, %c0_39] : memref<9x16x16xbf16, #tpu.memory_space<vmem>>, vector<1x16x16xbf16>
    %46 = vector.shape_cast %45 : vector<1x16x16xbf16> to vector<16x16xbf16>
    %cst_40 = arith.constant dense<0.000000e+00> : vector<64x16xf32>
    %47 = tpu.matmul %44, %46, %cst_40 {dimension_numbers = #tpu.dot_dimension_numbers<[1], [0], [0], [1], [0, 0, 1, 1], [], []>} : vector<64x16xbf16>, vector<16x16xbf16>, vector<64x16xf32> -> vector<64x16xf32>
    %48 = arith.addf %42, %47 : vector<64x16xf32>
    %c0_41 = arith.constant 0 : index
    %c152 = arith.constant 152 : index
    %c0_42 = arith.constant 0 : index
    %49 = vector.load %arg1[%c0_41, %c152, %c0_42] : memref<1x432x16xbf16, #tpu.memory_space<vmem>>, vector<1x64x16xbf16>
    %50 = vector.shape_cast %49 : vector<1x64x16xbf16> to vector<64x16xbf16>
    %c8_43 = arith.constant 8 : index
    %c0_44 = arith.constant 0 : index
    %c0_45 = arith.constant 0 : index
    %51 = vector.load %arg2[%c8_43, %c0_44, %c0_45] : memref<9x16x16xbf16, #tpu.memory_space<vmem>>, vector<1x16x16xbf16>
    %52 = vector.shape_cast %51 : vector<1x16x16xbf16> to vector<16x16xbf16>
    %cst_46 = arith.constant dense<0.000000e+00> : vector<64x16xf32>
    %53 = tpu.matmul %50, %52, %cst_46 {dimension_numbers = #tpu.dot_dimension_numbers<[1], [0], [0], [1], [0, 0, 1, 1], [], []>} : vector<64x16xbf16>, vector<16x16xbf16>, vector<64x16xf32> -> vector<64x16xf32>
    %54 = arith.addf %48, %53 : vector<64x16xf32>
    %c0_47 = arith.constant 0 : index
    %c0_48 = arith.constant 0 : index
    %55 = vector.load %arg3[%c0_47, %c0_48] : memref<1x16xf32, #tpu.memory_space<vmem>>, vector<1x16xf32>
    %56 = vector.broadcast %55 : vector<1x16xf32> to vector<64x16xf32>
    %57 = arith.addf %54, %56 : vector<64x16xf32>
    %cst_49 = arith.constant 0.000000e+00 : f32
    %58 = vector.broadcast %cst_49 : f32 to vector<64x16xf32>
    %59 = arith.maximumf %57, %58 : vector<64x16xf32>
    %60 = arith.truncf %59 : vector<64x16xf32> to vector<64x16xbf16>
    %c0_50 = arith.constant 0 : index
    %c0_51 = arith.constant 0 : index
    %c0_52 = arith.constant 0 : index
    %61 = vector.load %arg4[%c0_50, %c0_51, %c0_52] : memref<1x64x16xbf16, #tpu.memory_space<vmem>>, vector<1x64x16xbf16>
    %62 = vector.shape_cast %61 : vector<1x64x16xbf16> to vector<64x16xbf16>
    %63 = vector.shape_cast %60 : vector<64x16xbf16> to vector<1x64x16xbf16>
    tpu.vector_store %arg4[%c0_50, %c0_51, %c0_52], %63 {strides = array<i32>} : memref<1x64x16xbf16, #tpu.memory_space<vmem>>, vector<1x64x16xbf16>,
    return
  }
  func.func @transform_0(%arg0: i32) -> (i32, i32, i32) {
    %c0_i32 = arith.constant 0 : i32
    %c0_i32_0 = arith.constant 0 : i32
    %c0_i32_1 = arith.constant 0 : i32
    return %arg0, %c0_i32, %c0_i32_0 : i32, i32, i32
  }
  func.func @transform_1(%arg0: i32) -> (i32, i32, i32) {
    %c0_i32 = arith.constant 0 : i32
    %c0_i32_0 = arith.constant 0 : i32
    %c0_i32_1 = arith.constant 0 : i32
    %c0_i32_2 = arith.constant 0 : i32
    return %c0_i32, %c0_i32_0, %c0_i32_1 : i32, i32, i32
  }
  func.func @transform_2(%arg0: i32) -> (i32, i32) {
    %c0_i32 = arith.constant 0 : i32
    %c0_i32_0 = arith.constant 0 : i32
    %c0_i32_1 = arith.constant 0 : i32
    return %c0_i32, %c0_i32_0 : i32, i32
  }
  func.func @transform_3(%arg0: i32) -> (i32, i32, i32) {
    %c0_i32 = arith.constant 0 : i32
    %c0_i32_0 = arith.constant 0 : i32
    %c0_i32_1 = arith.constant 0 : i32
    return %arg0, %c0_i32, %c0_i32_0 : i32, i32, i32
  }
}

module attributes {stable_mosaic.version = 11 : i64} {
  func.func @_conv3x3s2_relu_kernel(%arg0: i32, %arg1: memref<1x120x16xbf16, #tpu.memory_space<vmem>>, %arg2: memref<9x16x32xbf16, #tpu.memory_space<vmem>>, %arg3: memref<1x32xf32, #tpu.memory_space<vmem>>, %arg4: memref<1x16x32xbf16, #tpu.memory_space<vmem>>) attributes {dimension_semantics = [#tpu.dimension_semantics<parallel>], iteration_bounds = array<i64: 4>, scalar_prefetch = 0 : i64, scratch_operands = 0 : i64, tpu.core_type = #tpu.core_type<tc>, window_params = [{transform_indices = @transform_0, window_bounds = array<i64: 1, 120, 16>}, {pipeline_mode = #tpu.pipeline_mode<synchronous>, transform_indices = @transform_1, window_bounds = array<i64: 9, 16, 32>}, {pipeline_mode = #tpu.pipeline_mode<synchronous>, transform_indices = @transform_2, window_bounds = array<i64: 1, 32>}, {transform_indices = @transform_3, window_bounds = array<i64: 1, 16, 32>}]} {
    %cst = arith.constant 0.000000e+00 : f32
    %0 = vector.broadcast %cst : f32 to vector<16x32xf32>
    %c0 = arith.constant 0 : index
    %c0_0 = arith.constant 0 : index
    %c0_1 = arith.constant 0 : index
    %1 = vector.load %arg1[%c0, %c0_0, %c0_1] : memref<1x120x16xbf16, #tpu.memory_space<vmem>>, vector<1x16x16xbf16>
    %2 = vector.shape_cast %1 : vector<1x16x16xbf16> to vector<16x16xbf16>
    %c0_2 = arith.constant 0 : index
    %c0_3 = arith.constant 0 : index
    %c0_4 = arith.constant 0 : index
    %3 = vector.load %arg2[%c0_2, %c0_3, %c0_4] : memref<9x16x32xbf16, #tpu.memory_space<vmem>>, vector<1x16x32xbf16>
    %4 = vector.shape_cast %3 : vector<1x16x32xbf16> to vector<16x32xbf16>
    %cst_5 = arith.constant dense<0.000000e+00> : vector<16x32xf32>
    %5 = tpu.matmul %2, %4, %cst_5 {dimension_numbers = #tpu.dot_dimension_numbers<[1], [0], [0], [1], [0, 0, 1, 1], [], []>} : vector<16x16xbf16>, vector<16x32xbf16>, vector<16x32xf32> -> vector<16x32xf32>
    %6 = arith.addf %0, %5 : vector<16x32xf32>
    %c0_6 = arith.constant 0 : index
    %c20 = arith.constant 20 : index
    %c0_7 = arith.constant 0 : index
    %7 = vector.load %arg1[%c0_6, %c20, %c0_7] : memref<1x120x16xbf16, #tpu.memory_space<vmem>>, vector<1x16x16xbf16>
    %8 = vector.shape_cast %7 : vector<1x16x16xbf16> to vector<16x16xbf16>
    %c1 = arith.constant 1 : index
    %c0_8 = arith.constant 0 : index
    %c0_9 = arith.constant 0 : index
    %9 = vector.load %arg2[%c1, %c0_8, %c0_9] : memref<9x16x32xbf16, #tpu.memory_space<vmem>>, vector<1x16x32xbf16>
    %10 = vector.shape_cast %9 : vector<1x16x32xbf16> to vector<16x32xbf16>
    %cst_10 = arith.constant dense<0.000000e+00> : vector<16x32xf32>
    %11 = tpu.matmul %8, %10, %cst_10 {dimension_numbers = #tpu.dot_dimension_numbers<[1], [0], [0], [1], [0, 0, 1, 1], [], []>} : vector<16x16xbf16>, vector<16x32xbf16>, vector<16x32xf32> -> vector<16x32xf32>
    %12 = arith.addf %6, %11 : vector<16x32xf32>
    %c0_11 = arith.constant 0 : index
    %c40 = arith.constant 40 : index
    %c0_12 = arith.constant 0 : index
    %13 = vector.load %arg1[%c0_11, %c40, %c0_12] : memref<1x120x16xbf16, #tpu.memory_space<vmem>>, vector<1x16x16xbf16>
    %14 = vector.shape_cast %13 : vector<1x16x16xbf16> to vector<16x16xbf16>
    %c2 = arith.constant 2 : index
    %c0_13 = arith.constant 0 : index
    %c0_14 = arith.constant 0 : index
    %15 = vector.load %arg2[%c2, %c0_13, %c0_14] : memref<9x16x32xbf16, #tpu.memory_space<vmem>>, vector<1x16x32xbf16>
    %16 = vector.shape_cast %15 : vector<1x16x32xbf16> to vector<16x32xbf16>
    %cst_15 = arith.constant dense<0.000000e+00> : vector<16x32xf32>
    %17 = tpu.matmul %14, %16, %cst_15 {dimension_numbers = #tpu.dot_dimension_numbers<[1], [0], [0], [1], [0, 0, 1, 1], [], []>} : vector<16x16xbf16>, vector<16x32xbf16>, vector<16x32xf32> -> vector<16x32xf32>
    %18 = arith.addf %12, %17 : vector<16x32xf32>
    %c0_16 = arith.constant 0 : index
    %c60 = arith.constant 60 : index
    %c0_17 = arith.constant 0 : index
    %19 = vector.load %arg1[%c0_16, %c60, %c0_17] : memref<1x120x16xbf16, #tpu.memory_space<vmem>>, vector<1x16x16xbf16>
    %20 = vector.shape_cast %19 : vector<1x16x16xbf16> to vector<16x16xbf16>
    %c3 = arith.constant 3 : index
    %c0_18 = arith.constant 0 : index
    %c0_19 = arith.constant 0 : index
    %21 = vector.load %arg2[%c3, %c0_18, %c0_19] : memref<9x16x32xbf16, #tpu.memory_space<vmem>>, vector<1x16x32xbf16>
    %22 = vector.shape_cast %21 : vector<1x16x32xbf16> to vector<16x32xbf16>
    %cst_20 = arith.constant dense<0.000000e+00> : vector<16x32xf32>
    %23 = tpu.matmul %20, %22, %cst_20 {dimension_numbers = #tpu.dot_dimension_numbers<[1], [0], [0], [1], [0, 0, 1, 1], [], []>} : vector<16x16xbf16>, vector<16x32xbf16>, vector<16x32xf32> -> vector<16x32xf32>
    %24 = arith.addf %18, %23 : vector<16x32xf32>
    %c0_21 = arith.constant 0 : index
    %c80 = arith.constant 80 : index
    %c0_22 = arith.constant 0 : index
    %25 = vector.load %arg1[%c0_21, %c80, %c0_22] : memref<1x120x16xbf16, #tpu.memory_space<vmem>>, vector<1x16x16xbf16>
    %26 = vector.shape_cast %25 : vector<1x16x16xbf16> to vector<16x16xbf16>
    %c4 = arith.constant 4 : index
    %c0_23 = arith.constant 0 : index
    %c0_24 = arith.constant 0 : index
    %27 = vector.load %arg2[%c4, %c0_23, %c0_24] : memref<9x16x32xbf16, #tpu.memory_space<vmem>>, vector<1x16x32xbf16>
    %28 = vector.shape_cast %27 : vector<1x16x32xbf16> to vector<16x32xbf16>
    %cst_25 = arith.constant dense<0.000000e+00> : vector<16x32xf32>
    %29 = tpu.matmul %26, %28, %cst_25 {dimension_numbers = #tpu.dot_dimension_numbers<[1], [0], [0], [1], [0, 0, 1, 1], [], []>} : vector<16x16xbf16>, vector<16x32xbf16>, vector<16x32xf32> -> vector<16x32xf32>
    %30 = arith.addf %24, %29 : vector<16x32xf32>
    %c0_26 = arith.constant 0 : index
    %c100 = arith.constant 100 : index
    %c0_27 = arith.constant 0 : index
    %31 = vector.load %arg1[%c0_26, %c100, %c0_27] : memref<1x120x16xbf16, #tpu.memory_space<vmem>>, vector<1x16x16xbf16>
    %32 = vector.shape_cast %31 : vector<1x16x16xbf16> to vector<16x16xbf16>
    %c5 = arith.constant 5 : index
    %c0_28 = arith.constant 0 : index
    %c0_29 = arith.constant 0 : index
    %33 = vector.load %arg2[%c5, %c0_28, %c0_29] : memref<9x16x32xbf16, #tpu.memory_space<vmem>>, vector<1x16x32xbf16>
    %34 = vector.shape_cast %33 : vector<1x16x32xbf16> to vector<16x32xbf16>
    %cst_30 = arith.constant dense<0.000000e+00> : vector<16x32xf32>
    %35 = tpu.matmul %32, %34, %cst_30 {dimension_numbers = #tpu.dot_dimension_numbers<[1], [0], [0], [1], [0, 0, 1, 1], [], []>} : vector<16x16xbf16>, vector<16x32xbf16>, vector<16x32xf32> -> vector<16x32xf32>
    %36 = arith.addf %30, %35 : vector<16x32xf32>
    %c0_31 = arith.constant 0 : index
    %c4_32 = arith.constant 4 : index
    %c0_33 = arith.constant 0 : index
    %37 = vector.load %arg1[%c0_31, %c4_32, %c0_33] : memref<1x120x16xbf16, #tpu.memory_space<vmem>>, vector<1x16x16xbf16>
    %38 = vector.shape_cast %37 : vector<1x16x16xbf16> to vector<16x16xbf16>
    %c6 = arith.constant 6 : index
    %c0_34 = arith.constant 0 : index
    %c0_35 = arith.constant 0 : index
    %39 = vector.load %arg2[%c6, %c0_34, %c0_35] : memref<9x16x32xbf16, #tpu.memory_space<vmem>>, vector<1x16x32xbf16>
    %40 = vector.shape_cast %39 : vector<1x16x32xbf16> to vector<16x32xbf16>
    %cst_36 = arith.constant dense<0.000000e+00> : vector<16x32xf32>
    %41 = tpu.matmul %38, %40, %cst_36 {dimension_numbers = #tpu.dot_dimension_numbers<[1], [0], [0], [1], [0, 0, 1, 1], [], []>} : vector<16x16xbf16>, vector<16x32xbf16>, vector<16x32xf32> -> vector<16x32xf32>
    %42 = arith.addf %36, %41 : vector<16x32xf32>
    %c0_37 = arith.constant 0 : index
    %c24 = arith.constant 24 : index
    %c0_38 = arith.constant 0 : index
    %43 = vector.load %arg1[%c0_37, %c24, %c0_38] : memref<1x120x16xbf16, #tpu.memory_space<vmem>>, vector<1x16x16xbf16>
    %44 = vector.shape_cast %43 : vector<1x16x16xbf16> to vector<16x16xbf16>
    %c7 = arith.constant 7 : index
    %c0_39 = arith.constant 0 : index
    %c0_40 = arith.constant 0 : index
    %45 = vector.load %arg2[%c7, %c0_39, %c0_40] : memref<9x16x32xbf16, #tpu.memory_space<vmem>>, vector<1x16x32xbf16>
    %46 = vector.shape_cast %45 : vector<1x16x32xbf16> to vector<16x32xbf16>
    %cst_41 = arith.constant dense<0.000000e+00> : vector<16x32xf32>
    %47 = tpu.matmul %44, %46, %cst_41 {dimension_numbers = #tpu.dot_dimension_numbers<[1], [0], [0], [1], [0, 0, 1, 1], [], []>} : vector<16x16xbf16>, vector<16x32xbf16>, vector<16x32xf32> -> vector<16x32xf32>
    %48 = arith.addf %42, %47 : vector<16x32xf32>
    %c0_42 = arith.constant 0 : index
    %c44 = arith.constant 44 : index
    %c0_43 = arith.constant 0 : index
    %49 = vector.load %arg1[%c0_42, %c44, %c0_43] : memref<1x120x16xbf16, #tpu.memory_space<vmem>>, vector<1x16x16xbf16>
    %50 = vector.shape_cast %49 : vector<1x16x16xbf16> to vector<16x16xbf16>
    %c8 = arith.constant 8 : index
    %c0_44 = arith.constant 0 : index
    %c0_45 = arith.constant 0 : index
    %51 = vector.load %arg2[%c8, %c0_44, %c0_45] : memref<9x16x32xbf16, #tpu.memory_space<vmem>>, vector<1x16x32xbf16>
    %52 = vector.shape_cast %51 : vector<1x16x32xbf16> to vector<16x32xbf16>
    %cst_46 = arith.constant dense<0.000000e+00> : vector<16x32xf32>
    %53 = tpu.matmul %50, %52, %cst_46 {dimension_numbers = #tpu.dot_dimension_numbers<[1], [0], [0], [1], [0, 0, 1, 1], [], []>} : vector<16x16xbf16>, vector<16x32xbf16>, vector<16x32xf32> -> vector<16x32xf32>
    %54 = arith.addf %48, %53 : vector<16x32xf32>
    %c0_47 = arith.constant 0 : index
    %c0_48 = arith.constant 0 : index
    %55 = vector.load %arg3[%c0_47, %c0_48] : memref<1x32xf32, #tpu.memory_space<vmem>>, vector<1x32xf32>
    %56 = vector.broadcast %55 : vector<1x32xf32> to vector<16x32xf32>
    %57 = arith.addf %54, %56 : vector<16x32xf32>
    %cst_49 = arith.constant 0.000000e+00 : f32
    %58 = vector.broadcast %cst_49 : f32 to vector<16x32xf32>
    %59 = arith.maximumf %57, %58 : vector<16x32xf32>
    %60 = arith.truncf %59 : vector<16x32xf32> to vector<16x32xbf16>
    %c0_50 = arith.constant 0 : index
    %c0_51 = arith.constant 0 : index
    %c0_52 = arith.constant 0 : index
    %61 = vector.load %arg4[%c0_50, %c0_51, %c0_52] : memref<1x16x32xbf16, #tpu.memory_space<vmem>>, vector<1x16x32xbf16>
    %62 = vector.shape_cast %61 : vector<1x16x32xbf16> to vector<16x32xbf16>
    %63 = vector.shape_cast %60 : vector<16x32xbf16> to vector<1x16x32xbf16>
    tpu.vector_store %arg4[%c0_50, %c0_51, %c0_52], %63 {strides = array<i32>} : memref<1x16x32xbf16, #tpu.memory_space<vmem>>, vector<1x16x32xbf16>,
    return
  }
  func.func @transform_0(%arg0: i32) -> (i32, i32, i32) {
    %c0_i32 = arith.constant 0 : i32
    %c0_i32_0 = arith.constant 0 : i32
    %c0_i32_1 = arith.constant 0 : i32
    return %arg0, %c0_i32, %c0_i32_0 : i32, i32, i32
  }
  func.func @transform_1(%arg0: i32) -> (i32, i32, i32) {
    %c0_i32 = arith.constant 0 : i32
    %c0_i32_0 = arith.constant 0 : i32
    %c0_i32_1 = arith.constant 0 : i32
    %c0_i32_2 = arith.constant 0 : i32
    return %c0_i32, %c0_i32_0, %c0_i32_1 : i32, i32, i32
  }
  func.func @transform_2(%arg0: i32) -> (i32, i32) {
    %c0_i32 = arith.constant 0 : i32
    %c0_i32_0 = arith.constant 0 : i32
    %c0_i32_1 = arith.constant 0 : i32
    return %c0_i32, %c0_i32_0 : i32, i32
  }
  func.func @transform_3(%arg0: i32) -> (i32, i32, i32) {
    %c0_i32 = arith.constant 0 : i32
    %c0_i32_0 = arith.constant 0 : i32
    %c0_i32_1 = arith.constant 0 : i32
    return %arg0, %c0_i32, %c0_i32_0 : i32, i32, i32
  }
}

module attributes {stable_mosaic.version = 11 : i64} {
  func.func @_lpips_compare_kernel(%arg0: i32, %arg1: memref<2x16x32xbf16, #tpu.memory_space<vmem>>, %arg2: memref<2x16x32xbf16, #tpu.memory_space<vmem>>, %arg3: memref<1x32xf32, #tpu.memory_space<vmem>>, %arg4: memref<2x1xf32, #tpu.memory_space<vmem>>, %arg5: memref<2x32xf32, #tpu.memory_space<vmem>>) attributes {dimension_semantics = [#tpu.dimension_semantics<arbitrary>], iteration_bounds = array<i64: 1>, scalar_prefetch = 0 : i64, scratch_operands = 1 : i64, tpu.core_type = #tpu.core_type<tc>, window_params = [{transform_indices = @transform_0, window_bounds = array<i64: 2, 16, 32>}, {transform_indices = @transform_1, window_bounds = array<i64: 2, 16, 32>}, {pipeline_mode = #tpu.pipeline_mode<synchronous>, transform_indices = @transform_2, window_bounds = array<i64: 1, 32>}, {pipeline_mode = #tpu.pipeline_mode<synchronous>, transform_indices = @transform_3, window_bounds = array<i64: 2, 1>}]} {
    %c0_i32 = arith.constant 0 : i32
    %0 = arith.cmpi eq, %arg0, %c0_i32 : i32
    %1 = arith.extui %0 : i1 to i32
    %c0_i32_0 = arith.constant 0 : i32
    %2 = arith.cmpi ne, %1, %c0_i32_0 : i32
    scf.if %2 {
      %cst_16 = arith.constant 0.000000e+00 : f32
      %32 = vector.broadcast %cst_16 : f32 to vector<2x32xf32>
      %c0_17 = arith.constant 0 : index
      %c0_18 = arith.constant 0 : index
      %33 = vector.load %arg5[%c0_17, %c0_18] : memref<2x32xf32, #tpu.memory_space<vmem>>, vector<2x32xf32>
      tpu.vector_store %arg5[%c0_17, %c0_18], %32 {strides = array<i32>} : memref<2x32xf32, #tpu.memory_space<vmem>>, vector<2x32xf32>,
    } else {
    }
    %c0 = arith.constant 0 : index
    %c0_1 = arith.constant 0 : index
    %c0_2 = arith.constant 0 : index
    %3 = vector.load %arg1[%c0, %c0_1, %c0_2] : memref<2x16x32xbf16, #tpu.memory_space<vmem>>, vector<2x16x32xbf16>
    %4 = arith.extf %3 : vector<2x16x32xbf16> to vector<2x16x32xf32>
    %c0_3 = arith.constant 0 : index
    %c0_4 = arith.constant 0 : index
    %c0_5 = arith.constant 0 : index
    %5 = vector.load %arg2[%c0_3, %c0_4, %c0_5] : memref<2x16x32xbf16, #tpu.memory_space<vmem>>, vector<2x16x32xbf16>
    %6 = arith.extf %5 : vector<2x16x32xbf16> to vector<2x16x32xf32>
    %7 = arith.mulf %4, %4 : vector<2x16x32xf32>
    %cst = arith.constant dense<0.000000e+00> : vector<2x16xf32>
    %8 = vector.multi_reduction <add>, %7, %cst [2] : vector<2x16x32xf32> to vector<2x16xf32>
    %9 = vector.shape_cast %8 : vector<2x16xf32> to vector<2x16x1xf32>
    %10 = math.sqrt %9 : vector<2x16x1xf32>
    %cst_6 = arith.constant 1.000000e-10 : f32
    %11 = vector.broadcast %cst_6 : f32 to vector<2x16x1xf32>
    %12 = arith.addf %10, %11 : vector<2x16x1xf32>
    %13 = vector.broadcast %12 : vector<2x16x1xf32> to vector<2x16x32xf32>
    %14 = arith.divf %4, %13 : vector<2x16x32xf32>
    %15 = arith.mulf %6, %6 : vector<2x16x32xf32>
    %cst_7 = arith.constant dense<0.000000e+00> : vector<2x16xf32>
    %16 = vector.multi_reduction <add>, %15, %cst_7 [2] : vector<2x16x32xf32> to vector<2x16xf32>
    %17 = vector.shape_cast %16 : vector<2x16xf32> to vector<2x16x1xf32>
    %18 = math.sqrt %17 : vector<2x16x1xf32>
    %cst_8 = arith.constant 1.000000e-10 : f32
    %19 = vector.broadcast %cst_8 : f32 to vector<2x16x1xf32>
    %20 = arith.addf %18, %19 : vector<2x16x1xf32>
    %21 = vector.broadcast %20 : vector<2x16x1xf32> to vector<2x16x32xf32>
    %22 = arith.divf %6, %21 : vector<2x16x32xf32>
    %23 = arith.subf %14, %22 : vector<2x16x32xf32>
    %24 = arith.mulf %23, %23 : vector<2x16x32xf32>
    %c0_9 = arith.constant 0 : index
    %c0_10 = arith.constant 0 : index
    %25 = vector.load %arg5[%c0_9, %c0_10] : memref<2x32xf32, #tpu.memory_space<vmem>>, vector<2x32xf32>
    %cst_11 = arith.constant dense<0.000000e+00> : vector<2x32xf32>
    %26 = vector.multi_reduction <add>, %24, %cst_11 [1] : vector<2x16x32xf32> to vector<2x32xf32>
    %27 = arith.addf %25, %26 : vector<2x32xf32>
    %c0_12 = arith.constant 0 : index
    %c0_13 = arith.constant 0 : index
    %28 = vector.load %arg5[%c0_12, %c0_13] : memref<2x32xf32, #tpu.memory_space<vmem>>, vector<2x32xf32>
    tpu.vector_store %arg5[%c0_12, %c0_13], %27 {strides = array<i32>} : memref<2x32xf32, #tpu.memory_space<vmem>>, vector<2x32xf32>,
    %c0_i32_14 = arith.constant 0 : i32
    %29 = arith.cmpi eq, %arg0, %c0_i32_14 : i32
    %30 = arith.extui %29 : i1 to i32
    %c0_i32_15 = arith.constant 0 : i32
    %31 = arith.cmpi ne, %30, %c0_i32_15 : i32
    scf.if %31 {
      %c0_16 = arith.constant 0 : index
      %c0_17 = arith.constant 0 : index
      %32 = vector.load %arg5[%c0_16, %c0_17] : memref<2x32xf32, #tpu.memory_space<vmem>>, vector<2x32xf32>
      %c0_18 = arith.constant 0 : index
      %c0_19 = arith.constant 0 : index
      %33 = vector.load %arg3[%c0_18, %c0_19] : memref<1x32xf32, #tpu.memory_space<vmem>>, vector<1x32xf32>
      %34 = vector.broadcast %33 : vector<1x32xf32> to vector<2x32xf32>
      %35 = arith.mulf %32, %34 : vector<2x32xf32>
      %cst_20 = arith.constant dense<0.000000e+00> : vector<2xf32>
      %36 = vector.multi_reduction <add>, %35, %cst_20 [1] : vector<2x32xf32> to vector<2xf32>
      %37 = vector.shape_cast %36 : vector<2xf32> to vector<2x1xf32>
      %cst_21 = arith.constant 6.250000e-02 : f32
      %38 = vector.broadcast %cst_21 : f32 to vector<2x1xf32>
      %39 = arith.mulf %37, %38 : vector<2x1xf32>
      %c0_22 = arith.constant 0 : index
      %c0_23 = arith.constant 0 : index
      %40 = vector.load %arg4[%c0_22, %c0_23] : memref<2x1xf32, #tpu.memory_space<vmem>>, vector<2x1xf32>
      tpu.vector_store %arg4[%c0_22, %c0_23], %39 {strides = array<i32>} : memref<2x1xf32, #tpu.memory_space<vmem>>, vector<2x1xf32>,
    } else {
    }
    return
  }
  func.func @transform_0(%arg0: i32) -> (i32, i32, i32) {
    %c0_i32 = arith.constant 0 : i32
    %c0_i32_0 = arith.constant 0 : i32
    %c0_i32_1 = arith.constant 0 : i32
    return %c0_i32, %arg0, %c0_i32_0 : i32, i32, i32
  }
  func.func @transform_1(%arg0: i32) -> (i32, i32, i32) {
    %c1_i32 = arith.constant 1 : i32
    %c0_i32 = arith.constant 0 : i32
    %c0_i32_0 = arith.constant 0 : i32
    return %c1_i32, %arg0, %c0_i32 : i32, i32, i32
  }
  func.func @transform_2(%arg0: i32) -> (i32, i32) {
    %c0_i32 = arith.constant 0 : i32
    %c0_i32_0 = arith.constant 0 : i32
    %c0_i32_1 = arith.constant 0 : i32
    return %c0_i32, %c0_i32_0 : i32, i32
  }
  func.func @transform_3(%arg0: i32) -> (i32, i32) {
    %c0_i32 = arith.constant 0 : i32
    %c0_i32_0 = arith.constant 0 : i32
    %c0_i32_1 = arith.constant 0 : i32
    return %c0_i32, %c0_i32_0 : i32, i32
  }
}

module attributes {stable_mosaic.version = 11 : i64} {
  func.func @_conv3x3s2_relu_kernel(%arg0: i32, %arg1: memref<1x36x32xbf16, #tpu.memory_space<vmem>>, %arg2: memref<9x32x64xbf16, #tpu.memory_space<vmem>>, %arg3: memref<1x64xf32, #tpu.memory_space<vmem>>, %arg4: memref<1x4x64xbf16, #tpu.memory_space<vmem>>) attributes {dimension_semantics = [#tpu.dimension_semantics<parallel>], iteration_bounds = array<i64: 4>, scalar_prefetch = 0 : i64, scratch_operands = 0 : i64, tpu.core_type = #tpu.core_type<tc>, window_params = [{transform_indices = @transform_0, window_bounds = array<i64: 1, 36, 32>}, {pipeline_mode = #tpu.pipeline_mode<synchronous>, transform_indices = @transform_1, window_bounds = array<i64: 9, 32, 64>}, {pipeline_mode = #tpu.pipeline_mode<synchronous>, transform_indices = @transform_2, window_bounds = array<i64: 1, 64>}, {transform_indices = @transform_3, window_bounds = array<i64: 1, 4, 64>}]} {
    %cst = arith.constant 0.000000e+00 : f32
    %0 = vector.broadcast %cst : f32 to vector<4x64xf32>
    %c0 = arith.constant 0 : index
    %c0_0 = arith.constant 0 : index
    %c0_1 = arith.constant 0 : index
    %1 = vector.load %arg1[%c0, %c0_0, %c0_1] : memref<1x36x32xbf16, #tpu.memory_space<vmem>>, vector<1x4x32xbf16>
    %2 = vector.shape_cast %1 : vector<1x4x32xbf16> to vector<4x32xbf16>
    %c0_2 = arith.constant 0 : index
    %c0_3 = arith.constant 0 : index
    %c0_4 = arith.constant 0 : index
    %3 = vector.load %arg2[%c0_2, %c0_3, %c0_4] : memref<9x32x64xbf16, #tpu.memory_space<vmem>>, vector<1x32x64xbf16>
    %4 = vector.shape_cast %3 : vector<1x32x64xbf16> to vector<32x64xbf16>
    %cst_5 = arith.constant dense<0.000000e+00> : vector<4x64xf32>
    %5 = tpu.matmul %2, %4, %cst_5 {dimension_numbers = #tpu.dot_dimension_numbers<[1], [0], [0], [1], [0, 0, 1, 1], [], []>} : vector<4x32xbf16>, vector<32x64xbf16>, vector<4x64xf32> -> vector<4x64xf32>
    %6 = arith.addf %0, %5 : vector<4x64xf32>
    %c0_6 = arith.constant 0 : index
    %c6 = arith.constant 6 : index
    %c0_7 = arith.constant 0 : index
    %7 = vector.load %arg1[%c0_6, %c6, %c0_7] : memref<1x36x32xbf16, #tpu.memory_space<vmem>>, vector<1x4x32xbf16>
    %8 = vector.shape_cast %7 : vector<1x4x32xbf16> to vector<4x32xbf16>
    %c1 = arith.constant 1 : index
    %c0_8 = arith.constant 0 : index
    %c0_9 = arith.constant 0 : index
    %9 = vector.load %arg2[%c1, %c0_8, %c0_9] : memref<9x32x64xbf16, #tpu.memory_space<vmem>>, vector<1x32x64xbf16>
    %10 = vector.shape_cast %9 : vector<1x32x64xbf16> to vector<32x64xbf16>
    %cst_10 = arith.constant dense<0.000000e+00> : vector<4x64xf32>
    %11 = tpu.matmul %8, %10, %cst_10 {dimension_numbers = #tpu.dot_dimension_numbers<[1], [0], [0], [1], [0, 0, 1, 1], [], []>} : vector<4x32xbf16>, vector<32x64xbf16>, vector<4x64xf32> -> vector<4x64xf32>
    %12 = arith.addf %6, %11 : vector<4x64xf32>
    %c0_11 = arith.constant 0 : index
    %c12 = arith.constant 12 : index
    %c0_12 = arith.constant 0 : index
    %13 = vector.load %arg1[%c0_11, %c12, %c0_12] : memref<1x36x32xbf16, #tpu.memory_space<vmem>>, vector<1x4x32xbf16>
    %14 = vector.shape_cast %13 : vector<1x4x32xbf16> to vector<4x32xbf16>
    %c2 = arith.constant 2 : index
    %c0_13 = arith.constant 0 : index
    %c0_14 = arith.constant 0 : index
    %15 = vector.load %arg2[%c2, %c0_13, %c0_14] : memref<9x32x64xbf16, #tpu.memory_space<vmem>>, vector<1x32x64xbf16>
    %16 = vector.shape_cast %15 : vector<1x32x64xbf16> to vector<32x64xbf16>
    %cst_15 = arith.constant dense<0.000000e+00> : vector<4x64xf32>
    %17 = tpu.matmul %14, %16, %cst_15 {dimension_numbers = #tpu.dot_dimension_numbers<[1], [0], [0], [1], [0, 0, 1, 1], [], []>} : vector<4x32xbf16>, vector<32x64xbf16>, vector<4x64xf32> -> vector<4x64xf32>
    %18 = arith.addf %12, %17 : vector<4x64xf32>
    %c0_16 = arith.constant 0 : index
    %c18 = arith.constant 18 : index
    %c0_17 = arith.constant 0 : index
    %19 = vector.load %arg1[%c0_16, %c18, %c0_17] : memref<1x36x32xbf16, #tpu.memory_space<vmem>>, vector<1x4x32xbf16>
    %20 = vector.shape_cast %19 : vector<1x4x32xbf16> to vector<4x32xbf16>
    %c3 = arith.constant 3 : index
    %c0_18 = arith.constant 0 : index
    %c0_19 = arith.constant 0 : index
    %21 = vector.load %arg2[%c3, %c0_18, %c0_19] : memref<9x32x64xbf16, #tpu.memory_space<vmem>>, vector<1x32x64xbf16>
    %22 = vector.shape_cast %21 : vector<1x32x64xbf16> to vector<32x64xbf16>
    %cst_20 = arith.constant dense<0.000000e+00> : vector<4x64xf32>
    %23 = tpu.matmul %20, %22, %cst_20 {dimension_numbers = #tpu.dot_dimension_numbers<[1], [0], [0], [1], [0, 0, 1, 1], [], []>} : vector<4x32xbf16>, vector<32x64xbf16>, vector<4x64xf32> -> vector<4x64xf32>
    %24 = arith.addf %18, %23 : vector<4x64xf32>
    %c0_21 = arith.constant 0 : index
    %c24 = arith.constant 24 : index
    %c0_22 = arith.constant 0 : index
    %25 = vector.load %arg1[%c0_21, %c24, %c0_22] : memref<1x36x32xbf16, #tpu.memory_space<vmem>>, vector<1x4x32xbf16>
    %26 = vector.shape_cast %25 : vector<1x4x32xbf16> to vector<4x32xbf16>
    %c4 = arith.constant 4 : index
    %c0_23 = arith.constant 0 : index
    %c0_24 = arith.constant 0 : index
    %27 = vector.load %arg2[%c4, %c0_23, %c0_24] : memref<9x32x64xbf16, #tpu.memory_space<vmem>>, vector<1x32x64xbf16>
    %28 = vector.shape_cast %27 : vector<1x32x64xbf16> to vector<32x64xbf16>
    %cst_25 = arith.constant dense<0.000000e+00> : vector<4x64xf32>
    %29 = tpu.matmul %26, %28, %cst_25 {dimension_numbers = #tpu.dot_dimension_numbers<[1], [0], [0], [1], [0, 0, 1, 1], [], []>} : vector<4x32xbf16>, vector<32x64xbf16>, vector<4x64xf32> -> vector<4x64xf32>
    %30 = arith.addf %24, %29 : vector<4x64xf32>
    %c0_26 = arith.constant 0 : index
    %c30 = arith.constant 30 : index
    %c0_27 = arith.constant 0 : index
    %31 = vector.load %arg1[%c0_26, %c30, %c0_27] : memref<1x36x32xbf16, #tpu.memory_space<vmem>>, vector<1x4x32xbf16>
    %32 = vector.shape_cast %31 : vector<1x4x32xbf16> to vector<4x32xbf16>
    %c5 = arith.constant 5 : index
    %c0_28 = arith.constant 0 : index
    %c0_29 = arith.constant 0 : index
    %33 = vector.load %arg2[%c5, %c0_28, %c0_29] : memref<9x32x64xbf16, #tpu.memory_space<vmem>>, vector<1x32x64xbf16>
    %34 = vector.shape_cast %33 : vector<1x32x64xbf16> to vector<32x64xbf16>
    %cst_30 = arith.constant dense<0.000000e+00> : vector<4x64xf32>
    %35 = tpu.matmul %32, %34, %cst_30 {dimension_numbers = #tpu.dot_dimension_numbers<[1], [0], [0], [1], [0, 0, 1, 1], [], []>} : vector<4x32xbf16>, vector<32x64xbf16>, vector<4x64xf32> -> vector<4x64xf32>
    %36 = arith.addf %30, %35 : vector<4x64xf32>
    %c0_31 = arith.constant 0 : index
    %c2_32 = arith.constant 2 : index
    %c0_33 = arith.constant 0 : index
    %37 = vector.load %arg1[%c0_31, %c2_32, %c0_33] : memref<1x36x32xbf16, #tpu.memory_space<vmem>>, vector<1x4x32xbf16>
    %38 = vector.shape_cast %37 : vector<1x4x32xbf16> to vector<4x32xbf16>
    %c6_34 = arith.constant 6 : index
    %c0_35 = arith.constant 0 : index
    %c0_36 = arith.constant 0 : index
    %39 = vector.load %arg2[%c6_34, %c0_35, %c0_36] : memref<9x32x64xbf16, #tpu.memory_space<vmem>>, vector<1x32x64xbf16>
    %40 = vector.shape_cast %39 : vector<1x32x64xbf16> to vector<32x64xbf16>
    %cst_37 = arith.constant dense<0.000000e+00> : vector<4x64xf32>
    %41 = tpu.matmul %38, %40, %cst_37 {dimension_numbers = #tpu.dot_dimension_numbers<[1], [0], [0], [1], [0, 0, 1, 1], [], []>} : vector<4x32xbf16>, vector<32x64xbf16>, vector<4x64xf32> -> vector<4x64xf32>
    %42 = arith.addf %36, %41 : vector<4x64xf32>
    %c0_38 = arith.constant 0 : index
    %c8 = arith.constant 8 : index
    %c0_39 = arith.constant 0 : index
    %43 = vector.load %arg1[%c0_38, %c8, %c0_39] : memref<1x36x32xbf16, #tpu.memory_space<vmem>>, vector<1x4x32xbf16>
    %44 = vector.shape_cast %43 : vector<1x4x32xbf16> to vector<4x32xbf16>
    %c7 = arith.constant 7 : index
    %c0_40 = arith.constant 0 : index
    %c0_41 = arith.constant 0 : index
    %45 = vector.load %arg2[%c7, %c0_40, %c0_41] : memref<9x32x64xbf16, #tpu.memory_space<vmem>>, vector<1x32x64xbf16>
    %46 = vector.shape_cast %45 : vector<1x32x64xbf16> to vector<32x64xbf16>
    %cst_42 = arith.constant dense<0.000000e+00> : vector<4x64xf32>
    %47 = tpu.matmul %44, %46, %cst_42 {dimension_numbers = #tpu.dot_dimension_numbers<[1], [0], [0], [1], [0, 0, 1, 1], [], []>} : vector<4x32xbf16>, vector<32x64xbf16>, vector<4x64xf32> -> vector<4x64xf32>
    %48 = arith.addf %42, %47 : vector<4x64xf32>
    %c0_43 = arith.constant 0 : index
    %c14 = arith.constant 14 : index
    %c0_44 = arith.constant 0 : index
    %49 = vector.load %arg1[%c0_43, %c14, %c0_44] : memref<1x36x32xbf16, #tpu.memory_space<vmem>>, vector<1x4x32xbf16>
    %50 = vector.shape_cast %49 : vector<1x4x32xbf16> to vector<4x32xbf16>
    %c8_45 = arith.constant 8 : index
    %c0_46 = arith.constant 0 : index
    %c0_47 = arith.constant 0 : index
    %51 = vector.load %arg2[%c8_45, %c0_46, %c0_47] : memref<9x32x64xbf16, #tpu.memory_space<vmem>>, vector<1x32x64xbf16>
    %52 = vector.shape_cast %51 : vector<1x32x64xbf16> to vector<32x64xbf16>
    %cst_48 = arith.constant dense<0.000000e+00> : vector<4x64xf32>
    %53 = tpu.matmul %50, %52, %cst_48 {dimension_numbers = #tpu.dot_dimension_numbers<[1], [0], [0], [1], [0, 0, 1, 1], [], []>} : vector<4x32xbf16>, vector<32x64xbf16>, vector<4x64xf32> -> vector<4x64xf32>
    %54 = arith.addf %48, %53 : vector<4x64xf32>
    %c0_49 = arith.constant 0 : index
    %c0_50 = arith.constant 0 : index
    %55 = vector.load %arg3[%c0_49, %c0_50] : memref<1x64xf32, #tpu.memory_space<vmem>>, vector<1x64xf32>
    %56 = vector.broadcast %55 : vector<1x64xf32> to vector<4x64xf32>
    %57 = arith.addf %54, %56 : vector<4x64xf32>
    %cst_51 = arith.constant 0.000000e+00 : f32
    %58 = vector.broadcast %cst_51 : f32 to vector<4x64xf32>
    %59 = arith.maximumf %57, %58 : vector<4x64xf32>
    %60 = arith.truncf %59 : vector<4x64xf32> to vector<4x64xbf16>
    %c0_52 = arith.constant 0 : index
    %c0_53 = arith.constant 0 : index
    %c0_54 = arith.constant 0 : index
    %61 = vector.load %arg4[%c0_52, %c0_53, %c0_54] : memref<1x4x64xbf16, #tpu.memory_space<vmem>>, vector<1x4x64xbf16>
    %62 = vector.shape_cast %61 : vector<1x4x64xbf16> to vector<4x64xbf16>
    %63 = vector.shape_cast %60 : vector<4x64xbf16> to vector<1x4x64xbf16>
    tpu.vector_store %arg4[%c0_52, %c0_53, %c0_54], %63 {strides = array<i32>} : memref<1x4x64xbf16, #tpu.memory_space<vmem>>, vector<1x4x64xbf16>,
    return
  }
  func.func @transform_0(%arg0: i32) -> (i32, i32, i32) {
    %c0_i32 = arith.constant 0 : i32
    %c0_i32_0 = arith.constant 0 : i32
    %c0_i32_1 = arith.constant 0 : i32
    return %arg0, %c0_i32, %c0_i32_0 : i32, i32, i32
  }
  func.func @transform_1(%arg0: i32) -> (i32, i32, i32) {
    %c0_i32 = arith.constant 0 : i32
    %c0_i32_0 = arith.constant 0 : i32
    %c0_i32_1 = arith.constant 0 : i32
    %c0_i32_2 = arith.constant 0 : i32
    return %c0_i32, %c0_i32_0, %c0_i32_1 : i32, i32, i32
  }
  func.func @transform_2(%arg0: i32) -> (i32, i32) {
    %c0_i32 = arith.constant 0 : i32
    %c0_i32_0 = arith.constant 0 : i32
    %c0_i32_1 = arith.constant 0 : i32
    return %c0_i32, %c0_i32_0 : i32, i32
  }
  func.func @transform_3(%arg0: i32) -> (i32, i32, i32) {
    %c0_i32 = arith.constant 0 : i32
    %c0_i32_0 = arith.constant 0 : i32
    %c0_i32_1 = arith.constant 0 : i32
    return %arg0, %c0_i32, %c0_i32_0 : i32, i32, i32
  }
}

module attributes {stable_mosaic.version = 11 : i64} {
  func.func @_lpips_compare_kernel(%arg0: i32, %arg1: memref<2x64x16xbf16, #tpu.memory_space<vmem>>, %arg2: memref<2x64x16xbf16, #tpu.memory_space<vmem>>, %arg3: memref<1x16xf32, #tpu.memory_space<vmem>>, %arg4: memref<2x1xf32, #tpu.memory_space<vmem>>, %arg5: memref<2x16xf32, #tpu.memory_space<vmem>>) attributes {dimension_semantics = [#tpu.dimension_semantics<arbitrary>], iteration_bounds = array<i64: 1>, scalar_prefetch = 0 : i64, scratch_operands = 1 : i64, tpu.core_type = #tpu.core_type<tc>, window_params = [{transform_indices = @transform_0, window_bounds = array<i64: 2, 64, 16>}, {transform_indices = @transform_1, window_bounds = array<i64: 2, 64, 16>}, {pipeline_mode = #tpu.pipeline_mode<synchronous>, transform_indices = @transform_2, window_bounds = array<i64: 1, 16>}, {pipeline_mode = #tpu.pipeline_mode<synchronous>, transform_indices = @transform_3, window_bounds = array<i64: 2, 1>}]} {
    %c0_i32 = arith.constant 0 : i32
    %0 = arith.cmpi eq, %arg0, %c0_i32 : i32
    %1 = arith.extui %0 : i1 to i32
    %c0_i32_0 = arith.constant 0 : i32
    %2 = arith.cmpi ne, %1, %c0_i32_0 : i32
    scf.if %2 {
      %cst_16 = arith.constant 0.000000e+00 : f32
      %32 = vector.broadcast %cst_16 : f32 to vector<2x16xf32>
      %c0_17 = arith.constant 0 : index
      %c0_18 = arith.constant 0 : index
      %33 = vector.load %arg5[%c0_17, %c0_18] : memref<2x16xf32, #tpu.memory_space<vmem>>, vector<2x16xf32>
      tpu.vector_store %arg5[%c0_17, %c0_18], %32 {strides = array<i32>} : memref<2x16xf32, #tpu.memory_space<vmem>>, vector<2x16xf32>,
    } else {
    }
    %c0 = arith.constant 0 : index
    %c0_1 = arith.constant 0 : index
    %c0_2 = arith.constant 0 : index
    %3 = vector.load %arg1[%c0, %c0_1, %c0_2] : memref<2x64x16xbf16, #tpu.memory_space<vmem>>, vector<2x64x16xbf16>
    %4 = arith.extf %3 : vector<2x64x16xbf16> to vector<2x64x16xf32>
    %c0_3 = arith.constant 0 : index
    %c0_4 = arith.constant 0 : index
    %c0_5 = arith.constant 0 : index
    %5 = vector.load %arg2[%c0_3, %c0_4, %c0_5] : memref<2x64x16xbf16, #tpu.memory_space<vmem>>, vector<2x64x16xbf16>
    %6 = arith.extf %5 : vector<2x64x16xbf16> to vector<2x64x16xf32>
    %7 = arith.mulf %4, %4 : vector<2x64x16xf32>
    %cst = arith.constant dense<0.000000e+00> : vector<2x64xf32>
    %8 = vector.multi_reduction <add>, %7, %cst [2] : vector<2x64x16xf32> to vector<2x64xf32>
    %9 = vector.shape_cast %8 : vector<2x64xf32> to vector<2x64x1xf32>
    %10 = math.sqrt %9 : vector<2x64x1xf32>
    %cst_6 = arith.constant 1.000000e-10 : f32
    %11 = vector.broadcast %cst_6 : f32 to vector<2x64x1xf32>
    %12 = arith.addf %10, %11 : vector<2x64x1xf32>
    %13 = vector.broadcast %12 : vector<2x64x1xf32> to vector<2x64x16xf32>
    %14 = arith.divf %4, %13 : vector<2x64x16xf32>
    %15 = arith.mulf %6, %6 : vector<2x64x16xf32>
    %cst_7 = arith.constant dense<0.000000e+00> : vector<2x64xf32>
    %16 = vector.multi_reduction <add>, %15, %cst_7 [2] : vector<2x64x16xf32> to vector<2x64xf32>
    %17 = vector.shape_cast %16 : vector<2x64xf32> to vector<2x64x1xf32>
    %18 = math.sqrt %17 : vector<2x64x1xf32>
    %cst_8 = arith.constant 1.000000e-10 : f32
    %19 = vector.broadcast %cst_8 : f32 to vector<2x64x1xf32>
    %20 = arith.addf %18, %19 : vector<2x64x1xf32>
    %21 = vector.broadcast %20 : vector<2x64x1xf32> to vector<2x64x16xf32>
    %22 = arith.divf %6, %21 : vector<2x64x16xf32>
    %23 = arith.subf %14, %22 : vector<2x64x16xf32>
    %24 = arith.mulf %23, %23 : vector<2x64x16xf32>
    %c0_9 = arith.constant 0 : index
    %c0_10 = arith.constant 0 : index
    %25 = vector.load %arg5[%c0_9, %c0_10] : memref<2x16xf32, #tpu.memory_space<vmem>>, vector<2x16xf32>
    %cst_11 = arith.constant dense<0.000000e+00> : vector<2x16xf32>
    %26 = vector.multi_reduction <add>, %24, %cst_11 [1] : vector<2x64x16xf32> to vector<2x16xf32>
    %27 = arith.addf %25, %26 : vector<2x16xf32>
    %c0_12 = arith.constant 0 : index
    %c0_13 = arith.constant 0 : index
    %28 = vector.load %arg5[%c0_12, %c0_13] : memref<2x16xf32, #tpu.memory_space<vmem>>, vector<2x16xf32>
    tpu.vector_store %arg5[%c0_12, %c0_13], %27 {strides = array<i32>} : memref<2x16xf32, #tpu.memory_space<vmem>>, vector<2x16xf32>,
    %c0_i32_14 = arith.constant 0 : i32
    %29 = arith.cmpi eq, %arg0, %c0_i32_14 : i32
    %30 = arith.extui %29 : i1 to i32
    %c0_i32_15 = arith.constant 0 : i32
    %31 = arith.cmpi ne, %30, %c0_i32_15 : i32
    scf.if %31 {
      %c0_16 = arith.constant 0 : index
      %c0_17 = arith.constant 0 : index
      %32 = vector.load %arg5[%c0_16, %c0_17] : memref<2x16xf32, #tpu.memory_space<vmem>>, vector<2x16xf32>
      %c0_18 = arith.constant 0 : index
      %c0_19 = arith.constant 0 : index
      %33 = vector.load %arg3[%c0_18, %c0_19] : memref<1x16xf32, #tpu.memory_space<vmem>>, vector<1x16xf32>
      %34 = vector.broadcast %33 : vector<1x16xf32> to vector<2x16xf32>
      %35 = arith.mulf %32, %34 : vector<2x16xf32>
      %cst_20 = arith.constant dense<0.000000e+00> : vector<2xf32>
      %36 = vector.multi_reduction <add>, %35, %cst_20 [1] : vector<2x16xf32> to vector<2xf32>
      %37 = vector.shape_cast %36 : vector<2xf32> to vector<2x1xf32>
      %cst_21 = arith.constant 1.562500e-02 : f32
      %38 = vector.broadcast %cst_21 : f32 to vector<2x1xf32>
      %39 = arith.mulf %37, %38 : vector<2x1xf32>
      %c0_22 = arith.constant 0 : index
      %c0_23 = arith.constant 0 : index
      %40 = vector.load %arg4[%c0_22, %c0_23] : memref<2x1xf32, #tpu.memory_space<vmem>>, vector<2x1xf32>
      tpu.vector_store %arg4[%c0_22, %c0_23], %39 {strides = array<i32>} : memref<2x1xf32, #tpu.memory_space<vmem>>, vector<2x1xf32>,
    } else {
    }
    return
  }
  func.func @transform_0(%arg0: i32) -> (i32, i32, i32) {
    %c0_i32 = arith.constant 0 : i32
    %c0_i32_0 = arith.constant 0 : i32
    %c0_i32_1 = arith.constant 0 : i32
    return %c0_i32, %arg0, %c0_i32_0 : i32, i32, i32
  }
  func.func @transform_1(%arg0: i32) -> (i32, i32, i32) {
    %c1_i32 = arith.constant 1 : i32
    %c0_i32 = arith.constant 0 : i32
    %c0_i32_0 = arith.constant 0 : i32
    return %c1_i32, %arg0, %c0_i32 : i32, i32, i32
  }
  func.func @transform_2(%arg0: i32) -> (i32, i32) {
    %c0_i32 = arith.constant 0 : i32
    %c0_i32_0 = arith.constant 0 : i32
    %c0_i32_1 = arith.constant 0 : i32
    return %c0_i32, %c0_i32_0 : i32, i32
  }
  func.func @transform_3(%arg0: i32) -> (i32, i32) {
    %c0_i32 = arith.constant 0 : i32
    %c0_i32_0 = arith.constant 0 : i32
    %c0_i32_1 = arith.constant 0 : i32
    return %c0_i32, %c0_i32_0 : i32, i32
  }
}

module attributes {stable_mosaic.version = 11 : i64} {
  func.func @_lpips_compare_kernel(%arg0: i32, %arg1: memref<2x8x64xbf16, #tpu.memory_space<vmem>>, %arg2: memref<2x8x64xbf16, #tpu.memory_space<vmem>>, %arg3: memref<1x64xf32, #tpu.memory_space<vmem>>, %arg4: memref<2x1xf32, #tpu.memory_space<vmem>>, %arg5: memref<2x64xf32, #tpu.memory_space<vmem>>) attributes {dimension_semantics = [#tpu.dimension_semantics<arbitrary>], iteration_bounds = array<i64: 1>, scalar_prefetch = 0 : i64, scratch_operands = 1 : i64, tpu.core_type = #tpu.core_type<tc>, window_params = [{transform_indices = @transform_0, window_bounds = array<i64: 2, 8, 64>}, {transform_indices = @transform_1, window_bounds = array<i64: 2, 8, 64>}, {pipeline_mode = #tpu.pipeline_mode<synchronous>, transform_indices = @transform_2, window_bounds = array<i64: 1, 64>}, {pipeline_mode = #tpu.pipeline_mode<synchronous>, transform_indices = @transform_3, window_bounds = array<i64: 2, 1>}]} {
    %c0_i32 = arith.constant 0 : i32
    %0 = arith.cmpi eq, %arg0, %c0_i32 : i32
    %1 = arith.extui %0 : i1 to i32
    %c0_i32_0 = arith.constant 0 : i32
    %2 = arith.cmpi ne, %1, %c0_i32_0 : i32
    scf.if %2 {
      %cst_16 = arith.constant 0.000000e+00 : f32
      %32 = vector.broadcast %cst_16 : f32 to vector<2x64xf32>
      %c0_17 = arith.constant 0 : index
      %c0_18 = arith.constant 0 : index
      %33 = vector.load %arg5[%c0_17, %c0_18] : memref<2x64xf32, #tpu.memory_space<vmem>>, vector<2x64xf32>
      tpu.vector_store %arg5[%c0_17, %c0_18], %32 {strides = array<i32>} : memref<2x64xf32, #tpu.memory_space<vmem>>, vector<2x64xf32>,
    } else {
    }
    %c0 = arith.constant 0 : index
    %c0_1 = arith.constant 0 : index
    %c0_2 = arith.constant 0 : index
    %3 = vector.load %arg1[%c0, %c0_1, %c0_2] : memref<2x8x64xbf16, #tpu.memory_space<vmem>>, vector<2x8x64xbf16>
    %4 = arith.extf %3 : vector<2x8x64xbf16> to vector<2x8x64xf32>
    %c0_3 = arith.constant 0 : index
    %c0_4 = arith.constant 0 : index
    %c0_5 = arith.constant 0 : index
    %5 = vector.load %arg2[%c0_3, %c0_4, %c0_5] : memref<2x8x64xbf16, #tpu.memory_space<vmem>>, vector<2x8x64xbf16>
    %6 = arith.extf %5 : vector<2x8x64xbf16> to vector<2x8x64xf32>
    %7 = arith.mulf %4, %4 : vector<2x8x64xf32>
    %cst = arith.constant dense<0.000000e+00> : vector<2x8xf32>
    %8 = vector.multi_reduction <add>, %7, %cst [2] : vector<2x8x64xf32> to vector<2x8xf32>
    %9 = vector.shape_cast %8 : vector<2x8xf32> to vector<2x8x1xf32>
    %10 = math.sqrt %9 : vector<2x8x1xf32>
    %cst_6 = arith.constant 1.000000e-10 : f32
    %11 = vector.broadcast %cst_6 : f32 to vector<2x8x1xf32>
    %12 = arith.addf %10, %11 : vector<2x8x1xf32>
    %13 = vector.broadcast %12 : vector<2x8x1xf32> to vector<2x8x64xf32>
    %14 = arith.divf %4, %13 : vector<2x8x64xf32>
    %15 = arith.mulf %6, %6 : vector<2x8x64xf32>
    %cst_7 = arith.constant dense<0.000000e+00> : vector<2x8xf32>
    %16 = vector.multi_reduction <add>, %15, %cst_7 [2] : vector<2x8x64xf32> to vector<2x8xf32>
    %17 = vector.shape_cast %16 : vector<2x8xf32> to vector<2x8x1xf32>
    %18 = math.sqrt %17 : vector<2x8x1xf32>
    %cst_8 = arith.constant 1.000000e-10 : f32
    %19 = vector.broadcast %cst_8 : f32 to vector<2x8x1xf32>
    %20 = arith.addf %18, %19 : vector<2x8x1xf32>
    %21 = vector.broadcast %20 : vector<2x8x1xf32> to vector<2x8x64xf32>
    %22 = arith.divf %6, %21 : vector<2x8x64xf32>
    %23 = arith.subf %14, %22 : vector<2x8x64xf32>
    %24 = arith.mulf %23, %23 : vector<2x8x64xf32>
    %c0_9 = arith.constant 0 : index
    %c0_10 = arith.constant 0 : index
    %25 = vector.load %arg5[%c0_9, %c0_10] : memref<2x64xf32, #tpu.memory_space<vmem>>, vector<2x64xf32>
    %cst_11 = arith.constant dense<0.000000e+00> : vector<2x64xf32>
    %26 = vector.multi_reduction <add>, %24, %cst_11 [1] : vector<2x8x64xf32> to vector<2x64xf32>
    %27 = arith.addf %25, %26 : vector<2x64xf32>
    %c0_12 = arith.constant 0 : index
    %c0_13 = arith.constant 0 : index
    %28 = vector.load %arg5[%c0_12, %c0_13] : memref<2x64xf32, #tpu.memory_space<vmem>>, vector<2x64xf32>
    tpu.vector_store %arg5[%c0_12, %c0_13], %27 {strides = array<i32>} : memref<2x64xf32, #tpu.memory_space<vmem>>, vector<2x64xf32>,
    %c0_i32_14 = arith.constant 0 : i32
    %29 = arith.cmpi eq, %arg0, %c0_i32_14 : i32
    %30 = arith.extui %29 : i1 to i32
    %c0_i32_15 = arith.constant 0 : i32
    %31 = arith.cmpi ne, %30, %c0_i32_15 : i32
    scf.if %31 {
      %c0_16 = arith.constant 0 : index
      %c0_17 = arith.constant 0 : index
      %32 = vector.load %arg5[%c0_16, %c0_17] : memref<2x64xf32, #tpu.memory_space<vmem>>, vector<2x64xf32>
      %c0_18 = arith.constant 0 : index
      %c0_19 = arith.constant 0 : index
      %33 = vector.load %arg3[%c0_18, %c0_19] : memref<1x64xf32, #tpu.memory_space<vmem>>, vector<1x64xf32>
      %34 = vector.broadcast %33 : vector<1x64xf32> to vector<2x64xf32>
      %35 = arith.mulf %32, %34 : vector<2x64xf32>
      %cst_20 = arith.constant dense<0.000000e+00> : vector<2xf32>
      %36 = vector.multi_reduction <add>, %35, %cst_20 [1] : vector<2x64xf32> to vector<2xf32>
      %37 = vector.shape_cast %36 : vector<2xf32> to vector<2x1xf32>
      %cst_21 = arith.constant 2.500000e-01 : f32
      %38 = vector.broadcast %cst_21 : f32 to vector<2x1xf32>
      %39 = arith.mulf %37, %38 : vector<2x1xf32>
      %c0_22 = arith.constant 0 : index
      %c0_23 = arith.constant 0 : index
      %40 = vector.load %arg4[%c0_22, %c0_23] : memref<2x1xf32, #tpu.memory_space<vmem>>, vector<2x1xf32>
      tpu.vector_store %arg4[%c0_22, %c0_23], %39 {strides = array<i32>} : memref<2x1xf32, #tpu.memory_space<vmem>>, vector<2x1xf32>,
    } else {
    }
    return
  }
  func.func @transform_0(%arg0: i32) -> (i32, i32, i32) {
    %c0_i32 = arith.constant 0 : i32
    %c0_i32_0 = arith.constant 0 : i32
    %c0_i32_1 = arith.constant 0 : i32
    return %c0_i32, %arg0, %c0_i32_0 : i32, i32, i32
  }
  func.func @transform_1(%arg0: i32) -> (i32, i32, i32) {
    %c1_i32 = arith.constant 1 : i32
    %c0_i32 = arith.constant 0 : i32
    %c0_i32_0 = arith.constant 0 : i32
    return %c1_i32, %arg0, %c0_i32 : i32, i32, i32
  }
  func.func @transform_2(%arg0: i32) -> (i32, i32) {
    %c0_i32 = arith.constant 0 : i32
    %c0_i32_0 = arith.constant 0 : i32
    %c0_i32_1 = arith.constant 0 : i32
    return %c0_i32, %c0_i32_0 : i32, i32
  }
  func.func @transform_3(%arg0: i32) -> (i32, i32) {
    %c0_i32 = arith.constant 0 : i32
    %c0_i32_0 = arith.constant 0 : i32
    %c0_i32_1 = arith.constant 0 : i32
    return %c0_i32, %c0_i32_0 : i32, i32
  }
}

</mosaic_0001>

<bundles_post_ra>
// kernel: lpips_forward.6
= control target key start
LH: loop header
LB: loop body
LE: loop exit
PB: predicated region body
PF: predicated region fallthrough
CT: control target
= control target key end

     0   :  { %s1781_s12 = smov 0   ;;  %s1930_s0 = inlined_call_operand.vmem [shape: bf16[4,432,16], index: 0, kind: input, shape index: {}]   ;;  %s1931_s1 = inlined_call_operand.vmem [shape: bf16[9,16,16], index: 1, kind: input, shape index: {}]   ;;  %s1932_s2 = inlined_call_operand.vmem [shape: f32[1,16], index: 2, kind: input, shape index: {}]   ;;  %s1933_s3 = inlined_call_operand.vmem [shape: bf16[4,64,16], index: 3, kind: output, shape index: {}]  }
   0x1 LB: > { %s1373_s13 = sadd.s32 4294967295, %s1759_s12   ;;  %p1377_p0 = scmp.ge.s32.totalorder %s1759_s12, 1  ;;  %s1759_s12 = sphi %s1781_s12, %s13_s12  }
   0x2   : > { %p137_p1 = scmp.lt.s32.totalorder %s1759_s12, 5 }
   0x4   : > { %p138_p2 = pnand %p1377_p0, %p137_p1 }
   0x5   : > { %v1708_v0 = vld [vmem:[%s1931_s1 + $0x8] sm:$0xff] (!%p138_p2)   ;;  %p161_p3 = scmp.lt.s32.totalorder (!%p138_p2), %s1373_s13, 3  ;;  %v1795_v1 = vld [vmem:[%s1931_s1 + $0x20] sm:$0xff] (!%p138_p2)   ;;  %vm219_vm0 = vcmask (!%p138_p2), 130048   ;;  %v1719_v6 = vld [vmem:[%s1931_s1 + $0x30] sm:$0xff] (!%p138_p2)   ;;  %vm1309_vm1 = vcmask (!%p138_p2), 125952  }
   0x6   : > { %141 = sbr.rel (%p138_p2) target bundleno = 311 (0x137), region = 32  ;;  %1543 = vmatprep.subr.bf16.mxu1 (!%p138_p2), %v1708_v0  ;;  %v1711_v2 = vld [vmem:[%s1931_s1] sm:$0xff] (!%p138_p2)   ;;  %1583 = vmatprep.subr.bf16.mxu0 (!%p138_p2), %v1795_v1  ;;  %v1713_v3 = vld [vmem:[%s1931_s1 + $0x28] sm:$0xff] (!%p138_p2)   ;;  %v1722_v7 = vld [vmem:[%s1931_s1 + $0x10] sm:$0xff] (!%p138_p2)  }
   0x7   : > { %1544 = vmatpush3.bf16.msra.mxu1 (!%p138_p2), %v1708_v0  ;;  %1584 = vmatpush3.bf16.msra.mxu0 (!%p138_p2), %v1795_v1  ;;  %v1729_v16 = vld [vmem:[%s1931_s1 + $0x38] sm:$0xff] (!%p138_p2)   ;;  %v1739_v26 = vld [vmem:[%s1931_s1 + $0x40] sm:$0xff] (!%p138_p2)  }
   0x8   : > { %1553 = vmatprep.subr.bf16.mxu1 (!%p138_p2), %v1711_v2  ;;  %1593 = vmatprep.subr.bf16.mxu0 (!%p138_p2), %v1713_v3  ;;  %v1732_v19 = vld [vmem:[%s1931_s1 + $0x18] sm:$0xff] (!%p138_p2)   ;;  %v1478_v50 = vld [vmem:[%s1932_s2] ss:$0 sm:$0xff] (!%p138_p2) }
   0xd   : > { %s1935_s13 = smov (!%p161_p3, %s1373_s13), 3 }
   0xe   : > { %s1699_s22 = smul.u32 216, %s1935_s13  ;;  %s1489_s11 = sshll.u32 %s1935_s13, 5 }
   0xf   : > { %s1909_s16 = scalar_lea.vmem %s1933_s3, %s1489_s11 }
  0x10   : > { %s1811_s25 = scalar_lea.vmem %s1930_s0, %s1699_s22 }
  0x11   : > { %v1710_v4 = vld [vmem:[%s1811_s25 + $0x24] sm:$0xff]   ;;  %v1712_v5 = vld [vmem:[%s1811_s25 + $0x90] sm:$0xff]   ;;  %v1715_v9 = vld [vmem:[%s1811_s25 + $0x98] sm:$0xff]  }
  0x12   : > { %1545 = vmatprep.mubr.msk.bf16.mxu1 %vm219_vm0, %v1710_v4  ;;  %v1714_v8 = vld [vmem:[%s1811_s25 + $0x2c] sm:$0xff]   ;;  %1585 = vmatprep.mubr.msk.bf16.mxu0 %vm219_vm0, %v1712_v5  ;;  %v1716_v10 = vld [vmem:[%s1811_s25 + $0x34] sm:$0xff]   ;;  %v1717_v12 = vld [vmem:[%s1811_s25 + $0x3c] sm:$0xff]  }
  0x13   : > { %1546 = vmatmul.mubr.msk.bf16.vlgmr.msra.gmra.mrb[0].mxu1 %vm219_vm0, %v1714_v8  ;;  %1586 = vmatmul.mubr.msk.bf16.vlgmr.msra.gmra.mrb[0].mxu0 %vm219_vm0, %v1715_v9  ;;  %v1718_v11 = vld [vmem:[%s1811_s25 + $0xb4] sm:$0xff]   ;;  %v1721_v13 = vld [vmem:[%s1811_s25] sm:$0xff]   ;;  %v1723_v17 = vld [vmem:[%s1811_s25 + $0x8] sm:$0xff]  }
  0x14   : > { %1554 = vmatpush3.bf16.msra.mxu1 %v1711_v2  ;;  %1594 = vmatpush3.bf16.msra.mxu0 %v1713_v3  ;;  %v1720_v14 = vld [vmem:[%s1811_s25 + $0xbc] sm:$0xff]   ;;  %v1724_v15 = vld [vmem:[%s1811_s25 + $0xc4] sm:$0xff]   ;;  %v1726_v18 = vld [vmem:[%s1811_s25 + $0x10] sm:$0xff]  }
  0x15   : > { %1549 = vmatprep.mubr.msk.bf16.mxu1 %vm219_vm0, %v1716_v10  ;;  %1603 = vmatprep.subr.bf16.mxu0 %v1719_v6  ;;  %v1725_v20 = vld [vmem:[%s1811_s25 + $0xcc] sm:$0xff]   ;;  %v1728_v21 = vld [vmem:[%s1811_s25 + $0x4] sm:$0xff]   ;;  %v1727_v22 = vld [vmem:[%s1811_s25 + $0x18] sm:$0xff]  }
  0x16   : > { %1563 = vmatprep.subr.bf16.mxu1 %v1722_v7  ;;  %1595 = vmatprep.mubr.msk.bf16.mxu0 %vm219_vm0, %v1718_v11  ;;  %v1731_v23 = vld [vmem:[%s1811_s25 + $0x48] sm:$0xff]   ;;  %v1734_v25 = vld [vmem:[%s1811_s25 + $0x14] sm:$0xff]   ;;  %v1735_v29 = vld [vmem:[%s1811_s25 + $0x1c] sm:$0xff]  }
  0x17   : > { %v1730_v24 = vld [vmem:[%s1811_s25 + $0xc] sm:$0xff]   ;;  %v1736_v28 = vld [vmem:[%s1811_s25 + $0x58] sm:$0xff]   ;;  %v1737_v31 = vld [vmem:[%s1811_s25 + $0x60] sm:$0xff]  }
  0x18   : > { %v1733_v27 = vld [vmem:[%s1811_s25 + $0x50] sm:$0xff]   ;;  %v1738_v30 = vld [vmem:[%s1811_s25 + $0x28] sm:$0xff]   ;;  %v1743_v34 = vld [vmem:[%s1811_s25 + $0x38] sm:$0xff]  }
  0x19   : > { %v1741_v32 = vld [vmem:[%s1811_s25 + $0x6c] sm:$0xff]   ;;  %v1742_v35 = vld [vmem:[%s1811_s25 + $0x74] sm:$0xff]   ;;  %v1745_v36 = vld [vmem:[%s1811_s25 + $0x7c] sm:$0xff]  }
  0x1a   : > { %v1740_v33 = vld [vmem:[%s1811_s25 + $0x30] sm:$0xff]   ;;  %v1744_v37 = vld [vmem:[%s1811_s25 + $0x40] sm:$0xff]   ;;  %v1751_v43 = vld [vmem:[%s1811_s25 + $0xa8] sm:$0xff]  }
  0x1b   : > { %1550 = vmatmul.mubr.msk.bf16.gmra.mrb[4].mxu1 %vm219_vm0, %v1717_v12  ;;  %v1747_v38 = vld [vmem:[%s1811_s25 + $0x4c] sm:$0xff]   ;;  %v1746_v39 = vld [vmem:[%s1811_s25 + $0x84] sm:$0xff]   ;;  %v1748_v41 = vld [vmem:[%s1811_s25 + $0x54] sm:$0xff]  }
  0x1c   : > { %1555 = vmatprep.mubr.msk.bf16.mxu1 %vm219_vm0, %v1721_v13  ;;  %v1749_v40 = vld [vmem:[%s1811_s25 + $0xa0] sm:$0xff]  }
  0x1d   : > { %v1750_v42 = vld [vmem:[%s1811_s25 + $0x5c] sm:$0xff]   ;;  %v1752_v44 = vld [vmem:[%s1811_s25 + $0x64] sm:$0xff]  }
  0x1f   : > { %1596 = vmatmul.mubr.msk.bf16.vlgmr.msra.gmra.mrb[0].mxu0 %vm219_vm0, %v1720_v14 }
  0x20   : > { %1604 = vmatpush3.bf16.msra.mxu0 %v1719_v6  ;;  %1599 = vmatprep.mubr.msk.bf16.mxu0 %vm219_vm0, %v1724_v15 }
  0x21   : > { %1613 = vmatprep.subr.bf16.mxu0 %v1729_v16 }
  0x23   : > { %1556 = vmatmul.mubr.msk.bf16.vlgmr.msra.gmra.mrb[0].mxu1 %vm219_vm0, %v1723_v17 }
  0x24   : > { %1564 = vmatpush3.bf16.msra.mxu1 %v1722_v7  ;;  %1559 = vmatprep.mubr.msk.bf16.mxu1 %vm219_vm0, %v1726_v18 }
  0x25   : > { %1573 = vmatprep.subr.bf16.mxu1 %v1732_v19 }
  0x27   : > { %1600 = vmatmul.mubr.msk.bf16.gmra.mrb[4].mxu0 %vm219_vm0, %v1725_v20 }
  0x28   : > { %1605 = vmatprep.mubr.msk.bf16.mxu0 %vm219_vm0, %v1728_v21 }
  0x2b   : > { %1560 = vmatmul.mubr.msk.bf16.gmra.mrb[4].mxu1 %vm219_vm0, %v1727_v22 }
  0x2c   : > { %1565 = vmatprep.mubr.msk.bf16.mxu1 %vm219_vm0, %v1731_v23 }
  0x2f   : > { %1606 = vmatmul.mubr.msk.bf16.vlgmr.msra.gmra.mrb[0].mxu0 %vm219_vm0, %v1730_v24 }
  0x30   : > { %1614 = vmatpush3.bf16.msra.mxu0 %v1729_v16  ;;  %1609 = vmatprep.mubr.msk.bf16.mxu0 %vm219_vm0, %v1734_v25 }
  0x31   : > { %1623 = vmatprep.subr.bf16.mxu0 %v1739_v26 }
  0x33   : > { %1566 = vmatmul.mubr.msk.bf16.vlgmr.msra.gmra.mrb[0].mxu1 %vm219_vm0, %v1733_v27 }
  0x34   : > { %1574 = vmatpush3.bf16.msra.mxu1 %v1732_v19  ;;  %1569 = vmatprep.mubr.msk.bf16.mxu1 %vm219_vm0, %v1736_v28 }
  0x35   : > { %1633 = vmatprep.subr.bf16.mxu1 %v1795_v1 }
  0x37   : > { %1610 = vmatmul.mubr.msk.bf16.gmra.mrb[4].mxu0 %vm219_vm0, %v1735_v29 }
  0x38   : > { %1615 = vmatprep.mubr.msk.bf16.mxu0 %vm219_vm0, %v1738_v30 }
  0x3b   : > { %1570 = vmatmul.mubr.msk.bf16.gmra.mrb[4].mxu1 %vm219_vm0, %v1737_v31 }
  0x3c   : > { %1575 = vmatprep.mubr.msk.bf16.mxu1 %vm219_vm0, %v1741_v32 }
  0x3f   : > { %1616 = vmatmul.mubr.msk.bf16.vlgmr.msra.gmra.mrb[0].mxu0 %vm219_vm0, %v1740_v33 }
  0x40   : > { %1624 = vmatpush3.bf16.msra.mxu0 %v1739_v26  ;;  %1619 = vmatprep.mubr.msk.bf16.mxu0 %vm219_vm0, %v1743_v34 }
  0x43   : > { %1576 = vmatmul.mubr.msk.bf16.vlgmr.msra.gmra.mrb[0].mxu1 %vm219_vm0, %v1742_v35 }
  0x44   : > { %1634 = vmatpush3.bf16.msra.mxu1 %v1795_v1  ;;  %1579 = vmatprep.mubr.msk.bf16.mxu1 %vm219_vm0, %v1745_v36 }
  0x47   : > { %1620 = vmatmul.mubr.msk.bf16.gmra.mrb[4].mxu0 %vm219_vm0, %v1744_v37 }
  0x48   : > { %1625 = vmatprep.mubr.msk.bf16.mxu0 %vm219_vm0, %v1747_v38 }
  0x4b   : > { %1580 = vmatmul.mubr.msk.bf16.gmra.mrb[4].mxu1 %vm219_vm0, %v1746_v39 }
  0x4c   : > { %1589 = vmatprep.mubr.msk.bf16.mxu1 %vm219_vm0, %v1749_v40 }
  0x4f   : > { %1626 = vmatmul.mubr.msk.bf16.vlgmr.msra.gmra.mrb[0].mxu0 %vm219_vm0, %v1748_v41 }
  0x50   : > { %1629 = vmatprep.mubr.msk.bf16.mxu0 %vm219_vm0, %v1750_v42 }
  0x57   : > { %1590 = vmatmul.mubr.msk.bf16.vlgmr.msra.gmra.mrb[4].mxu1 %vm219_vm0, %v1751_v43  ;;  %1630 = vmatmul.mubr.msk.bf16.gmra.mrb[4].mxu0 %vm219_vm0, %v1752_v44 }
 0x116   : > { %v1577_v45 = vpop.f32.mrb[0].mxu1 }
 0x117   : > { %v605_v46 = vpop.f32.mrb[1].mxu1 }
 0x118   : > { %v1578_v47 = vpop.f32.mrb[2].mxu1 }
 0x119   : > { %v608_v48 = vpop.f32.mrb[3].mxu1 }
 0x122   : > { %v1627_v49 = vpop.f32.mrb[0].mxu0 }
 0x123   : > { %v1635_v51 = vadd.f32 %v1627_v49, %v1577_v45  ;;  %v1215_v52 = vpop.f32.mrb[1].mxu0 }
 0x124   : > { %v1636_v53 = vadd.f32 %v1215_v52, %v605_v46  ;;  %v1628_v54 = vpop.f32.mrb[2].mxu0 }
 0x125   : > { %v1263_v55 = vadd.f32 %v1635_v51, %v1478_v50  ;;  %v1637_v56 = vadd.f32 %v1628_v54, %v1578_v47  ;;  %v1218_v57 = vpop.f32.mrb[3].mxu0 }
 0x126   : > { %v1261_v58 = vadd.f32 %v1636_v53, %v1478_v50  ;;  %v1638_v59 = vadd.f32 %v1218_v57, %v608_v48 }
 0x127   : > { %v1271_v60 = vmax.f32 %v1263_v55, 0.0  ;;  %v1264_v61 = vadd.f32 %v1637_v56, %v1478_v50 }
 0x128   : > { %v1269_v62 = vmax.f32 %v1261_v58, 0.0  ;;  %v1262_v63 = vadd.f32 %v1638_v59, %v1478_v50 }
 0x129   : > { %v1492_v0 = vpack.c.bf16 %v1271_v60, %v1271_v60  ;;  %v1272_v1 = vmax.f32 %v1264_v61, 0.0 }
 0x12a   : > { %v1591_v2 = vpop.f32.mrb[4].mxu1  ;;  %v1490_v3 = vpack.c.bf16 %v1269_v62, %v1269_v62  ;;  %v1270_v4 = vmax.f32 %v1262_v63, 0.0  ;;  %v1631_v5 = vpop.f32.mrb[4].mxu0 }
 0x12b   : > { %v743_v6 = vpop.f32.mrb[5].mxu1  ;;  %1312 = vst.msk [vmem:[%s1909_s16 + $0x8] sm:$0xf] %vm1309_vm1, %v1492_v0  ;;  %v1493_v7 = vpack.c.bf16 %v1272_v1, %v1272_v1  ;;  %v1639_v8 = vadd.f32 %v1631_v5, %v1591_v2  ;;  %v1231_v9 = vpop.f32.mrb[5].mxu0 }
 0x12c   : > { %v1592_v10 = vpop.f32.mrb[6].mxu1  ;;  %1310 = vst.msk [vmem:[%s1909_s16] sm:$0xf] %vm1309_vm1, %v1490_v3  ;;  %v1491_v11 = vpack.c.bf16 %v1270_v4, %v1270_v4  ;;  %v1640_v12 = vadd.f32 %v1231_v9, %v743_v6  ;;  %v1632_v13 = vpop.f32.mrb[6].mxu0 }
 0x12d   : > { %v746_v14 = vpop.f32.mrb[7].mxu1  ;;  %1313 = vst.msk [vmem:[%s1909_s16 + $0xc] sm:$0xf] %vm1309_vm1, %v1493_v7  ;;  %v1267_v15 = vadd.f32 %v1639_v8, %v1478_v50  ;;  %v1641_v16 = vadd.f32 %v1632_v13, %v1592_v10  ;;  %v1234_v17 = vpop.f32.mrb[7].mxu0 }
 0x12e   : > { %1311 = vst.msk [vmem:[%s1909_s16 + $0x4] sm:$0xf] %vm1309_vm1, %v1491_v11  ;;  %v1265_v18 = vadd.f32 %v1640_v12, %v1478_v50  ;;  %v1642_v19 = vadd.f32 %v1234_v17, %v746_v14 }
 0x12f   : > { %v1275_v20 = vmax.f32 %v1267_v15, 0.0  ;;  %v1268_v21 = vadd.f32 %v1641_v16, %v1478_v50 }
 0x130   : > { %v1273_v22 = vmax.f32 %v1265_v18, 0.0  ;;  %v1266_v23 = vadd.f32 %v1642_v19, %v1478_v50 }
 0x131   : > { %v1496_v24 = vpack.c.bf16 %v1275_v20, %v1275_v20  ;;  %v1276_v25 = vmax.f32 %v1268_v21, 0.0 }
 0x132   : > { %v1494_v26 = vpack.c.bf16 %v1273_v22, %v1273_v22  ;;  %v1274_v27 = vmax.f32 %v1266_v23, 0.0 }
 0x133   : > { %1316 = vst.msk [vmem:[%s1909_s16 + $0x18] sm:$0xf] %vm1309_vm1, %v1496_v24  ;;  %v1497_v28 = vpack.c.bf16 %v1276_v25, %v1276_v25 }
 0x134   : > { %1314 = vst.msk [vmem:[%s1909_s16 + $0x10] sm:$0xf] %vm1309_vm1, %v1494_v26  ;;  %v1495_v29 = vpack.c.bf16 %v1274_v27, %v1274_v27 }
 0x135   : > { %1317 = vst.msk [vmem:[%s1909_s16 + $0x1c] sm:$0xf] %vm1309_vm1, %v1497_v28 }
 0x136   : > { %1315 = vst.msk [vmem:[%s1909_s16 + $0x14] sm:$0xf] %vm1309_vm1, %v1495_v29 }
 0x137 PF: > { %s13_s12 = sadd.s32 1, %s1759_s12  }
 0x138   : > { %p10_p4 = scmp.ge.s32.totalorder %s13_s12, 6  }
 0x13a   :  { %12 = sbr.rel (!%p10_p4) target bundleno = 1 (0x1), region = 70 }

// kernel: lpips_forward.7
= control target key start
LH: loop header
LB: loop body
LE: loop exit
PB: predicated region body
PF: predicated region fallthrough
CT: control target
= control target key end

     0   :  { %s1036_s12 = smov 0   ;;  %s1145_s0 = inlined_call_operand.vmem [shape: bf16[4,120,16], index: 0, kind: input, shape index: {}]   ;;  %s1146_s1 = inlined_call_operand.vmem [shape: bf16[9,16,32], index: 1, kind: input, shape index: {}]   ;;  %s1147_s2 = inlined_call_operand.vmem [shape: f32[1,32], index: 2, kind: input, shape index: {}]   ;;  %s1148_s3 = inlined_call_operand.vmem [shape: bf16[4,16,32], index: 3, kind: output, shape index: {}]  }
   0x1 LB: > { %s836_s13 = sadd.s32 4294967295, %s1012_s12   ;;  %p840_p0 = scmp.ge.s32.totalorder %s1012_s12, 1  ;;  %s1012_s12 = sphi %s1036_s12, %s13_s12  }
   0x2   : > { %p137_p1 = scmp.lt.s32.totalorder %s1012_s12, 5 }
   0x4   : > { %p138_p2 = pnand %p840_p0, %p137_p1 }
   0x5   : > { %v983_v0 = vld [vmem:[%s1146_s1 + $0x8] sm:$0xff] (!%p138_p2)   ;;  %v1014_v1 = vmov (!%p138_p2), 0.0   ;;  %v984_v2 = vld [vmem:[%s1146_s1] sm:$0xff] (!%p138_p2)   ;;  %vm1015_vm0 = vmmov (!%p138_p2), 0   ;;  %p161_p3 = scmp.lt.s32.totalorder (!%p138_p2), %s836_s13, 3  ;;  %vm200_vm1 = vcmask (!%p138_p2), 130048  }
   0x6   : > { %141 = sbr.rel (%p138_p2) target bundleno = 278 (0x116), region = 32  ;;  %918 = vmatprep.subr.bf16.mxu0 (!%p138_p2), %v1014_v1  ;;  %924 = vmatprep.subr.bf16.mxu1 (!%p138_p2), %v1014_v1  ;;  %v990_v3 = vld [vmem:[%s1146_s1 + $0x18] sm:$0xff] (!%p138_p2)   ;;  %vm190_vm2 = vcmask (!%p138_p2), 1045504   ;;  %v989_v11 = vld [vmem:[%s1146_s1 + $0x10] sm:$0xff] (!%p138_p2)   ;;  %v995_v17 = vld [vmem:[%s1146_s1 + $0x28] sm:$0xff] (!%p138_p2)   ;;  %vm778_vm3 = vcmask (!%p138_p2), 257024  }
   0x7   : > { %919 = vmatpush3.bf16.msra.mxu0 (!%p138_p2), %v983_v0  ;;  %920 = vmatprep.mubr.msk.bf16.mxu0 (!%p138_p2), %vm1015_vm0, %v1014_v1  ;;  %v992_v22 = vld [vmem:[%s1146_s1 + $0x20] sm:$0xff] (!%p138_p2)   ;;  %v1000_v26 = vld [vmem:[%s1146_s1 + $0x38] sm:$0xff] (!%p138_p2)   ;;  %v997_v28 = vld [vmem:[%s1146_s1 + $0x30] sm:$0xff] (!%p138_p2)  }
   0x8   : > { %925 = vmatpush3.bf16.msra.mxu1 (!%p138_p2), %v984_v2  ;;  %926 = vmatprep.mubr.msk.bf16.mxu1 (!%p138_p2), %vm1015_vm0, %v1014_v1  ;;  %v1003_v36 = vld [vmem:[%s1146_s1 + $0x40] sm:$0xff] (!%p138_p2)  }
   0x9   : > { %930 = vmatprep.subr.bf16.mxu0 (!%p138_p2), %v1014_v1  ;;  %936 = vmatprep.subr.bf16.mxu1 (!%p138_p2), %v1014_v1 }
   0xd   : > { %s1150_s13 = smov (!%p161_p3, %s836_s13), 3 }
   0xe   : > { %s972_s18 = smul.u32 60, %s1150_s13  ;;  %s897_s11 = sshll.u32 %s1150_s13, 3 }
   0xf   : > { %s170_s16 = scalar_lea.vmem %s1148_s3, %s897_s11 }
  0x10   : > { %s1064_s21 = scalar_lea.vmem %s1145_s0, %s972_s18 }
  0x11   : > { %v176_v4 = vld [vmem:[%s1064_s21 + $0x8] sm:$0xc]  ;;  %v177_v5 = vld [vmem:[%s1064_s21 + $0xc] sm:$0xf]  ;;  %v988_v8 = vld [vmem:[%s1064_s21] sm:$0xff]  }
  0x12   : > { %v846_v6 = vcombine.low %v176_v4, %v177_v5  ;;  %v986_v7 = vld [vmem:[%s1064_s21 + $0x10] ss:$0 sps:$4 sm:$0x33]   ;;  %927 = vmatmul.mubr.msk.bf16.vlgmr.msra.gmra.mrb[0].mxu1 %vm200_vm1, %v988_v8  ;;  %v993_v13 = vld [vmem:[%s1064_s21 + $0x1c] sm:$0xfc]   ;;  %v991_v21 = vld [vmem:[%s1064_s21 + $0x14] sm:$0xff]  }
  0x13   : > { %v192_v10 = vrot.slane %v986_v7, 2  ;;  %937 = vmatpush3.bf16.msra.mxu1 %v990_v3  ;;  %938 = vmatprep.mubr.msk.bf16.mxu1 %vm1015_vm0, %v1014_v1  ;;  %v994_v14 = vld [vmem:[%s1064_s21 + $0x24] ss:$0 sps:$4 sm:$0x33]   ;;  %v376_v15 = vrot.slane %v993_v13, 2  ;;  %v996_v27 = vld [vmem:[%s1064_s21 + $0x28] sm:$0xff]  }
  0x14   : > { %v191_v9 = vrot.slane %v846_v6, 2  ;;  %948 = vmatprep.subr.bf16.mxu1 %v1014_v1  ;;  %v377_v16 = vrot.slane %v994_v14, 2  ;;  %v998_v18 = vld [vmem:[%s1064_s21 + $0x30] sm:$0xfc]   ;;  %v1001_v29 = vld [vmem:[%s1064_s21] sm:$0xfc]  }
  0x15   : > { %v999_v19 = vld [vmem:[%s1064_s21 + $0x38] ss:$0 sps:$4 sm:$0x33]   ;;  %v507_v23 = vrot.slane %v998_v18, 2  ;;  %v631_v31 = vld [vmem:[%s1064_s21 + $0x10] sm:$0xf] }
  0x16   : > { %v193_v12 = vsel %vm190_vm2, %v191_v9, %v192_v10  ;;  %v378_v20 = vsel %vm190_vm2, %v376_v15, %v377_v16  ;;  %v508_v24 = vrot.slane %v999_v19, 2  ;;  %v1002_v30 = vld [vmem:[%s1064_s21 + $0x8] ss:$0 sps:$4 sm:$0x33]   ;;  %v883_v32 = vcombine.low %v177_v5, %v631_v31  ;;  %v1004_v37 = vld [vmem:[%s1064_s21 + $0x14] sm:$0xfc]  }
  0x17   : > { %921 = vmatmul.mubr.msk.bf16.vlgmr.msra.gmra.mrb[0].mxu0 %vm200_vm1, %v193_v12  ;;  %v576_v33 = vrot.slane %v1001_v29, 2  ;;  %v577_v34 = vrot.slane %v1002_v30, 2  ;;  %v1005_v38 = vld [vmem:[%s1064_s21 + $0x1c] ss:$0 sps:$4 sm:$0x33]   ;;  %v704_v39 = vrot.slane %v1004_v37, 2 }
  0x18   : > { %931 = vmatpush3.bf16.msra.mxu0 %v989_v11  ;;  %932 = vmatprep.mubr.msk.bf16.mxu0 %vm1015_vm0, %v1014_v1  ;;  %v509_v25 = vsel %vm190_vm2, %v507_v23, %v508_v24  ;;  %v705_v40 = vrot.slane %v1005_v38, 2 }
  0x19   : > { %942 = vmatprep.subr.bf16.mxu0 %v1014_v1  ;;  %v578_v35 = vsel %vm190_vm2, %v576_v33, %v577_v34 }
  0x1a   : > { %939 = vmatmul.mubr.msk.bf16.vlgmr.msra.gmra.mrb[4].mxu1 %vm200_vm1, %v378_v20  ;;  %v706_v41 = vsel %vm190_vm2, %v704_v39, %v705_v40 }
  0x1b   : > { %949 = vmatpush3.bf16.msra.mxu1 %v995_v17  ;;  %950 = vmatprep.mubr.msk.bf16.mxu1 %vm1015_vm0, %v1014_v1 }
  0x1c   : > { %960 = vmatprep.subr.bf16.mxu1 %v1014_v1 }
  0x1f   : > { %933 = vmatmul.mubr.msk.bf16.vlgmr.msra.gmra.mrb[4].mxu0 %vm200_vm1, %v991_v21 }
  0x20   : > { %943 = vmatpush3.bf16.msra.mxu0 %v992_v22  ;;  %944 = vmatprep.mubr.msk.bf16.mxu0 %vm1015_vm0, %v1014_v1 }
  0x21   : > { %954 = vmatprep.subr.bf16.mxu0 %v1014_v1 }
  0x22   : > { %951 = vmatmul.mubr.msk.bf16.vlgmr.msra.gmra.mrb[8].mxu1 %vm200_vm1, %v509_v25  ;;  %v892_v25 = vld [vmem:[%s1147_s2] ss:$0 sm:$0xff] }
  0x23   : > { %961 = vmatpush3.bf16.msra.mxu1 %v1000_v26  ;;  %962 = vmatprep.mubr.msk.bf16.mxu1 %vm1015_vm0, %v1014_v1 }
  0x27   : > { %945 = vmatmul.mubr.msk.bf16.vlgmr.msra.gmra.mrb[8].mxu0 %vm200_vm1, %v996_v27 }
  0x28   : > { %955 = vmatpush3.bf16.msra.mxu0 %v997_v28  ;;  %956 = vmatprep.mubr.msk.bf16.mxu0 %vm1015_vm0, %v1014_v1 }
  0x29   : > { %966 = vmatprep.subr.bf16.mxu0 %v1014_v1 }
  0x2a   : > { %963 = vmatmul.mubr.msk.bf16.vlgmr.msra.gmra.mrb[12].mxu1 %vm200_vm1, %v883_v32 }
  0x2f   : > { %957 = vmatmul.mubr.msk.bf16.vlgmr.msra.gmra.mrb[12].mxu0 %vm200_vm1, %v578_v35 }
  0x30   : > { %967 = vmatpush3.bf16.msra.mxu0 %v1003_v36  ;;  %968 = vmatprep.mubr.msk.bf16.mxu0 %vm1015_vm0, %v1014_v1 }
  0x37   : > { %969 = vmatmul.mubr.msk.bf16.vlgmr.msra.gmra.mrb[16].mxu0 %vm200_vm1, %v706_v41 }
  0xe5   : > { %v293_v42 = vpop.f32.mrb[0].mxu1 }
  0xe6   : > { %v928_v43 = vpop.f32.mrb[1].mxu1 }
  0xe7   : > { %v296_v44 = vpop.f32.mrb[2].mxu1 }
  0xe8   : > { %v929_v46 = vpop.f32.mrb[3].mxu1 }
  0xea   : > { %v238_v45 = vpop.f32.mrb[0].mxu0 }
  0xeb   : > { %v294_v47 = vadd.f32 %v293_v42, %v238_v45  ;;  %v922_v48 = vpop.f32.mrb[1].mxu0 }
  0xec   : > { %v241_v49 = vpop.f32.mrb[2].mxu0 }
  0xed   : > { %v297_v50 = vadd.f32 %v296_v44, %v241_v49  ;;  %v923_v51 = vpop.f32.mrb[3].mxu0  ;;  %v422_v52 = vpop.f32.mrb[4].mxu1 }
  0xee   : > { %v940_v53 = vpop.f32.mrb[5].mxu1 }
  0xef   : > { %v425_v54 = vpop.f32.mrb[6].mxu1 }
  0xf0   : > { %v941_v56 = vpop.f32.mrb[7].mxu1 }
  0xf2   : > { %v353_v55 = vpop.f32.mrb[4].mxu0 }
  0xf3   : > { %v360_v57 = vadd.f32 %v353_v55, %v294_v47  ;;  %v934_v58 = vpop.f32.mrb[5].mxu0 }
  0xf4   : > { %v356_v59 = vpop.f32.mrb[6].mxu0 }
  0xf5   : > { %v361_v60 = vadd.f32 %v356_v59, %v297_v50  ;;  %v429_v61 = vadd.f32 %v422_v52, %v360_v57  ;;  %v935_v62 = vpop.f32.mrb[7].mxu0  ;;  %v553_v0 = vpop.f32.mrb[8].mxu1 }
  0xf6   : > { %v952_v1 = vpop.f32.mrb[9].mxu1 }
  0xf7   : > { %v430_v63 = vadd.f32 %v425_v54, %v361_v60  ;;  %v556_v2 = vpop.f32.mrb[10].mxu1 }
  0xf8   : > { %v953_v4 = vpop.f32.mrb[11].mxu1 }
  0xfa   : > { %v484_v3 = vpop.f32.mrb[8].mxu0 }
  0xfb   : > { %v491_v5 = vadd.f32 %v484_v3, %v429_v61  ;;  %v946_v6 = vpop.f32.mrb[9].mxu0 }
  0xfc   : > { %v487_v7 = vpop.f32.mrb[10].mxu0 }
  0xfd   : > { %v492_v8 = vadd.f32 %v487_v7, %v430_v63  ;;  %v560_v9 = vadd.f32 %v553_v0, %v491_v5  ;;  %v947_v10 = vpop.f32.mrb[11].mxu0  ;;  %v681_v12 = vpop.f32.mrb[12].mxu1 }
  0xfe   : > { %v964_v13 = vpop.f32.mrb[13].mxu1 }
  0xff   : > { %v561_v11 = vadd.f32 %v556_v2, %v492_v8  ;;  %v684_v14 = vpop.f32.mrb[14].mxu1 }
 0x100   : > { %v965_v16 = vpop.f32.mrb[15].mxu1 }
 0x102   : > { %v622_v15 = vpop.f32.mrb[12].mxu0 }
 0x103   : > { %v629_v17 = vadd.f32 %v622_v15, %v560_v9  ;;  %v958_v18 = vpop.f32.mrb[13].mxu0 }
 0x104   : > { %v625_v19 = vpop.f32.mrb[14].mxu0 }
 0x105   : > { %v630_v20 = vadd.f32 %v625_v19, %v561_v11  ;;  %v688_v21 = vadd.f32 %v681_v12, %v629_v17  ;;  %v959_v22 = vpop.f32.mrb[15].mxu0 }
 0x107   : > { %v689_v23 = vadd.f32 %v684_v14, %v630_v20 }
 0x10a   : > { %v750_v24 = vpop.f32.mrb[16].mxu0 }
 0x10b   : > { %v757_v26 = vadd.f32 %v750_v24, %v688_v21  ;;  %v970_v27 = vpop.f32.mrb[17].mxu0 }
 0x10c   : > { %v753_v28 = vpop.f32.mrb[18].mxu0 }
 0x10d   : > { %v766_v29 = vadd.f32 %v892_v25, %v757_v26  ;;  %v758_v30 = vadd.f32 %v753_v28, %v689_v23  ;;  %v971_v31 = vpop.f32.mrb[19].mxu0 }
 0x10f   : > { %v768_v32 = vmax.f32 %v766_v29, 0.0  ;;  %v767_v33 = vadd.f32 %v892_v25, %v758_v30 }
 0x111   : > { %v898_v34 = vpack.c.bf16 %v768_v32, %v768_v32  ;;  %v769_v35 = vmax.f32 %v767_v33, 0.0 }
 0x113   : > { %779 = vst.msk [vmem:[%s170_s16] sm:$0xf] %vm778_vm3, %v898_v34  ;;  %v899_v36 = vpack.c.bf16 %v769_v35, %v769_v35 }
 0x115   : > { %780 = vst.msk [vmem:[%s170_s16 + $0x4] sm:$0xf] %vm778_vm3, %v899_v36 }
 0x116 PF: > { %s13_s12 = sadd.s32 1, %s1012_s12  }
 0x117   : > { %p10_p4 = scmp.ge.s32.totalorder %s13_s12, 6  }
 0x119   :  { %12 = sbr.rel (!%p10_p4) target bundleno = 1 (0x1), region = 70 }

// kernel: lpips_forward.10
= control target key start
LH: loop header
LB: loop body
LE: loop exit
PB: predicated region body
PF: predicated region fallthrough
CT: control target
= control target key end

     0   :  { %vm43_vm0 = vcmask 261120   ;;  %vm21_vm1 = vcmask 254976   ;;  %v266_v28 = vmov 0.0   ;;  %s387_s0 = inlined_call_operand.vmem [shape: bf16[4,16,32], index: 0, kind: input, shape index: {}, may-alias: {0,1}]   ;;  %s388_s1 = inlined_call_operand.vmem [shape: bf16[4,16,32], index: 1, kind: input, shape index: {}, may-alias: {0,1}]   ;;  %s389_s2 = inlined_call_operand.vmem [shape: f32[1,32], index: 2, kind: input, shape index: {}]   ;;  %s390_s3 = inlined_call_operand.vmem [shape: f32[2,1], index: 3, kind: output, shape index: {}]  }
   0x1   :  { %v230_v0 = vld [vmem:[%s387_s0 + $0x8] sm:$0xff]   ;;  %v215_v1 = vld [vmem:[%s387_s0] sm:$0xff]   ;;  %v231_v2 = vld [vmem:[%s388_s1 + $0x10] sm:$0xff]   ;;  %22 = vst.msk [vmem:[#allocation2] sm:$0x3] %vm21_vm1, %v266_v28 }
   0x2   :  { %v296_v3 = vunpack.c.l.bf16 %v230_v0  ;;  %v298_v4 = vunpack.c.l.bf16 %v215_v1  ;;  %v300_v5 = vunpack.c.h.bf16 %v230_v0  ;;  %v302_v6 = vunpack.c.h.bf16 %v215_v1  ;;  %v232_v13 = vld [vmem:[%s388_s1 + $0x18] sm:$0xff]  }
   0x3   :  { %v304_v7 = vunpack.c.h.bf16 %v231_v2  ;;  %v306_v8 = vunpack.c.l.bf16 %v231_v2  ;;  %v321_v16 = vunpack.c.h.bf16 %v232_v13  ;;  %v323_v17 = vunpack.c.l.bf16 %v232_v13 }
   0x4   :  { %v41_v9 = vmul.f32 %v296_v3, %v296_v3  ;;  %v39_v10 = vmul.f32 %v298_v4, %v298_v4  ;;  %v42_v11 = vmul.f32 %v300_v5, %v300_v5  ;;  %v40_v12 = vmul.f32 %v302_v6, %v302_v6 }
   0x5   :  { %v97_v20 = vmul.f32 %v304_v7, %v304_v7  ;;  %v96_v21 = vmul.f32 %v306_v8, %v306_v8  ;;  %v99_v24 = vmul.f32 %v321_v16, %v321_v16  ;;  %v98_v25 = vmul.f32 %v323_v17, %v323_v17 }
   0x6   :  { %v50_v14 = vsel %vm43_vm0, %v41_v9, 0.0  ;;  %v44_v15 = vsel %vm43_vm0, %v39_v10, 0.0  ;;  %v53_v18 = vsel %vm43_vm0, %v42_v11, 0.0  ;;  %v47_v19 = vsel %vm43_vm0, %v40_v12, 0.0 }
   0x7   :  { %51 = vadd.xlane.f32.xlu1 %v50_v14  ;;  %45 = vadd.xlane.f32.xlu0 %v44_v15  ;;  %v103_v22 = vsel %vm43_vm0, %v97_v20, 0.0  ;;  %v100_v23 = vsel %vm43_vm0, %v96_v21, 0.0  ;;  %v109_v26 = vsel %vm43_vm0, %v99_v24, 0.0  ;;  %v106_v27 = vsel %vm43_vm0, %v98_v25, 0.0 }
   0xb   :  { %54 = vadd.xlane.f32.xlu1 %v53_v18  ;;  %48 = vadd.xlane.f32.xlu0 %v47_v19 }
   0xf   :  { %104 = vadd.xlane.f32.xlu1 %v103_v22  ;;  %101 = vadd.xlane.f32.xlu0 %v100_v23 }
  0x13   :  { %110 = vadd.xlane.f32.xlu1 %v109_v26  ;;  %107 = vadd.xlane.f32.xlu0 %v106_v27 }
  0x94   :  { %v52_v29 = vpop.xlane.xlu1 %51  ;;  %v46_v30 = vpop.xlane.xlu0 %45 }
  0x95   :  { %234 = vrsqrt.f32 %v52_v29  ;;  %vm72_vm2 = vcmp.eq.f32.partialorder %v52_v29, inf  ;;  %vm74_vm3 = vcmp.eq.f32.partialorder %v52_v29, 0.0  ;;  %v75_v40 = vand.u32 2147483648, %v52_v29 }
  0x96   :  { %236 = vrsqrt.f32 %v46_v30  ;;  %vm58_vm4 = vcmp.eq.f32.partialorder %v46_v30, inf  ;;  %vm60_vm5 = vcmp.eq.f32.partialorder %v46_v30, 0.0  ;;  %v61_v44 = vand.u32 2147483648, %v46_v30 }
  0x98   :  { %v55_v31 = vpop.xlane.xlu1 %54  ;;  %v49_v32 = vpop.xlane.xlu0 %48 }
  0x99   :  { %238 = vrsqrt.f32 %v55_v31  ;;  %vm79_vm6 = vcmp.eq.f32.partialorder %v55_v31, inf  ;;  %vm81_vm7 = vcmp.eq.f32.partialorder %v55_v31, 0.0  ;;  %v82_v47 = vand.u32 2147483648, %v55_v31 }
  0x9a   :  { %240 = vrsqrt.f32 %v49_v32  ;;  %vm65_vm8 = vcmp.eq.f32.partialorder %v49_v32, inf  ;;  %vm67_vm9 = vcmp.eq.f32.partialorder %v49_v32, 0.0  ;;  %v68_v49 = vand.u32 2147483648, %v49_v32 }
  0x9c   :  { %v105_v33 = vpop.xlane.xlu1 %104  ;;  %v102_v34 = vpop.xlane.xlu0 %101 }
  0x9d   :  { %242 = vrsqrt.f32 %v105_v33  ;;  %vm121_vm10 = vcmp.eq.f32.partialorder %v105_v33, inf  ;;  %vm123_vm11 = vcmp.eq.f32.partialorder %v105_v33, 0.0  ;;  %v124_v55 = vand.u32 2147483648, %v105_v33 }
  0x9e   :  { %244 = vrsqrt.f32 %v102_v34  ;;  %vm114_vm12 = vcmp.eq.f32.partialorder %v102_v34, inf  ;;  %vm116_vm13 = vcmp.eq.f32.partialorder %v102_v34, 0.0  ;;  %v117_v63 = vand.u32 2147483648, %v102_v34 }
  0x9f   :  { %v235_v35 = vpop.eup %234 }
  0xa0   :  { %v237_v36 = vpop.eup %236  ;;  %v340_v37 = vpop.xlane.xlu1 %110  ;;  %v71_v42 = vmul.f32 %v235_v35, %v52_v29 }
  0xa1   :  { %v342_v38 = vpop.xlane.xlu0 %107  ;;  %v57_v39 = vmul.f32 %v237_v36, %v46_v30  ;;  %246 = vrsqrt.f32 %v340_v37  ;;  %vm135_vm14 = vcmp.eq.f32.partialorder %v340_v37, inf  ;;  %vm137_vm15 = vcmp.eq.f32.partialorder %v340_v37, 0.0 }
  0xa2   :  { %248 = vrsqrt.f32 %v342_v38  ;;  %v73_v53 = vsel %vm72_vm2, %v52_v29, %v71_v42  ;;  %v138_v12 = vand.u32 2147483648, %v340_v37  ;;  %vm128_vm2 = vcmp.eq.f32.partialorder %v342_v38, inf }
  0xa3   :  { %v239_v41 = vpop.eup %238  ;;  %v59_v43 = vsel %vm58_vm4, %v46_v30, %v57_v39  ;;  %v76_v0 = vsel %vm74_vm3, %v75_v40, %v73_v53  ;;  %v131_v23 = vand.u32 2147483648, %v342_v38  ;;  %vm130_vm3 = vcmp.eq.f32.partialorder %v342_v38, 0.0 }
  0xa4   :  { %v241_v45 = vpop.eup %240  ;;  %v78_v46 = vmul.f32 %v239_v41, %v55_v31  ;;  %v62_v50 = vsel %vm60_vm5, %v61_v44, %v59_v43  ;;  %v86_v19 = vadd.f32 1e-10, %v76_v0  ;;  %vm181_vm4 = vcmask 1041409  }
  0xa5   :  { %v64_v48 = vmul.f32 %v241_v45, %v49_v32  ;;  %v84_v60 = vadd.f32 1e-10, %v62_v50 }
  0xa6   :  { %v80_v51 = vsel %vm79_vm6, %v55_v31, %v78_v46 }
  0xa7   :  { %v243_v52 = vpop.eup %242  ;;  %v66_v54 = vsel %vm65_vm8, %v49_v32, %v64_v48  ;;  %v83_v57 = vsel %vm81_vm7, %v82_v47, %v80_v51 }
  0xa8   :  { %v245_v56 = vpop.eup %244  ;;  %v69_v58 = vsel %vm67_vm9, %v68_v49, %v66_v54  ;;  %v120_v59 = vmul.f32 %v243_v52, %v105_v33  ;;  %v87_v9 = vadd.f32 1e-10, %v83_v57 }
  0xa9   :  { %v85_v61 = vadd.f32 1e-10, %v69_v58  ;;  %v113_v62 = vmul.f32 %v245_v56, %v102_v34 }
  0xaa   :  { %v122_v1 = vsel %vm121_vm10, %v105_v33, %v120_v59 }
  0xab   :  { %v247_v2 = vpop.eup %246  ;;  %v125_v10 = vsel %vm123_vm11, %v124_v55, %v122_v1  ;;  %v115_v11 = vsel %vm114_vm12, %v102_v34, %v113_v62  ;;  %250 = vrcp.f32 %v85_v61  ;;  %v160_v61 = vld [vmem:[#allocation2] sm:$0x3] }
  0xac   :  { %v249_v13 = vpop.eup %248  ;;  %v141_v14 = vadd.f32 1e-10, %v125_v10  ;;  %v118_v15 = vsel %vm116_vm13, %v117_v63, %v115_v11  ;;  %v134_v18 = vmul.f32 %v247_v2, %v340_v37  ;;  %252 = vrcp.f32 %v84_v60  ;;  %v213_v2 = vld [vmem:[%s389_s2] ss:$0 sm:$0xff] }
  0xad   :  { %v140_v20 = vadd.f32 1e-10, %v118_v15  ;;  %v127_v21 = vmul.f32 %v249_v13, %v342_v38 }
  0xae   :  { %254 = vrcp.f32 %v141_v14  ;;  %v136_v22 = vsel %vm135_vm14, %v340_v37, %v134_v18 }
  0xaf   :  { %256 = vrcp.f32 %v140_v20  ;;  %v139_v24 = vsel %vm137_vm15, %v138_v12, %v136_v22  ;;  %v129_v25 = vsel %vm128_vm2, %v342_v38, %v127_v21 }
  0xb0   :  { %258 = vrcp.f32 %v87_v9  ;;  %v143_v26 = vadd.f32 1e-10, %v139_v24  ;;  %v132_v27 = vsel %vm130_vm3, %v131_v23, %v129_v25 }
  0xb1   :  { %260 = vrcp.f32 %v86_v19  ;;  %v142_v28 = vadd.f32 1e-10, %v132_v27 }
  0xb2   :  { %262 = vrcp.f32 %v143_v26 }
  0xb3   :  { %264 = vrcp.f32 %v142_v28 }
  0xb5   :  { %v251_v29 = vpop.eup %250 }
  0xb6   :  { %v253_v30 = vpop.eup %252  ;;  %v91_v33 = vmul.f32 %v251_v29, %v302_v6 }
  0xb7   :  { %v89_v36 = vmul.f32 %v253_v30, %v298_v4 }
  0xb8   :  { %v255_v31 = vpop.eup %254 }
  0xb9   :  { %v257_v32 = vpop.eup %256  ;;  %v147_v34 = vmul.f32 %v255_v31, %v304_v7 }
  0xba   :  { %v259_v35 = vpop.eup %258  ;;  %v145_v37 = vmul.f32 %v257_v32, %v306_v8 }
  0xbb   :  { %v261_v38 = vpop.eup %260  ;;  %v153_v39 = vsub.f32 %v91_v33, %v147_v34  ;;  %v95_v43 = vmul.f32 %v259_v35, %v300_v5 }
  0xbc   :  { %v263_v40 = vpop.eup %262  ;;  %v152_v41 = vsub.f32 %v89_v36, %v145_v37  ;;  %v93_v46 = vmul.f32 %v261_v38, %v296_v3 }
  0xbd   :  { %v265_v42 = vpop.eup %264  ;;  %v151_v44 = vmul.f32 %v263_v40, %v321_v16  ;;  %v157_v45 = vmul.f32 %v153_v39, %v153_v39 }
  0xbe   :  { %v149_v6 = vmul.f32 %v265_v42, %v323_v17  ;;  %v156_v7 = vmul.f32 %v152_v41, %v152_v41 }
  0xbf   :  { %v155_v47 = vsub.f32 %v95_v43, %v151_v44  ;;  %v162_v4 = vsel %vm43_vm0, %v157_v45, 0.0 }
  0xc0   :  { %v154_v48 = vsub.f32 %v93_v46, %v149_v6  ;;  %v161_v8 = vsel %vm43_vm0, %v156_v7, 0.0 }
  0xc1   :  { %v159_v49 = vmul.f32 %v155_v47, %v155_v47  ;;  %v163_v50 = vadd.f32 %v162_v4, %v161_v8 }
  0xc2   :  { %v158_v51 = vmul.f32 %v154_v48, %v154_v48 }
  0xc3   :  { %v164_v52 = vrot.slane %v163_v50, 4  ;;  %v171_v5 = vsel %vm43_vm0, %v159_v49, 0.0 }
  0xc4   :  { %v170_v16 = vsel %vm43_vm0, %v158_v51, 0.0  ;;  %vm203_vm0 = vcmask 1024  }
  0xc5   :  { %v165_v53 = vadd.f32 %v164_v52, %v163_v50  ;;  %v172_v54 = vadd.f32 %v171_v5, %v170_v16 }
  0xc7   :  { %v166_v3 = vrot.slane %v165_v53, 2  ;;  %v173_v55 = vrot.slane %v172_v54, 4 }
  0xc9   :  { %v167_v17 = vadd.f32 %v166_v3, %v165_v53  ;;  %v174_v56 = vadd.f32 %v173_v55, %v172_v54 }
  0xcb   :  { %v175_v57 = vrot.slane %v174_v56, 2  ;;  %v168_v58 = vrot.slane %v167_v17, 1 }
  0xcd   :  { %v176_v59 = vadd.f32 %v175_v57, %v174_v56  ;;  %v169_v62 = vadd.f32 %v168_v58, %v167_v17 }
  0xcf   :  { %v177_v60 = vrot.slane %v176_v59, 1 }
  0xd1   :  { %v178_v63 = vadd.f32 %v177_v60, %v176_v59 }
  0xd3   :  { %v182_v0 = vsel %vm181_vm4, %v178_v63, %v169_v62 }
  0xd4   :  { %v184_v1 = vadd.f32 %v182_v0, %v160_v61 }
  0xd6   :  { %186 = vst.msk [vmem:[#allocation2] sm:$0x3] %vm21_vm1, %v184_v1 }
  0xdd   :  { %v190_v9 = vld [vmem:[#allocation2] sm:$0x3] }
  0xde   :  { %v198_v10 = vmul.f32 %v213_v2, %v190_v9 }
  0xe0   :  { %v199_v11 = vsel %vm21_vm1, %v198_v10, 0.0 }
  0xe1   :  { %200 = vadd.xlane.f32.xlu0 %v199_v11 }
 0x16e   :  { %v201_v12 = vpop.xlane.xlu0 %200 }
 0x16f   :  { %v202_v13 = vmul.f32 0.0625, %v201_v12 }
 0x171   :  { %204 = vst.msk [vmem:[%s390_s3] sm:$0x3] %vm203_vm0, %v202_v13 }

// kernel: lpips_forward.11
= control target key start
LH: loop header
LB: loop body
LE: loop exit
PB: predicated region body
PF: predicated region fallthrough
CT: control target
= control target key end

     0   :  { %vm33_vm0 = vcmask 523264   ;;  %vm21_vm1 = vcmask 517120   ;;  %v166_v14 = vmov 0.0   ;;  %vm109_vm10 = vcmask 1041409   ;;  %s228_s1 = inlined_call_operand.vmem [shape: bf16[4,8,64], index: 1, kind: input, shape index: {}, may-alias: {0,1}]   ;;  %s229_s0 = inlined_call_operand.vmem [shape: bf16[4,8,64], index: 0, kind: input, shape index: {}, may-alias: {0,1}]   ;;  %s230_s2 = inlined_call_operand.vmem [shape: f32[1,64], index: 2, kind: input, shape index: {}]   ;;  %s231_s3 = inlined_call_operand.vmem [shape: f32[2,1], index: 3, kind: output, shape index: {}]  }
   0x1   :  { %v148_v0 = vld [vmem:[%s228_s1 + $0x8] sm:$0xff]   ;;  %v141_v1 = vld [vmem:[%s229_s0] sm:$0xff]   ;;  %22 = vst.msk [vmem:[#allocation2] sm:$0x3] %vm21_vm1, %v166_v14  ;;  %vm131_vm11 = vcmask 1024  }
   0x2   :  { %v193_v2 = vunpack.c.l.bf16 %v148_v0  ;;  %v195_v3 = vunpack.c.l.bf16 %v141_v1  ;;  %v197_v4 = vunpack.c.h.bf16 %v148_v0  ;;  %v199_v5 = vunpack.c.h.bf16 %v141_v1 }
   0x4   :  { %v60_v6 = vmul.f32 %v193_v2, %v193_v2  ;;  %v31_v7 = vmul.f32 %v195_v3, %v195_v3  ;;  %v61_v8 = vmul.f32 %v197_v4, %v197_v4  ;;  %v32_v9 = vmul.f32 %v199_v5, %v199_v5 }
   0x6   :  { %v62_v10 = vsel %vm33_vm0, %v60_v6, 0.0  ;;  %v34_v11 = vsel %vm33_vm0, %v31_v7, 0.0  ;;  %v65_v12 = vsel %vm33_vm0, %v61_v8, 0.0  ;;  %v37_v13 = vsel %vm33_vm0, %v32_v9, 0.0  ;;  %v139_v8 = vld [vmem:[%s230_s2] ss:$0 sm:$0xff] }
   0x7   :  { %63 = vadd.xlane.f32.xlu1 %v62_v10  ;;  %35 = vadd.xlane.f32.xlu0 %v34_v11 }
   0xb   :  { %66 = vadd.xlane.f32.xlu1 %v65_v12  ;;  %38 = vadd.xlane.f32.xlu0 %v37_v13 }
  0x94   :  { %v64_v15 = vpop.xlane.xlu1 %63  ;;  %v36_v16 = vpop.xlane.xlu0 %35 }
  0x95   :  { %150 = vrsqrt.f32 %v64_v15  ;;  %vm70_vm2 = vcmp.eq.f32.partialorder %v64_v15, inf  ;;  %v73_v22 = vand.u32 2147483648, %v64_v15  ;;  %vm72_vm3 = vcmp.eq.f32.partialorder %v64_v15, 0.0 }
  0x96   :  { %152 = vrsqrt.f32 %v36_v16  ;;  %vm42_vm4 = vcmp.eq.f32.partialorder %v36_v16, inf  ;;  %v45_v25 = vand.u32 2147483648, %v36_v16  ;;  %vm44_vm5 = vcmp.eq.f32.partialorder %v36_v16, 0.0 }
  0x98   :  { %v67_v17 = vpop.xlane.xlu1 %66  ;;  %v39_v18 = vpop.xlane.xlu0 %38 }
  0x99   :  { %154 = vrsqrt.f32 %v67_v17  ;;  %vm77_vm6 = vcmp.eq.f32.partialorder %v67_v17, inf  ;;  %vm79_vm7 = vcmp.eq.f32.partialorder %v67_v17, 0.0  ;;  %v80_v34 = vand.u32 2147483648, %v67_v17 }
  0x9a   :  { %156 = vrsqrt.f32 %v39_v18  ;;  %vm49_vm8 = vcmp.eq.f32.partialorder %v39_v18, inf  ;;  %v52_v37 = vand.u32 2147483648, %v39_v18  ;;  %vm51_vm9 = vcmp.eq.f32.partialorder %v39_v18, 0.0 }
  0x9f   :  { %v151_v19 = vpop.eup %150 }
  0xa0   :  { %v153_v20 = vpop.eup %152  ;;  %v69_v21 = vmul.f32 %v151_v19, %v64_v15 }
  0xa1   :  { %v41_v23 = vmul.f32 %v153_v20, %v36_v16 }
  0xa2   :  { %v71_v24 = vsel %vm70_vm2, %v64_v15, %v69_v21 }
  0xa3   :  { %v155_v26 = vpop.eup %154  ;;  %v74_v27 = vsel %vm72_vm3, %v73_v22, %v71_v24  ;;  %v43_v28 = vsel %vm42_vm4, %v36_v16, %v41_v23 }
  0xa4   :  { %v157_v29 = vpop.eup %156  ;;  %v82_v30 = vadd.f32 1e-10, %v74_v27  ;;  %v46_v31 = vsel %vm44_vm5, %v45_v25, %v43_v28  ;;  %v76_v32 = vmul.f32 %v155_v26, %v67_v17 }
  0xa5   :  { %v54_v33 = vadd.f32 1e-10, %v46_v31  ;;  %v48_v35 = vmul.f32 %v157_v29, %v39_v18 }
  0xa6   :  { %158 = vrcp.f32 %v82_v30  ;;  %v78_v36 = vsel %vm77_vm6, %v67_v17, %v76_v32 }
  0xa7   :  { %160 = vrcp.f32 %v54_v33  ;;  %v81_v38 = vsel %vm79_vm7, %v80_v34, %v78_v36  ;;  %v50_v39 = vsel %vm49_vm8, %v39_v18, %v48_v35 }
  0xa8   :  { %v83_v40 = vadd.f32 1e-10, %v81_v38  ;;  %v53_v41 = vsel %vm51_vm9, %v52_v37, %v50_v39 }
  0xa9   :  { %v55_v42 = vadd.f32 1e-10, %v53_v41 }
  0xaa   :  { %162 = vrcp.f32 %v83_v40 }
  0xab   :  { %164 = vrcp.f32 %v55_v42 }
  0xb0   :  { %v159_v43 = vpop.eup %158 }
  0xb1   :  { %v161_v44 = vpop.eup %160  ;;  %v85_v45 = vmul.f32 %v159_v43, %v193_v2 }
  0xb2   :  { %v57_v46 = vmul.f32 %v161_v44, %v195_v3  ;;  %v92_v3 = vld [vmem:[#allocation2] sm:$0x3] }
  0xb4   :  { %v163_v47 = vpop.eup %162  ;;  %v88_v48 = vsub.f32 %v57_v46, %v85_v45 }
  0xb5   :  { %v165_v49 = vpop.eup %164  ;;  %v87_v50 = vmul.f32 %v163_v47, %v197_v4 }
  0xb6   :  { %v59_v51 = vmul.f32 %v165_v49, %v199_v5  ;;  %v90_v52 = vmul.f32 %v88_v48, %v88_v48 }
  0xb8   :  { %v89_v53 = vsub.f32 %v59_v51, %v87_v50  ;;  %v93_v54 = vsel %vm33_vm0, %v90_v52, 0.0 }
  0xb9   :  { %v94_v55 = vrot.slane %v93_v54, 4 }
  0xba   :  { %v91_v56 = vmul.f32 %v89_v53, %v89_v53 }
  0xbb   :  { %v95_v57 = vadd.f32 %v94_v55, %v93_v54 }
  0xbc   :  { %v100_v58 = vsel %vm33_vm0, %v91_v56, 0.0 }
  0xbd   :  { %v96_v59 = vrot.slane %v95_v57, 2  ;;  %v101_v60 = vrot.slane %v100_v58, 4 }
  0xbf   :  { %v97_v61 = vadd.f32 %v96_v59, %v95_v57  ;;  %v102_v62 = vadd.f32 %v101_v60, %v100_v58 }
  0xc1   :  { %v103_v63 = vrot.slane %v102_v62, 2  ;;  %v98_v0 = vrot.slane %v97_v61, 1 }
  0xc3   :  { %v104_v1 = vadd.f32 %v103_v63, %v102_v62  ;;  %v99_v4 = vadd.f32 %v98_v0, %v97_v61 }
  0xc5   :  { %v105_v2 = vrot.slane %v104_v1, 1 }
  0xc7   :  { %v106_v5 = vadd.f32 %v105_v2, %v104_v1 }
  0xc9   :  { %v110_v6 = vsel %vm109_vm10, %v106_v5, %v99_v4 }
  0xca   :  { %v112_v7 = vadd.f32 %v110_v6, %v92_v3 }
  0xcc   :  { %114 = vst.msk [vmem:[#allocation2] sm:$0x3] %vm21_vm1, %v112_v7 }
  0xd3   :  { %v118_v9 = vld [vmem:[#allocation2] sm:$0x3] }
  0xd4   :  { %v126_v10 = vmul.f32 %v139_v8, %v118_v9 }
  0xd6   :  { %v127_v11 = vsel %vm21_vm1, %v126_v10, 0.0 }
  0xd7   :  { %128 = vadd.xlane.f32.xlu0 %v127_v11 }
 0x164   :  { %v129_v12 = vpop.xlane.xlu0 %128 }
 0x165   :  { %v130_v13 = vmul.f32 0.25, %v129_v12 }
 0x167   :  { %132 = vst.msk [vmem:[%s231_s3] sm:$0x3] %vm131_vm11, %v130_v13 }

// kernel: lpips_forward.9
= control target key start
LH: loop header
LB: loop body
LE: loop exit
PB: predicated region body
PF: predicated region fallthrough
CT: control target
= control target key end

     0   :  { %vm103_vm0 = vcmask 130048   ;;  %vm21_vm1 = vcmask 123904   ;;  %s1470_s0 = inlined_call_operand.vmem [shape: bf16[4,64,16], index: 0, kind: input, shape index: {}, may-alias: {0,1}]   ;;  %s1471_s1 = inlined_call_operand.vmem [shape: bf16[4,64,16], index: 1, kind: input, shape index: {}, may-alias: {0,1}]   ;;  %s1472_s2 = inlined_call_operand.vmem [shape: f32[1,16], index: 2, kind: input, shape index: {}]   ;;  %s1473_s3 = inlined_call_operand.vmem [shape: f32[2,1], index: 3, kind: output, shape index: {}]  }
   0x1   :  { %v725_v0 = vld [vmem:[%s1470_s0 + $0x20] sm:$0xff]   ;;  %v726_v22 = vld [vmem:[%s1470_s0 + $0x28] sm:$0xff]   ;;  %v727_v50 = vld [vmem:[%s1470_s0 + $0x30] sm:$0xff]  }
   0x2   :  { %v659_v1 = vld [vmem:[%s1470_s0] sm:$0xff]   ;;  %v896_v3 = vunpack.c.l.bf16 %v725_v0  ;;  %v900_v5 = vunpack.c.h.bf16 %v725_v0  ;;  %v722_v23 = vld [vmem:[%s1470_s0 + $0x8] sm:$0xff]   ;;  %v943_v28 = vunpack.c.l.bf16 %v726_v22  ;;  %v963_v38 = vunpack.c.h.bf16 %v726_v22  ;;  %v723_v51 = vld [vmem:[%s1470_s0 + $0x10] sm:$0xff]  }
   0x3   :  { %v729_v2 = vld [vmem:[%s1471_s1 + $0x40] sm:$0xff]   ;;  %v898_v4 = vunpack.c.l.bf16 %v659_v1  ;;  %v902_v6 = vunpack.c.h.bf16 %v659_v1  ;;  %v945_v29 = vunpack.c.l.bf16 %v722_v23  ;;  %v734_v30 = vld [vmem:[%s1471_s1 + $0x68] sm:$0xff]   ;;  %v965_v39 = vunpack.c.h.bf16 %v722_v23  ;;  %v735_v58 = vld [vmem:[%s1471_s1 + $0x70] sm:$0xff]  }
   0x4   :  { %v904_v7 = vunpack.c.h.bf16 %v729_v2  ;;  %v906_v8 = vunpack.c.l.bf16 %v729_v2  ;;  %v95_v9 = vmul.f32 %v896_v3, %v896_v3  ;;  %v96_v11 = vmul.f32 %v900_v5, %v900_v5  ;;  %v733_v13 = vld [vmem:[%s1471_s1 + $0x60] sm:$0xff]   ;;  %v730_v31 = vld [vmem:[%s1471_s1 + $0x48] sm:$0xff]   ;;  %v731_v59 = vld [vmem:[%s1471_s1 + $0x50] sm:$0xff]  }
   0x5   :  { %v87_v10 = vmul.f32 %v898_v4, %v898_v4  ;;  %v88_v12 = vmul.f32 %v902_v6, %v902_v6  ;;  %v921_v16 = vunpack.c.h.bf16 %v733_v13  ;;  %v923_v17 = vunpack.c.l.bf16 %v733_v13  ;;  %v728_v22 = vld [vmem:[%s1470_s0 + $0x38] sm:$0xff]  }
   0x6   :  { %v128_v14 = vsel %vm103_vm0, %v95_v9, 0.0  ;;  %v131_v18 = vsel %vm103_vm0, %v96_v11, 0.0  ;;  %v313_v20 = vmul.f32 %v904_v7, %v904_v7  ;;  %v312_v21 = vmul.f32 %v906_v8, %v906_v8  ;;  %v724_v23 = vld [vmem:[%s1470_s0 + $0x18] sm:$0xff]  }
   0x7   :  { %v104_v15 = vsel %vm103_vm0, %v87_v10, 0.0  ;;  %129 = vadd.xlane.f32.xlu1 %v128_v14  ;;  %v107_v19 = vsel %vm103_vm0, %v88_v12, 0.0  ;;  %v321_v24 = vmul.f32 %v921_v16, %v921_v16  ;;  %v320_v25 = vmul.f32 %v923_v17, %v923_v17 }
   0x8   :  { %105 = vadd.xlane.f32.xlu0 %v104_v15  ;;  %v331_v26 = vsel %vm103_vm0, %v313_v20, 0.0  ;;  %v328_v27 = vsel %vm103_vm0, %v312_v21, 0.0  ;;  %v97_v34 = vmul.f32 %v943_v28, %v943_v28  ;;  %v89_v35 = vmul.f32 %v945_v29, %v945_v29 }
   0x9   :  { %v355_v32 = vsel %vm103_vm0, %v321_v24, 0.0  ;;  %v352_v33 = vsel %vm103_vm0, %v320_v25, 0.0  ;;  %v959_v36 = vunpack.c.l.bf16 %v734_v30  ;;  %v961_v37 = vunpack.c.l.bf16 %v730_v31 }
   0xa   :  { %v134_v40 = vsel %vm103_vm0, %v97_v34, 0.0  ;;  %v110_v41 = vsel %vm103_vm0, %v89_v35, 0.0  ;;  %v973_v44 = vunpack.c.h.bf16 %v734_v30  ;;  %v975_v45 = vunpack.c.h.bf16 %v730_v31 }
   0xb   :  { %132 = vadd.xlane.f32.xlu1 %v131_v18  ;;  %v322_v42 = vmul.f32 %v959_v36, %v959_v36  ;;  %v314_v43 = vmul.f32 %v961_v37, %v961_v37  ;;  %v98_v48 = vmul.f32 %v963_v38, %v963_v38  ;;  %v90_v49 = vmul.f32 %v965_v39, %v965_v39 }
   0xc   :  { %108 = vadd.xlane.f32.xlu0 %v107_v19  ;;  %v323_v52 = vmul.f32 %v973_v44, %v973_v44  ;;  %v991_v53 = vunpack.c.l.bf16 %v727_v50  ;;  %v315_v56 = vmul.f32 %v975_v45, %v975_v45  ;;  %v997_v57 = vunpack.c.l.bf16 %v723_v51 }
   0xd   :  { %v358_v46 = vsel %vm103_vm0, %v322_v42, 0.0  ;;  %v334_v47 = vsel %vm103_vm0, %v314_v43, 0.0  ;;  %v137_v54 = vsel %vm103_vm0, %v98_v48, 0.0  ;;  %v113_v55 = vsel %vm103_vm0, %v90_v49, 0.0 }
   0xe   :  { %v361_v60 = vsel %vm103_vm0, %v323_v52, 0.0  ;;  %v99_v61 = vmul.f32 %v991_v53, %v991_v53  ;;  %v337_v62 = vsel %vm103_vm0, %v315_v56, 0.0  ;;  %v91_v63 = vmul.f32 %v997_v57, %v997_v57 }
   0xf   :  { %332 = vadd.xlane.f32.xlu1 %v331_v26  ;;  %v1011_v0 = vunpack.c.l.bf16 %v735_v58  ;;  %v1013_v1 = vunpack.c.l.bf16 %v731_v59  ;;  %v1015_v2 = vunpack.c.h.bf16 %v727_v50  ;;  %v1017_v9 = vunpack.c.h.bf16 %v723_v51 }
  0x10   :  { %329 = vadd.xlane.f32.xlu0 %v328_v27  ;;  %v140_v10 = vsel %vm103_vm0, %v99_v61, 0.0  ;;  %v116_v11 = vsel %vm103_vm0, %v91_v63, 0.0  ;;  %v1027_v15 = vunpack.c.h.bf16 %v735_v58  ;;  %v1033_v21 = vunpack.c.h.bf16 %v731_v59 }
  0x11   :  { %v324_v12 = vmul.f32 %v1011_v0, %v1011_v0  ;;  %v316_v13 = vmul.f32 %v1013_v1, %v1013_v1  ;;  %v100_v14 = vmul.f32 %v1015_v2, %v1015_v2  ;;  %v92_v20 = vmul.f32 %v1017_v9, %v1017_v9 }
  0x12   :  { %v325_v24 = vmul.f32 %v1027_v15, %v1027_v15  ;;  %v1043_v25 = vunpack.c.l.bf16 %v728_v22  ;;  %v317_v30 = vmul.f32 %v1033_v21, %v1033_v21  ;;  %v1049_v31 = vunpack.c.l.bf16 %v724_v23 }
  0x13   :  { %356 = vadd.xlane.f32.xlu1 %v355_v32  ;;  %v364_v18 = vsel %vm103_vm0, %v324_v12, 0.0  ;;  %v340_v19 = vsel %vm103_vm0, %v316_v13, 0.0  ;;  %v143_v26 = vsel %vm103_vm0, %v100_v14, 0.0  ;;  %v119_v27 = vsel %vm103_vm0, %v92_v20, 0.0  ;;  %v736_v32 = vld [vmem:[%s1471_s1 + $0x78] sm:$0xff]  }
  0x14   :  { %353 = vadd.xlane.f32.xlu0 %v352_v33  ;;  %v732_v33 = vld [vmem:[%s1471_s1 + $0x58] sm:$0xff]   ;;  %v367_v34 = vsel %vm103_vm0, %v325_v24, 0.0  ;;  %v101_v35 = vmul.f32 %v1043_v25, %v1043_v25  ;;  %v1063_v42 = vunpack.c.l.bf16 %v736_v32  ;;  %v866_v12 = vmov 0.0  }
  0x15   :  { %v1065_v43 = vunpack.c.l.bf16 %v732_v33  ;;  %v1085_v59 = vunpack.c.h.bf16 %v732_v33  ;;  %22 = vst.msk [vmem:[#allocation2] sm:$0x3] %vm21_vm1, %v866_v12 }
  0x16   :  { %v146_v48 = vsel %vm103_vm0, %v101_v35, 0.0  ;;  %v326_v50 = vmul.f32 %v1063_v42, %v1063_v42 }
  0x17   :  { %135 = vadd.xlane.f32.xlu1 %v134_v40  ;;  %v343_v40 = vsel %vm103_vm0, %v317_v30, 0.0  ;;  %v318_v51 = vmul.f32 %v1065_v43, %v1065_v43  ;;  %v319_v63 = vmul.f32 %v1085_v59, %v1085_v59 }
  0x18   :  { %111 = vadd.xlane.f32.xlu0 %v110_v41  ;;  %v93_v41 = vmul.f32 %v1049_v31, %v1049_v31 }
  0x19   :  { %v346_v56 = vsel %vm103_vm0, %v318_v51, 0.0 }
  0x1a   :  { %v122_v49 = vsel %vm103_vm0, %v93_v41, 0.0 }
  0x1b   :  { %359 = vadd.xlane.f32.xlu1 %v358_v46  ;;  %v1067_v46 = vunpack.c.h.bf16 %v728_v22 }
  0x1c   :  { %335 = vadd.xlane.f32.xlu0 %v334_v47  ;;  %v1069_v47 = vunpack.c.h.bf16 %v724_v23 }
  0x1d   :  { %v102_v52 = vmul.f32 %v1067_v46, %v1067_v46 }
  0x1e   :  { %v94_v58 = vmul.f32 %v1069_v47, %v1069_v47 }
  0x1f   :  { %138 = vadd.xlane.f32.xlu1 %v137_v54  ;;  %v1079_v54 = vunpack.c.h.bf16 %v736_v32 }
  0x20   :  { %114 = vadd.xlane.f32.xlu0 %v113_v55  ;;  %v370_v55 = vsel %vm103_vm0, %v326_v50, 0.0  ;;  %v125_v61 = vsel %vm103_vm0, %v94_v58, 0.0 }
  0x23   :  { %362 = vadd.xlane.f32.xlu1 %v361_v60  ;;  %v149_v60 = vsel %vm103_vm0, %v102_v52, 0.0 }
  0x24   :  { %338 = vadd.xlane.f32.xlu0 %v337_v62  ;;  %v327_v62 = vmul.f32 %v1079_v54, %v1079_v54 }
  0x27   :  { %141 = vadd.xlane.f32.xlu1 %v140_v10  ;;  %v373_v10 = vsel %vm103_vm0, %v327_v62, 0.0 }
  0x28   :  { %117 = vadd.xlane.f32.xlu0 %v116_v11  ;;  %v349_v11 = vsel %vm103_vm0, %v319_v63, 0.0 }
  0x2b   :  { %365 = vadd.xlane.f32.xlu1 %v364_v18 }
  0x2c   :  { %341 = vadd.xlane.f32.xlu0 %v340_v19 }
  0x2f   :  { %144 = vadd.xlane.f32.xlu1 %v143_v26 }
  0x30   :  { %120 = vadd.xlane.f32.xlu0 %v119_v27 }
  0x33   :  { %368 = vadd.xlane.f32.xlu1 %v367_v34 }
  0x34   :  { %344 = vadd.xlane.f32.xlu0 %v343_v40 }
  0x37   :  { %147 = vadd.xlane.f32.xlu1 %v146_v48 }
  0x38   :  { %123 = vadd.xlane.f32.xlu0 %v122_v49 }
  0x3b   :  { %371 = vadd.xlane.f32.xlu1 %v370_v55 }
  0x3c   :  { %347 = vadd.xlane.f32.xlu0 %v346_v56 }
  0x3f   :  { %150 = vadd.xlane.f32.xlu1 %v149_v60 }
  0x40   :  { %126 = vadd.xlane.f32.xlu0 %v125_v61 }
  0x43   :  { %374 = vadd.xlane.f32.xlu1 %v373_v10 }
  0x44   :  { %350 = vadd.xlane.f32.xlu0 %v349_v11 }
  0x94   :  { %v130_v13 = vpop.xlane.xlu1 %129 }
  0x95   :  { %v106_v14 = vpop.xlane.xlu0 %105  ;;  %738 = vrsqrt.f32 %v130_v13  ;;  %vm210_vm2 = vcmp.eq.f32.partialorder %v130_v13, inf  ;;  %vm212_vm3 = vcmp.eq.f32.partialorder %v130_v13, 0.0  ;;  %v213_v48 = vand.u32 2147483648, %v130_v13 }
  0x96   :  { %740 = vrsqrt.f32 %v106_v14  ;;  %vm154_vm4 = vcmp.eq.f32.partialorder %v106_v14, inf  ;;  %vm156_vm5 = vcmp.eq.f32.partialorder %v106_v14, 0.0  ;;  %v157_v56 = vand.u32 2147483648, %v106_v14 }
  0x98   :  { %v133_v18 = vpop.xlane.xlu1 %132 }
  0x99   :  { %v1096_v19 = vpop.xlane.xlu0 %108  ;;  %742 = vrsqrt.f32 %v133_v18  ;;  %vm217_vm6 = vcmp.eq.f32.partialorder %v133_v18, inf  ;;  %vm219_vm7 = vcmp.eq.f32.partialorder %v133_v18, 0.0  ;;  %v220_v60 = vand.u32 2147483648, %v133_v18 }
  0x9a   :  { %744 = vrsqrt.f32 %v1096_v19  ;;  %vm161_vm8 = vcmp.eq.f32.partialorder %v1096_v19, inf  ;;  %vm163_vm9 = vcmp.eq.f32.partialorder %v1096_v19, 0.0 }
  0x9c   :  { %v1099_v20 = vpop.xlane.xlu1 %332 }
  0x9d   :  { %v1101_v22 = vpop.xlane.xlu0 %329  ;;  %746 = vrsqrt.f32 %v1099_v20  ;;  %vm385_vm10 = vcmp.eq.f32.partialorder %v1099_v20, inf  ;;  %vm387_vm12 = vcmp.eq.f32.partialorder %v1099_v20, 0.0 }
  0x9e   :  { %748 = vrsqrt.f32 %v1101_v22  ;;  %vm378_vm11 = vcmp.eq.f32.partialorder %v1101_v22, inf  ;;  %vm380_vm14 = vcmp.eq.f32.partialorder %v1101_v22, 0.0 }
  0x9f   :  { %v739_v26 = vpop.eup %738 }
  0xa0   :  { %v1105_v23 = vpop.xlane.xlu1 %356  ;;  %v741_v27 = vpop.eup %740  ;;  %v209_v34 = vmul.f32 %v739_v26, %v130_v13 }
  0xa1   :  { %v1107_v24 = vpop.xlane.xlu0 %353  ;;  %750 = vrsqrt.f32 %v1105_v23  ;;  %v153_v41 = vmul.f32 %v741_v27, %v106_v14  ;;  %vm441_vm13 = vcmp.eq.f32.partialorder %v1105_v23, inf  ;;  %vm443_vm15 = vcmp.eq.f32.partialorder %v1105_v23, 0.0 }
  0xa2   :  { %752 = vrsqrt.f32 %v1107_v24  ;;  %v211_v55 = vsel %vm210_vm2, %v130_v13, %v209_v34  ;;  %v388_v34 = vand.u32 2147483648, %v1099_v20  ;;  %vm434_vm2 = vcmp.eq.f32.partialorder %v1107_v24, inf }
  0xa3   :  { %v743_v33 = vpop.eup %742  ;;  %v155_v63 = vsel %vm154_vm4, %v106_v14, %v153_v41  ;;  %v214_v10 = vsel %vm212_vm3, %v213_v48, %v211_v55  ;;  %vm436_vm3 = vcmp.eq.f32.partialorder %v1107_v24, 0.0 }
  0xa4   :  { %v1111_v30 = vpop.xlane.xlu1 %135  ;;  %v745_v35 = vpop.eup %744  ;;  %v216_v49 = vmul.f32 %v743_v33, %v133_v18  ;;  %v164_v33 = vand.u32 2147483648, %v1096_v19 }
  0xa5   :  { %v1113_v32 = vpop.xlane.xlu0 %111  ;;  %v160_v58 = vmul.f32 %v745_v35, %v1096_v19  ;;  %754 = vrsqrt.f32 %v1111_v30  ;;  %vm224_vm4 = vcmp.eq.f32.partialorder %v1111_v30, inf }
  0xa6   :  { %v218_v11 = vsel %vm217_vm6, %v133_v18, %v216_v49  ;;  %v272_v49 = vadd.f32 1e-10, %v214_v10  ;;  %v444_v10 = vand.u32 2147483648, %v1105_v23  ;;  %vm226_vm6 = vcmp.eq.f32.partialorder %v1111_v30, 0.0 }
  0xa7   :  { %v747_v40 = vpop.eup %746  ;;  %v162_v27 = vsel %vm161_vm8, %v1096_v19, %v160_v58 }
  0xa8   :  { %v1115_v50 = vpop.xlane.xlu1 %359  ;;  %v749_v52 = vpop.eup %748  ;;  %v384_v61 = vmul.f32 %v747_v40, %v1099_v20  ;;  %v158_v40 = vsel %vm156_vm5, %v157_v56, %v155_v63  ;;  %v165_v55 = vsel %vm163_vm9, %v164_v33, %v162_v27  ;;  %v381_v56 = vand.u32 2147483648, %v1101_v22 }
  0xa9   :  { %v1117_v51 = vpop.xlane.xlu0 %335  ;;  %v377_v12 = vmul.f32 %v749_v52, %v1101_v22  ;;  %756 = vrsqrt.f32 %v1115_v50  ;;  %v221_v52 = vsel %vm219_vm7, %v220_v60, %v218_v11  ;;  %v265_v63 = vadd.f32 1e-10, %v165_v55 }
  0xaa   :  { %v386_v13 = vsel %vm385_vm10, %v1099_v20, %v384_v61  ;;  %758 = vrsqrt.f32 %v1113_v32  ;;  %v264_v61 = vadd.f32 1e-10, %v158_v40  ;;  %v273_v60 = vadd.f32 1e-10, %v221_v52 }
  0xab   :  { %v751_v62 = vpop.eup %750  ;;  %760 = vrsqrt.f32 %v1117_v51  ;;  %v379_v14 = vsel %vm378_vm11, %v1101_v22, %v377_v12  ;;  %v437_v40 = vand.u32 2147483648, %v1107_v24  ;;  %vm448_vm5 = vcmp.eq.f32.partialorder %v1115_v50, inf }
  0xac   :  { %v1127_v26 = vpop.xlane.xlu1 %138  ;;  %v753_v35 = vpop.eup %752  ;;  %v440_v41 = vmul.f32 %v751_v62, %v1105_v23  ;;  %v389_v62 = vsel %vm387_vm12, %v388_v34, %v386_v13  ;;  %762 = vrcp.f32 %v272_v49  ;;  %v382_v20 = vsel %vm380_vm14, %v381_v56, %v379_v14 }
  0xad   :  { %v1137_v48 = vpop.xlane.xlu0 %114  ;;  %v433_v18 = vmul.f32 %v753_v35, %v1107_v24  ;;  %v489_v11 = vadd.f32 1e-10, %v389_v62  ;;  %764 = vrsqrt.f32 %v1127_v26  ;;  %v488_v35 = vadd.f32 1e-10, %v382_v20 }
  0xae   :  { %v442_v19 = vsel %vm441_vm13, %v1105_v23, %v440_v41  ;;  %766 = vrcp.f32 %v264_v61  ;;  %vm168_vm7 = vcmp.eq.f32.partialorder %v1113_v32, inf  ;;  %vm450_vm8 = vcmp.eq.f32.partialorder %v1115_v50, 0.0 }
  0xaf   :  { %v755_v27 = vpop.eup %754  ;;  %v445_v33 = vsel %vm443_vm15, %v444_v10, %v442_v19  ;;  %v435_v22 = vsel %vm434_vm2, %v1107_v24, %v433_v18  ;;  %768 = vrcp.f32 %v273_v60  ;;  %vm392_vm9 = vcmp.eq.f32.partialorder %v1117_v51, inf }
  0xb0   :  { %v1147_v58 = vpop.xlane.xlu1 %362  ;;  %770 = vrcp.f32 %v265_v63  ;;  %v497_v41 = vadd.f32 1e-10, %v445_v33  ;;  %v438_v49 = vsel %vm436_vm3, %v437_v40, %v435_v22  ;;  %v223_v52 = vmul.f32 %v755_v27, %v1111_v30 }
  0xb1   :  { %v1157_v12 = vpop.xlane.xlu0 %338  ;;  %772 = vrcp.f32 %v489_v11  ;;  %v496_v61 = vadd.f32 1e-10, %v438_v49  ;;  %v227_v63 = vand.u32 2147483648, %v1111_v30  ;;  %v451_v11 = vand.u32 2147483648, %v1115_v50 }
  0xb2   :  { %774 = vrsqrt.f32 %v1137_v48  ;;  %v225_v24 = vsel %vm224_vm4, %v1111_v30, %v223_v52  ;;  %vm170_vm10 = vcmp.eq.f32.partialorder %v1113_v32, 0.0  ;;  %vm394_vm11 = vcmp.eq.f32.partialorder %v1117_v51, 0.0 }
  0xb3   :  { %v757_v34 = vpop.eup %756  ;;  %776 = vrcp.f32 %v488_v35  ;;  %v228_v33 = vsel %vm226_vm6, %v227_v63, %v225_v24  ;;  %vm231_vm12 = vcmp.eq.f32.partialorder %v1127_v26, inf  ;;  %vm233_vm13 = vcmp.eq.f32.partialorder %v1127_v26, 0.0 }
  0xb4   :  { %v1161_v13 = vpop.xlane.xlu1 %141  ;;  %v759_v23 = vpop.eup %758  ;;  %v447_v14 = vmul.f32 %v757_v34, %v1115_v50  ;;  %778 = vrsqrt.f32 %v1147_v58  ;;  %v171_v34 = vand.u32 2147483648, %v1113_v32  ;;  %vm175_vm14 = vcmp.eq.f32.partialorder %v1137_v48, inf }
  0xb5   :  { %v761_v55 = vpop.eup %760  ;;  %v1167_v56 = vpop.xlane.xlu0 %117  ;;  %v167_v62 = vmul.f32 %v759_v23, %v1113_v32  ;;  %780 = vrcp.f32 %v497_v41  ;;  %v395_v41 = vand.u32 2147483648, %v1117_v51  ;;  %vm177_vm15 = vcmp.eq.f32.partialorder %v1137_v48, 0.0 }
  0xb6   :  { %v391_v18 = vmul.f32 %v761_v55, %v1117_v51  ;;  %v763_v19 = vpop.eup %762  ;;  %v449_v20 = vsel %vm448_vm5, %v1115_v50, %v447_v14  ;;  %782 = vrsqrt.f32 %v1157_v12  ;;  %v274_v55 = vadd.f32 1e-10, %v228_v33 }
  0xb7   :  { %v765_v10 = vpop.eup %764  ;;  %784 = vrsqrt.f32 %v1161_v13  ;;  %v169_v22 = vsel %vm168_vm7, %v1113_v32, %v167_v62  ;;  %v452_v35 = vsel %vm450_vm8, %v451_v11, %v449_v20  ;;  %v1200_v20 = vmul.f32 %v763_v19, %v896_v3 }
  0xb8   :  { %v1175_v60 = vpop.xlane.xlu1 %365  ;;  %v767_v27 = vpop.eup %766  ;;  %786 = vrcp.f32 %v496_v61  ;;  %v393_v40 = vsel %vm392_vm9, %v1117_v51, %v391_v18  ;;  %v230_v49 = vmul.f32 %v765_v10, %v1127_v26  ;;  %v172_v14 = vsel %vm170_vm10, %v171_v34, %v169_v22 }
  0xb9   :  { %v769_v30 = vpop.eup %768  ;;  %788 = vrsqrt.f32 %v1167_v56  ;;  %v1190_v23 = vpop.xlane.xlu0 %341  ;;  %v498_v24 = vadd.f32 1e-10, %v452_v35  ;;  %v396_v18 = vsel %vm394_vm11, %v395_v41, %v393_v40  ;;  %v281_v32 = vmul.f32 %v767_v27, %v898_v4 }
  0xba   :  { %v771_v50 = vpop.eup %770  ;;  %v234_v10 = vand.u32 2147483648, %v1127_v26  ;;  %v266_v33 = vadd.f32 1e-10, %v172_v14  ;;  %v232_v51 = vsel %vm231_vm12, %v1127_v26, %v230_v49  ;;  %790 = vrcp.f32 %v274_v55 }
  0xbb   :  { %v773_v52 = vpop.eup %772  ;;  %v490_v34 = vadd.f32 1e-10, %v396_v18  ;;  %v178_v19 = vand.u32 2147483648, %v1137_v48  ;;  %v299_v35 = vmul.f32 %v769_v30, %v900_v5  ;;  %792 = vrcp.f32 %v498_v24 }
  0xbc   :  { %v1196_v61 = vpop.xlane.xlu1 %144  ;;  %v775_v62 = vpop.eup %774  ;;  %vm455_vm2 = vcmp.eq.f32.partialorder %v1147_v58, inf  ;;  %vm457_vm3 = vcmp.eq.f32.partialorder %v1147_v58, 0.0  ;;  %v283_v41 = vmul.f32 %v771_v50, %v902_v6  ;;  %v235_v49 = vsel %vm233_vm13, %v234_v10, %v232_v51 }
  0xbd   :  { %v777_v63 = vpop.eup %776  ;;  %v174_v3 = vmul.f32 %v775_v62, %v1137_v48  ;;  %v1210_v4 = vpop.xlane.xlu0 %120  ;;  %794 = vrsqrt.f32 %v1175_v60  ;;  %v507_v5 = vmul.f32 %v773_v52, %v904_v7  ;;  %v458_v30 = vand.u32 2147483648, %v1147_v58 }
  0xbe   :  { %v779_v11 = vpop.eup %778  ;;  %796 = vrcp.f32 %v266_v33  ;;  %vm399_vm4 = vcmp.eq.f32.partialorder %v1157_v12, inf  ;;  %v505_v6 = vmul.f32 %v777_v63, %v906_v8  ;;  %v275_v10 = vadd.f32 1e-10, %v235_v49 }
  0xbf   :  { %v781_v22 = vpop.eup %780  ;;  %v454_v55 = vmul.f32 %v779_v11, %v1147_v58  ;;  %798 = vrcp.f32 %v490_v34  ;;  %v176_v26 = vsel %vm175_vm14, %v1137_v48, %v174_v3  ;;  %vm401_vm5 = vcmp.eq.f32.partialorder %v1157_v12, 0.0 }
  0xc0   :  { %v783_v27 = vpop.eup %782  ;;  %v1220_v14 = vpop.xlane.xlu1 %368  ;;  %v523_v18 = vmul.f32 %v781_v22, %v921_v16  ;;  %800 = vrsqrt.f32 %v1190_v23  ;;  %v402_v8 = vand.u32 2147483648, %v1157_v12  ;;  %v179_v16 = vsel %vm177_vm15, %v178_v19, %v176_v26 }
  0xc1   :  { %v785_v40 = vpop.eup %784  ;;  %v398_v50 = vmul.f32 %v783_v27, %v1157_v12  ;;  %v456_v52 = vsel %vm455_vm2, %v1147_v58, %v454_v55  ;;  %802 = vrsqrt.f32 %v1196_v61  ;;  %v1239_v63 = vpop.xlane.xlu0 %344  ;;  %vm238_vm6 = vcmp.eq.f32.partialorder %v1161_v13, inf }
  0xc2   :  { %v787_v62 = vpop.eup %786  ;;  %v237_v7 = vmul.f32 %v785_v40, %v1161_v13  ;;  %v537_v51 = vsub.f32 %v283_v41, %v507_v5  ;;  %v536_v22 = vsub.f32 %v281_v32, %v505_v6  ;;  %vm240_vm7 = vcmp.eq.f32.partialorder %v1161_v13, 0.0 }
  0xc3   :  { %v789_v24 = vpop.eup %788  ;;  %v521_v11 = vmul.f32 %v787_v62, %v923_v17  ;;  %v400_v34 = vsel %vm399_vm4, %v1157_v12, %v398_v50  ;;  %v545_v27 = vsub.f32 %v299_v35, %v523_v18  ;;  %804 = vrcp.f32 %v275_v10 }
  0xc4   :  { %v181_v33 = vmul.f32 %v789_v24, %v1167_v56  ;;  %v1250_v3 = vpop.xlane.xlu1 %147  ;;  %v459_v17 = vsel %vm457_vm3, %v458_v30, %v456_v52  ;;  %v239_v48 = vsel %vm238_vm6, %v1161_v13, %v237_v7  ;;  %v791_v19 = vpop.eup %790  ;;  %v267_v40 = vadd.f32 1e-10, %v179_v16 }
  0xc5   :  { %v241_v41 = vand.u32 2147483648, %v1161_v13  ;;  %vm182_vm8 = vcmp.eq.f32.partialorder %v1167_v56, inf  ;;  %806 = vrsqrt.f32 %v1220_v14  ;;  %v793_v32 = vpop.eup %792  ;;  %v544_v49 = vsub.f32 %v1200_v20, %v521_v11  ;;  %v1267_v24 = vpop.xlane.xlu0 %123 }
  0xc6   :  { %v403_v35 = vsel %vm401_vm5, %v402_v8, %v400_v34  ;;  %v183_v55 = vsel %vm182_vm8, %v1167_v56, %v181_v33  ;;  %808 = vrsqrt.f32 %v1239_v63  ;;  %v499_v62 = vadd.f32 1e-10, %v459_v17 }
  0xc7   :  { %v795_v58 = vpop.eup %794  ;;  %v242_v5 = vsel %vm240_vm7, %v241_v41, %v239_v48  ;;  %v185_v30 = vand.u32 2147483648, %v1167_v56  ;;  %810 = vrsqrt.f32 %v1210_v4  ;;  %v561_v20 = vmul.f32 %v545_v27, %v545_v27 }
  0xc8   :  { %v1269_v6 = vpop.eup %796  ;;  %vm184_vm9 = vcmp.eq.f32.partialorder %v1167_v56, 0.0  ;;  %v461_v12 = vmul.f32 %v795_v58, %v1175_v60  ;;  %812 = vrsqrt.f32 %v1250_v3  ;;  %v1274_v50 = vmul.f32 %v537_v51, %v537_v51  ;;  %v1276_v10 = vpop.xlane.xlu1 %371 }
  0xc9   :  { %v799_v26 = vpop.eup %798  ;;  %814 = vrcp.f32 %v267_v40  ;;  %v491_v13 = vadd.f32 1e-10, %v403_v35  ;;  %v186_v18 = vsel %vm184_vm9, %v185_v30, %v183_v55  ;;  %v1278_v52 = vmul.f32 %v536_v22, %v536_v22 }
  0xca   :  { %v801_v7 = vpop.eup %800  ;;  %v525_v8 = vmul.f32 %v793_v32, %v959_v36  ;;  %v276_v11 = vadd.f32 1e-10, %v242_v5  ;;  %816 = vrsqrt.f32 %v1267_v24  ;;  %v1282_v16 = vmul.f32 %v544_v49, %v544_v49  ;;  %v1305_v32 = vpop.xlane.xlu0 %347 }
  0xcb   :  { %v803_v56 = vpop.eup %802  ;;  %v301_v33 = vmul.f32 %v791_v19, %v943_v28  ;;  %818 = vrcp.f32 %v499_v62  ;;  %vm462_vm10 = vcmp.eq.f32.partialorder %v1175_v60, inf  ;;  %v1287_v51 = vsel %vm103_vm0, %v561_v20, 0.0 }
  0xcc   :  { %v268_v34 = vadd.f32 1e-10, %v186_v18  ;;  %v463_v22 = vsel %vm462_vm10, %v1175_v60, %v461_v12  ;;  %820 = vrsqrt.f32 %v1276_v10  ;;  %vm464_vm11 = vcmp.eq.f32.partialorder %v1175_v60, 0.0  ;;  %v1324_v18 = vpop.xlane.xlu1 %150 }
  0xcd   :  { %822 = vrcp.f32 %v491_v13  ;;  %v465_v36 = vand.u32 2147483648, %v1175_v60  ;;  %v405_v27 = vmul.f32 %v801_v7, %v1190_v23  ;;  %v1294_v17 = vpop.eup %804  ;;  %v1296_v28 = vsub.f32 %v301_v33, %v525_v8 }
  0xce   :  { %v1299_v48 = vmul.f32 %v799_v26, %v961_v37  ;;  %824 = vrcp.f32 %v276_v11  ;;  %v244_v19 = vmul.f32 %v803_v56, %v1196_v61  ;;  %vm406_vm12 = vcmp.eq.f32.partialorder %v1190_v23, inf }
  0xcf   :  { %v807_v40 = vpop.eup %806  ;;  %v466_v41 = vsel %vm464_vm11, %v465_v36, %v463_v22  ;;  %vm408_vm13 = vcmp.eq.f32.partialorder %v1190_v23, 0.0  ;;  %v409_v60 = vand.u32 2147483648, %v1190_v23  ;;  %826 = vrcp.f32 %v268_v34 }
  0xd0   :  { %v809_v49 = vpop.eup %808  ;;  %vm245_vm14 = vcmp.eq.f32.partialorder %v1196_v61, inf  ;;  %vm247_vm15 = vcmp.eq.f32.partialorder %v1196_v61, 0.0  ;;  %v248_v37 = vand.u32 2147483648, %v1196_v61  ;;  %v407_v55 = vsel %vm406_vm12, %v1190_v23, %v405_v27  ;;  %v1336_v27 = vpop.xlane.xlu0 %126 }
  0xd1   :  { %v811_v35 = vpop.eup %810  ;;  %vm189_vm2 = vcmp.eq.f32.partialorder %v1210_v4, inf  ;;  %v192_v58 = vand.u32 2147483648, %v1210_v4  ;;  %v468_v62 = vmul.f32 %v807_v40, %v1220_v14  ;;  %v500_v30 = vadd.f32 1e-10, %v466_v41 }
  0xd2   :  { %v813_v5 = vpop.eup %812  ;;  %v246_v20 = vsel %vm245_vm14, %v1196_v61, %v244_v19  ;;  %vm191_vm3 = vcmp.eq.f32.partialorder %v1210_v4, 0.0  ;;  %vm469_vm4 = vcmp.eq.f32.partialorder %v1220_v14, inf  ;;  %v412_v12 = vmul.f32 %v809_v49, %v1239_v63 }
  0xd3   :  { %v1318_v26 = vpop.eup %814  ;;  %vm471_vm5 = vcmp.eq.f32.partialorder %v1220_v14, 0.0  ;;  %v472_v13 = vand.u32 2147483648, %v1220_v14  ;;  %vm413_vm6 = vcmp.eq.f32.partialorder %v1239_v63, inf  ;;  %828 = vrsqrt.f32 %v1305_v32 }
  0xd4   :  { %v817_v7 = vpop.eup %816  ;;  %v410_v8 = vsel %vm408_vm13, %v409_v60, %v407_v55  ;;  %v188_v11 = vmul.f32 %v811_v35, %v1210_v4  ;;  %vm415_vm7 = vcmp.eq.f32.partialorder %v1239_v63, 0.0  ;;  %v416_v56 = vand.u32 2147483648, %v1239_v63 }
  0xd5   :  { %v819_v33 = vpop.eup %818  ;;  %v249_v34 = vsel %vm247_vm15, %v248_v37, %v246_v20  ;;  %v470_v22 = vsel %vm469_vm4, %v1220_v14, %v468_v62  ;;  %v251_v36 = vmul.f32 %v813_v5, %v1250_v3  ;;  %vm252_vm8 = vcmp.eq.f32.partialorder %v1250_v3, inf }
  0xd6   :  { %v821_v23 = vpop.eup %820  ;;  %830 = vrcp.f32 %v500_v30  ;;  %v414_v19 = vsel %vm413_vm6, %v1239_v63, %v412_v12  ;;  %vm254_vm9 = vcmp.eq.f32.partialorder %v1250_v3, 0.0  ;;  %vm476_vm10 = vcmp.eq.f32.partialorder %v1276_v10, inf  ;;  %v1361_v12 = vpop.xlane.xlu1 %374 }
  0xd7   :  { %v823_v61 = vpop.eup %822  ;;  %v492_v40 = vadd.f32 1e-10, %v410_v8  ;;  %v195_v41 = vmul.f32 %v817_v7, %v1267_v24  ;;  %v475_v60 = vmul.f32 %v821_v23, %v1276_v10  ;;  %vm478_vm11 = vcmp.eq.f32.partialorder %v1276_v10, 0.0 }
  0xd8   :  { %v1346_v49 = vpop.eup %824  ;;  %v277_v37 = vadd.f32 1e-10, %v249_v34  ;;  %v190_v35 = vsel %vm189_vm2, %v1210_v4, %v188_v11  ;;  %v473_v55 = vsel %vm471_vm5, %v472_v13, %v470_v22  ;;  %v479_v62 = vand.u32 2147483648, %v1276_v10  ;;  %v1371_v11 = vpop.xlane.xlu0 %350 }
  0xd9   :  { %v417_v5 = vsel %vm415_vm7, %v416_v56, %v414_v19  ;;  %v253_v30 = vsel %vm252_vm8, %v1250_v3, %v251_v36  ;;  %v477_v20 = vsel %vm476_vm10, %v1276_v10, %v475_v60  ;;  %832 = vrsqrt.f32 %v1324_v18  ;;  %v1363_v7 = vpop.eup %826 }
  0xda   :  { %v255_v14 = vand.u32 2147483648, %v1250_v3  ;;  %vm196_vm12 = vcmp.eq.f32.partialorder %v1267_v24, inf  ;;  %v480_v13 = vsel %vm478_vm11, %v479_v62, %v477_v20  ;;  %834 = vrsqrt.f32 %v1336_v27 }
  0xdb   :  { %836 = vrcp.f32 %v492_v40  ;;  %v193_v63 = vsel %vm191_vm3, %v192_v58, %v190_v35  ;;  %v501_v8 = vadd.f32 1e-10, %v473_v55  ;;  %v197_v10 = vsel %vm196_vm12, %v1267_v24, %v195_v41 }
  0xdc   :  { %v493_v56 = vadd.f32 1e-10, %v417_v5  ;;  %v256_v34 = vsel %vm254_vm9, %v255_v14, %v253_v30  ;;  %v199_v22 = vand.u32 2147483648, %v1267_v24  ;;  %838 = vrsqrt.f32 %v1361_v12 }
  0xdd   :  { %v829_v36 = vpop.eup %828  ;;  %v527_v23 = vmul.f32 %v819_v33, %v973_v44  ;;  %840 = vrcp.f32 %v277_v37  ;;  %vm198_vm13 = vcmp.eq.f32.partialorder %v1267_v24, 0.0  ;;  %v502_v4 = vadd.f32 1e-10, %v480_v13 }
  0xde   :  { %v269_v58 = vadd.f32 1e-10, %v193_v63  ;;  %v200_v19 = vsel %vm198_vm13, %v199_v22, %v197_v10  ;;  %v419_v40 = vmul.f32 %v829_v36, %v1305_v32  ;;  %842 = vrsqrt.f32 %v1371_v11 }
  0xdf   :  { %844 = vrcp.f32 %v501_v8  ;;  %v278_v3 = vadd.f32 1e-10, %v256_v34  ;;  %vm420_vm14 = vcmp.eq.f32.partialorder %v1305_v32, inf  ;;  %v423_v41 = vand.u32 2147483648, %v1305_v32 }
  0xe0   :  { %v831_v60 = vpop.eup %830  ;;  %v285_v44 = vmul.f32 %v1269_v6, %v945_v29  ;;  %846 = vrcp.f32 %v493_v56  ;;  %v421_v24 = vsel %vm420_vm14, %v1305_v32, %v419_v40  ;;  %vm422_vm15 = vcmp.eq.f32.partialorder %v1305_v32, 0.0 }
  0xe1   :  { %v303_v33 = vmul.f32 %v1294_v17, %v963_v38  ;;  %v270_v37 = vadd.f32 1e-10, %v200_v19  ;;  %848 = vrcp.f32 %v502_v4  ;;  %v424_v35 = vsel %vm422_vm15, %v423_v41, %v421_v24 }
  0xe2   :  { %v1391_v55 = vsel %vm103_vm0, %v1282_v16, 0.0  ;;  %v1394_v62 = vsub.f32 %v285_v44, %v1299_v48  ;;  %850 = vrcp.f32 %v269_v58  ;;  %v494_v29 = vadd.f32 1e-10, %v424_v35 }
  0xe3   :  { %v833_v6 = vpop.eup %832  ;;  %v1398_v5 = vmul.f32 %v1296_v28, %v1296_v28  ;;  %v287_v38 = vmul.f32 %v1318_v26, %v965_v39  ;;  %v547_v17 = vsub.f32 %v303_v33, %v527_v23  ;;  %852 = vrcp.f32 %v278_v3 }
  0xe4   :  { %v835_v32 = vpop.eup %834  ;;  %v511_v30 = vmul.f32 %v823_v61, %v975_v45  ;;  %854 = vrcp.f32 %v494_v29  ;;  %v258_v16 = vmul.f32 %v833_v6, %v1324_v18  ;;  %vm259_vm2 = vcmp.eq.f32.partialorder %v1324_v18, inf }
  0xe5   :  { %v837_v48 = vpop.eup %836  ;;  %856 = vrcp.f32 %v270_v37  ;;  %vm261_vm3 = vcmp.eq.f32.partialorder %v1324_v18, 0.0  ;;  %v262_v28 = vand.u32 2147483648, %v1324_v18  ;;  %v202_v20 = vmul.f32 %v835_v32, %v1336_v27 }
  0xe6   :  { %v839_v14 = vpop.eup %838  ;;  %v260_v39 = vsel %vm259_vm2, %v1324_v18, %v258_v16  ;;  %vm203_vm4 = vcmp.eq.f32.partialorder %v1336_v27, inf  ;;  %vm205_vm5 = vcmp.eq.f32.partialorder %v1336_v27, 0.0  ;;  %v206_v45 = vand.u32 2147483648, %v1336_v27 }
  0xe7   :  { %v841_v26 = vpop.eup %840  ;;  %v529_v61 = vmul.f32 %v831_v60, %v1011_v0  ;;  %v263_v13 = vsel %vm261_vm3, %v262_v28, %v260_v39  ;;  %v204_v63 = vsel %vm203_vm4, %v1336_v27, %v202_v20  ;;  %v482_v8 = vmul.f32 %v839_v14, %v1361_v12 }
  0xe8   :  { %v843_v10 = vpop.eup %842  ;;  %v279_v56 = vadd.f32 1e-10, %v263_v13  ;;  %v207_v34 = vsel %vm205_vm5, %v206_v45, %v204_v63  ;;  %vm483_vm6 = vcmp.eq.f32.partialorder %v1361_v12, inf  ;;  %v486_v18 = vand.u32 2147483648, %v1361_v12 }
  0xe9   :  { %v845_v22 = vpop.eup %844  ;;  %v271_v36 = vadd.f32 1e-10, %v207_v34  ;;  %v484_v23 = vsel %vm483_vm6, %v1361_v12, %v482_v8  ;;  %vm485_vm7 = vcmp.eq.f32.partialorder %v1361_v12, 0.0  ;;  %v426_v0 = vmul.f32 %v843_v10, %v1371_v11 }
  0xea   :  { %v847_v4 = vpop.eup %846  ;;  %v513_v27 = vmul.f32 %v837_v48, %v1013_v1  ;;  %v487_v58 = vsel %vm485_vm7, %v486_v18, %v484_v23  ;;  %vm427_vm8 = vcmp.eq.f32.partialorder %v1371_v11, inf  ;;  %v430_v19 = vand.u32 2147483648, %v1371_v11 }
  0xeb   :  { %v849_v40 = vpop.eup %848  ;;  %858 = vrcp.f32 %v279_v56  ;;  %v503_v3 = vadd.f32 1e-10, %v487_v58  ;;  %v428_v41 = vsel %vm427_vm8, %v1371_v11, %v426_v0  ;;  %vm429_vm9 = vcmp.eq.f32.partialorder %v1371_v11, 0.0 }
  0xec   :  { %v851_v60 = vpop.eup %850  ;;  %v305_v12 = vmul.f32 %v1346_v49, %v991_v53  ;;  %v531_v44 = vmul.f32 %v845_v22, %v1027_v15  ;;  %860 = vrcp.f32 %v271_v36  ;;  %v431_v1 = vsel %vm429_vm9, %v430_v19, %v428_v41 }
  0xed   :  { %v853_v24 = vpop.eup %852  ;;  %v289_v33 = vmul.f32 %v1363_v7, %v997_v57  ;;  %v515_v37 = vmul.f32 %v847_v4, %v1033_v21  ;;  %862 = vrcp.f32 %v503_v3  ;;  %v495_v35 = vadd.f32 1e-10, %v431_v1 }
  0xee   :  { %v855_v29 = vpop.eup %854  ;;  %v539_v6 = vsub.f32 %v287_v38, %v511_v30  ;;  %v548_v32 = vsub.f32 %v305_v12, %v529_v61  ;;  %v307_v11 = vmul.f32 %v841_v26, %v1015_v2  ;;  %v533_v16 = vmul.f32 %v849_v40, %v1063_v42 }
  0xef   :  { %v857_v53 = vpop.eup %856  ;;  %v554_v15 = vmul.f32 %v1394_v62, %v1394_v62  ;;  %v540_v49 = vsub.f32 %v289_v33, %v513_v27  ;;  %v291_v48 = vmul.f32 %v851_v60, %v1017_v9  ;;  %864 = vrcp.f32 %v495_v35 }
  0xf0   :  { %v563_v57 = vmul.f32 %v547_v17, %v547_v17  ;;  %v549_v7 = vsub.f32 %v307_v11, %v531_v44  ;;  %v309_v21 = vmul.f32 %v853_v24, %v1043_v25  ;;  %v517_v28 = vmul.f32 %v855_v29, %v1065_v43 }
  0xf1   :  { %v570_v38 = vsel %vm103_vm0, %v1274_v50, 0.0  ;;  %v569_v2 = vsel %vm103_vm0, %v1278_v52, 0.0  ;;  %v593_v42 = vsel %vm103_vm0, %v1398_v5, 0.0  ;;  %v541_v62 = vsub.f32 %v291_v48, %v515_v37 }
  0xf2   :  { %v555_v30 = vmul.f32 %v539_v6, %v539_v6  ;;  %v564_v20 = vmul.f32 %v548_v32, %v548_v32  ;;  %v293_v9 = vmul.f32 %v857_v53, %v1049_v31  ;;  %v550_v17 = vsub.f32 %v309_v21, %v533_v16  ;;  %v568_v21 = vld [vmem:[#allocation2] sm:$0x3] }
  0xf3   :  { %v592_v25 = vadd.f32 %v1287_v51, %v1391_v55  ;;  %v556_v14 = vmul.f32 %v540_v49, %v540_v49  ;;  %v572_v43 = vsel %vm103_vm0, %v554_v15, 0.0  ;;  %v595_v50 = vsel %vm103_vm0, %v563_v57, 0.0 }
  0xf4   :  { %v565_v39 = vmul.f32 %v549_v7, %v549_v7  ;;  %v542_v45 = vsub.f32 %v293_v9, %v517_v28  ;;  %v571_v26 = vadd.f32 %v570_v38, %v569_v2  ;;  %v557_v5 = vmul.f32 %v541_v62, %v541_v62 }
  0xf5   :  { %v859_v52 = vpop.eup %858  ;;  %v594_v61 = vadd.f32 %v593_v42, %v592_v25  ;;  %v574_v63 = vsel %vm103_vm0, %v555_v30, 0.0  ;;  %v566_v8 = vmul.f32 %v550_v17, %v550_v17  ;;  %v597_v31 = vsel %vm103_vm0, %v564_v20, 0.0  ;;  %v657_v42 = vld [vmem:[%s1472_s2] ss:$0 sm:$0xff] }
  0xf6   :  { %v861_v13 = vpop.eup %860  ;;  %v573_v56 = vadd.f32 %v572_v43, %v571_v26  ;;  %v576_v51 = vsel %vm103_vm0, %v556_v14, 0.0  ;;  %v311_v34 = vmul.f32 %v859_v52, %v1067_v46  ;;  %v558_v22 = vmul.f32 %v542_v45, %v542_v45 }
  0xf7   :  { %v863_v10 = vpop.eup %862  ;;  %v596_v55 = vadd.f32 %v595_v50, %v594_v61  ;;  %v599_v36 = vsel %vm103_vm0, %v565_v39, 0.0  ;;  %v578_v4 = vsel %vm103_vm0, %v557_v5, 0.0  ;;  %v295_v58 = vmul.f32 %v861_v13, %v1069_v47 }
  0xf8   :  { %v535_v18 = vmul.f32 %v863_v10, %v1079_v54  ;;  %v575_v0 = vadd.f32 %v574_v63, %v573_v56  ;;  %v601_v3 = vsel %vm103_vm0, %v566_v8, 0.0  ;;  %v580_v54 = vsel %vm103_vm0, %v558_v22, 0.0 }
  0xf9   :  { %v865_v23 = vpop.eup %864  ;;  %v598_v27 = vadd.f32 %v597_v31, %v596_v55  ;;  %vm613_vm10 = vcmask 1041409  }
  0xfa   :  { %v551_v19 = vsub.f32 %v311_v34, %v535_v18  ;;  %v519_v40 = vmul.f32 %v865_v23, %v1085_v59  ;;  %v577_v41 = vadd.f32 %v576_v51, %v575_v0 }
  0xfb   :  { %v600_v60 = vadd.f32 %v599_v36, %v598_v27 }
  0xfc   :  { %v567_v46 = vmul.f32 %v551_v19, %v551_v19  ;;  %v543_v12 = vsub.f32 %v295_v58, %v519_v40  ;;  %v579_v44 = vadd.f32 %v578_v4, %v577_v41 }
  0xfd   :  { %v602_v1 = vadd.f32 %v601_v3, %v600_v60 }
  0xfe   :  { %v559_v24 = vmul.f32 %v543_v12, %v543_v12  ;;  %v603_v33 = vsel %vm103_vm0, %v567_v46, 0.0  ;;  %v581_v37 = vadd.f32 %v580_v54, %v579_v44 }
  0xff   :  { %v604_v35 = vadd.f32 %v603_v33, %v602_v1 }
 0x100   :  { %v582_v47 = vsel %vm103_vm0, %v559_v24, 0.0  ;;  %vm635_vm0 = vcmask 1024  }
 0x101   :  { %v583_v29 = vadd.f32 %v582_v47, %v581_v37  ;;  %v605_v6 = vrot.slane %v604_v35, 4 }
 0x103   :  { %v584_v59 = vrot.slane %v583_v29, 4  ;;  %v606_v32 = vadd.f32 %v605_v6, %v604_v35 }
 0x105   :  { %v585_v11 = vadd.f32 %v584_v59, %v583_v29  ;;  %v607_v16 = vrot.slane %v606_v32, 2 }
 0x107   :  { %v586_v53 = vrot.slane %v585_v11, 2  ;;  %v608_v15 = vadd.f32 %v607_v16, %v606_v32 }
 0x109   :  { %v587_v49 = vadd.f32 %v586_v53, %v585_v11  ;;  %v609_v48 = vrot.slane %v608_v15, 1 }
 0x10b   :  { %v588_v57 = vrot.slane %v587_v49, 1  ;;  %v610_v7 = vadd.f32 %v609_v48, %v608_v15 }
 0x10d   :  { %v589_v28 = vadd.f32 %v588_v57, %v587_v49 }
 0x10f   :  { %v614_v38 = vsel %vm613_vm10, %v610_v7, %v589_v28 }
 0x110   :  { %v616_v2 = vadd.f32 %v614_v38, %v568_v21 }
 0x112   :  { %618 = vst.msk [vmem:[#allocation2] sm:$0x3] %vm21_vm1, %v616_v2 }
 0x119   :  { %v622_v62 = vld [vmem:[#allocation2] sm:$0x3] }
 0x11a   :  { %v630_v30 = vmul.f32 %v657_v42, %v622_v62 }
 0x11c   :  { %v631_v20 = vsel %vm21_vm1, %v630_v30, 0.0 }
 0x11d   :  { %632 = vadd.xlane.f32.xlu0 %v631_v20 }
 0x1aa   :  { %v633_v9 = vpop.xlane.xlu0 %632 }
 0x1ab   :  { %v634_v17 = vmul.f32 0.015625, %v633_v9 }
 0x1ad   :  { %636 = vst.msk [vmem:[%s1473_s3] sm:$0x3] %vm635_vm0, %v634_v17 }

// kernel: lpips_forward.8
= control target key start
LH: loop header
LB: loop body
LE: loop exit
PB: predicated region body
PF: predicated region fallthrough
CT: control target
= control target key end

     0   :  { %s1063_s12 = smov 0   ;;  %s1197_s0 = inlined_call_operand.vmem [shape: bf16[4,36,32], index: 0, kind: input, shape index: {}]   ;;  %s1198_s1 = inlined_call_operand.vmem [shape: bf16[9,32,64], index: 1, kind: input, shape index: {}]   ;;  %s1199_s2 = inlined_call_operand.vmem [shape: f32[1,64], index: 2, kind: input, shape index: {}]   ;;  %s1200_s3 = inlined_call_operand.vmem [shape: bf16[4,4,64], index: 3, kind: output, shape index: {}]  }
   0x1 LB: > { %s824_s13 = sadd.s32 4294967295, %s1039_s12   ;;  %p828_p0 = scmp.ge.s32.totalorder %s1039_s12, 1  ;;  %s1039_s12 = sphi %s1063_s12, %s13_s12  }
   0x2   : > { %p137_p1 = scmp.lt.s32.totalorder %s1039_s12, 5 }
   0x4   : > { %p138_p2 = pnand %p828_p0, %p137_p1 }
   0x5   : > { %v1009_v0 = vld [vmem:[%s1198_s1 + $0x10] sm:$0xff] (!%p138_p2)   ;;  %v1041_v1 = vmov (!%p138_p2), 0.0   ;;  %v1010_v2 = vld [vmem:[%s1198_s1] sm:$0xff] (!%p138_p2)   ;;  %v1011_v3 = vld [vmem:[%s1198_s1 + $0x18] sm:$0xff] (!%p138_p2)   ;;  %vm1042_vm0 = vmmov (!%p138_p2), 0   ;;  %p160_p3 = scmp.lt.s32.totalorder (!%p138_p2), %s824_s13, 3 }
   0x6   : > { %141 = sbr.rel (%p138_p2) target bundleno = 273 (0x111), region = 32  ;;  %926 = vmatprep.subr.bf16.mxu0 (!%p138_p2), %v1041_v1  ;;  %934 = vmatprep.subr.bf16.mxu1 (!%p138_p2), %v1041_v1  ;;  %v1012_v4 = vld [vmem:[%s1198_s1 + $0x8] sm:$0xff] (!%p138_p2)   ;;  %vm200_vm1 = vcmask (!%p138_p2), 261120   ;;  %v1014_v5 = vld [vmem:[%s1198_s1 + $0x20] sm:$0xff] (!%p138_p2)   ;;  %v1015_v6 = vld [vmem:[%s1198_s1 + $0x30] sm:$0xff] (!%p138_p2)   ;;  %vm769_vm2 = vcmask (!%p138_p2), 517120  }
   0x7   : > { %927 = vmatpush3.bf16.msra.mxu0 (!%p138_p2), %v1009_v0  ;;  %930 = vmatprep.mubr.msk.bf16.mxu0 (!%p138_p2), %vm1042_vm0, %v1041_v1  ;;  %v1017_v11 = vld [vmem:[%s1198_s1 + $0x38] sm:$0xff] (!%p138_p2)   ;;  %v1016_v13 = vld [vmem:[%s1198_s1 + $0x28] sm:$0xff] (!%p138_p2)   ;;  %v1021_v15 = vld [vmem:[%s1198_s1 + $0x50] sm:$0xff] (!%p138_p2)  }
   0x8   : > { %935 = vmatpush3.bf16.msra.mxu1 (!%p138_p2), %v1010_v2  ;;  %928 = vmatprep.subr.bf16.mxu0 (!%p138_p2), %v1041_v1  ;;  %v1019_v17 = vld [vmem:[%s1198_s1 + $0x40] sm:$0xff] (!%p138_p2)   ;;  %v1023_v19 = vld [vmem:[%s1198_s1 + $0x58] sm:$0xff] (!%p138_p2)   ;;  %v1022_v20 = vld [vmem:[%s1198_s1 + $0x48] sm:$0xff] (!%p138_p2)  }
   0x9   : > { %936 = vmatprep.subr.bf16.mxu1 (!%p138_p2), %v1041_v1  ;;  %938 = vmatprep.mubr.msk.bf16.mxu1 (!%p138_p2), %vm1042_vm0, %v1041_v1  ;;  %v1026_v22 = vld [vmem:[%s1198_s1 + $0x70] sm:$0xff] (!%p138_p2)   ;;  %v1024_v24 = vld [vmem:[%s1198_s1 + $0x60] sm:$0xff] (!%p138_p2)   ;;  %v1028_v25 = vld [vmem:[%s1198_s1 + $0x78] sm:$0xff] (!%p138_p2)  }
   0xa   : > { %v1027_v27 = vld [vmem:[%s1198_s1 + $0x68] sm:$0xff] (!%p138_p2)   ;;  %v1030_v30 = vld [vmem:[%s1198_s1 + $0x80] sm:$0xff] (!%p138_p2)  }
   0xb   : > { %929 = vmatpush3.bf16.msra.mxu0 (!%p138_p2), %v1011_v3  ;;  %v1031_v32 = vld [vmem:[%s1198_s1 + $0x88] sm:$0xff] (!%p138_p2)  }
   0xc   : > { %937 = vmatpush3.bf16.msra.mxu1 (!%p138_p2), %v1012_v4  ;;  %942 = vmatprep.subr.bf16.mxu0 (!%p138_p2), %v1041_v1 }
   0xd   : > { %s1202_s13 = smov (!%p160_p3, %s824_s13), 3  ;;  %950 = vmatprep.subr.bf16.mxu1 %v1041_v1 }
   0xe   : > { %s998_s22 = smul.u32 20, %s1202_s13  ;;  %s830_s4 = sshll.u32 %s1202_s13, 1 }
   0xf   : > { %s168_s7 = scalar_lea.vmem %s1200_s3, %s830_s4 }
  0x10   : > { %s1098_s25 = scalar_lea.vmem %s1197_s0, %s998_s22 }
  0x11   : > { %v1013_v7 = vld [vmem:[%s1098_s25] sm:$0x18]   ;;  %v170_v8 = vld [vmem:[%s1098_s25] sm:$0x3]  ;;  %v1025_v18 = vld [vmem:[%s1098_s25 + $0xc] sm:$0x18]  }
  0x12   : > { %v187_v9 = vrot.slane %v1013_v7, 3  ;;  %939 = vmatmul.mubr.msk.bf16.vlgmr.msra.gmra.mrb[0].mxu1 %vm200_vm1, %v170_v8  ;;  %v1018_v10 = vld [vmem:[%s1098_s25 + $0x4] ss:$0 sps:$4 sm:$0xcc]   ;;  %v505_v21 = vrot.slane %v1025_v18, 3 }
  0x13   : > { %951 = vmatpush3.bf16.msra.mxu1 %v1015_v6  ;;  %954 = vmatprep.mubr.msk.bf16.mxu1 %vm1042_vm0, %v1041_v1  ;;  %v1020_v12 = vld [vmem:[%s1098_s25 + $0x8] ss:$0 sps:$4 sm:$0x66]   ;;  %v308_v16 = vrot.slane %v1018_v10, 2  ;;  %v431_v23 = vld [vmem:[%s1098_s25 + $0xc] sm:$0x3] }
  0x14   : > { %931 = vmatmul.mubr.msk.bf16.vlgmr.msra.gmra.mrb[0].mxu0 %vm200_vm1, %v187_v9  ;;  %952 = vmatprep.subr.bf16.mxu1 %v1041_v1  ;;  %v374_v14 = vrot.slane %v1020_v12, 1  ;;  %v1029_v26 = vld [vmem:[%s1098_s25] ss:$0 sps:$4 sm:$0x66]   ;;  %v628_v28 = vld [vmem:[%s1098_s25 + $0x4] sm:$0x3] }
  0x15   : > { %943 = vmatpush3.bf16.msra.mxu0 %v1014_v5  ;;  %946 = vmatprep.mubr.msk.bf16.mxu0 %vm1042_vm0, %v1041_v1  ;;  %v571_v29 = vrot.slane %v1029_v26, 1  ;;  %v1032_v31 = vld [vmem:[%s1098_s25 + $0x4] sm:$0x18]   ;;  %v896_v10 = vld [vmem:[%s1199_s2] ss:$0 sm:$0xff] }
  0x16   : > { %944 = vmatprep.subr.bf16.mxu0 %v1041_v1  ;;  %v702_v33 = vrot.slane %v1032_v31, 3 }
  0x17   : > { %953 = vmatpush3.bf16.msra.mxu1 %v1017_v11 }
  0x18   : > { %966 = vmatprep.subr.bf16.mxu1 %v1041_v1 }
  0x19   : > { %945 = vmatpush3.bf16.msra.mxu0 %v1016_v13 }
  0x1a   : > { %958 = vmatprep.subr.bf16.mxu0 %v1041_v1  ;;  %955 = vmatmul.mubr.msk.bf16.vlgmr.msra.gmra.mrb[4].mxu1 %vm200_vm1, %v374_v14 }
  0x1b   : > { %967 = vmatpush3.bf16.msra.mxu1 %v1021_v15  ;;  %970 = vmatprep.mubr.msk.bf16.mxu1 %vm1042_vm0, %v1041_v1 }
  0x1c   : > { %947 = vmatmul.mubr.msk.bf16.vlgmr.msra.gmra.mrb[4].mxu0 %vm200_vm1, %v308_v16  ;;  %968 = vmatprep.subr.bf16.mxu1 %v1041_v1 }
  0x1d   : > { %959 = vmatpush3.bf16.msra.mxu0 %v1019_v17  ;;  %962 = vmatprep.mubr.msk.bf16.mxu0 %vm1042_vm0, %v1041_v1 }
  0x1e   : > { %960 = vmatprep.subr.bf16.mxu0 %v1041_v1 }
  0x1f   : > { %969 = vmatpush3.bf16.msra.mxu1 %v1023_v19 }
  0x20   : > { %982 = vmatprep.subr.bf16.mxu1 %v1041_v1 }
  0x21   : > { %961 = vmatpush3.bf16.msra.mxu0 %v1022_v20 }
  0x22   : > { %974 = vmatprep.subr.bf16.mxu0 %v1041_v1  ;;  %971 = vmatmul.mubr.msk.bf16.vlgmr.msra.gmra.mrb[8].mxu1 %vm200_vm1, %v505_v21 }
  0x23   : > { %983 = vmatpush3.bf16.msra.mxu1 %v1026_v22  ;;  %986 = vmatprep.mubr.msk.bf16.mxu1 %vm1042_vm0, %v1041_v1 }
  0x24   : > { %963 = vmatmul.mubr.msk.bf16.vlgmr.msra.gmra.mrb[8].mxu0 %vm200_vm1, %v431_v23  ;;  %984 = vmatprep.subr.bf16.mxu1 %v1041_v1 }
  0x25   : > { %975 = vmatpush3.bf16.msra.mxu0 %v1024_v24  ;;  %978 = vmatprep.mubr.msk.bf16.mxu0 %vm1042_vm0, %v1041_v1 }
  0x26   : > { %976 = vmatprep.subr.bf16.mxu0 %v1041_v1 }
  0x27   : > { %985 = vmatpush3.bf16.msra.mxu1 %v1028_v25 }
  0x29   : > { %977 = vmatpush3.bf16.msra.mxu0 %v1027_v27 }
  0x2a   : > { %990 = vmatprep.subr.bf16.mxu0 %v1041_v1  ;;  %987 = vmatmul.mubr.msk.bf16.vlgmr.msra.gmra.mrb[12].mxu1 %vm200_vm1, %v628_v28 }
  0x2c   : > { %979 = vmatmul.mubr.msk.bf16.vlgmr.msra.gmra.mrb[12].mxu0 %vm200_vm1, %v571_v29 }
  0x2d   : > { %991 = vmatpush3.bf16.msra.mxu0 %v1030_v30  ;;  %994 = vmatprep.mubr.msk.bf16.mxu0 %vm1042_vm0, %v1041_v1 }
  0x2e   : > { %992 = vmatprep.subr.bf16.mxu0 %v1041_v1 }
  0x31   : > { %993 = vmatpush3.bf16.msra.mxu0 %v1031_v32 }
  0x34   : > { %995 = vmatmul.mubr.msk.bf16.vlgmr.msra.gmra.mrb[16].mxu0 %vm200_vm1, %v702_v33 }
  0xe5   : > { %v293_v34 = vpop.f32.mrb[0].mxu1 }
  0xe6   : > { %v940_v35 = vpop.f32.mrb[1].mxu1 }
  0xe7   : > { %v238_v36 = vpop.f32.mrb[0].mxu0  ;;  %v296_v37 = vpop.f32.mrb[2].mxu1 }
  0xe8   : > { %v294_v38 = vadd.f32 %v293_v34, %v238_v36  ;;  %v932_v39 = vpop.f32.mrb[1].mxu0  ;;  %v941_v40 = vpop.f32.mrb[3].mxu1 }
  0xe9   : > { %v241_v41 = vpop.f32.mrb[2].mxu0 }
  0xea   : > { %v933_v42 = vpop.f32.mrb[3].mxu0 }
  0xed   : > { %v424_v43 = vpop.f32.mrb[4].mxu1 }
  0xee   : > { %v956_v44 = vpop.f32.mrb[5].mxu1 }
  0xef   : > { %v358_v45 = vpop.f32.mrb[4].mxu0  ;;  %v427_v46 = vpop.f32.mrb[6].mxu1 }
  0xf0   : > { %v364_v47 = vadd.f32 %v358_v45, %v294_v38  ;;  %v948_v48 = vpop.f32.mrb[5].mxu0  ;;  %v957_v49 = vpop.f32.mrb[7].mxu1 }
  0xf1   : > { %v361_v50 = vpop.f32.mrb[6].mxu0 }
  0xf2   : > { %v430_v51 = vadd.f32 %v424_v43, %v364_v47  ;;  %v949_v52 = vpop.f32.mrb[7].mxu0 }
  0xf5   : > { %v555_v53 = vpop.f32.mrb[8].mxu1 }
  0xf6   : > { %v972_v54 = vpop.f32.mrb[9].mxu1 }
  0xf7   : > { %v486_v55 = vpop.f32.mrb[8].mxu0  ;;  %v558_v56 = vpop.f32.mrb[10].mxu1 }
  0xf8   : > { %v492_v57 = vadd.f32 %v486_v55, %v430_v51  ;;  %v964_v58 = vpop.f32.mrb[9].mxu0  ;;  %v973_v59 = vpop.f32.mrb[11].mxu1 }
  0xf9   : > { %v489_v60 = vpop.f32.mrb[10].mxu0 }
  0xfa   : > { %v561_v61 = vadd.f32 %v555_v53, %v492_v57  ;;  %v965_v62 = vpop.f32.mrb[11].mxu0 }
  0xfd   : > { %v683_v63 = vpop.f32.mrb[12].mxu1 }
  0xfe   : > { %v988_v0 = vpop.f32.mrb[13].mxu1 }
  0xff   : > { %v621_v1 = vpop.f32.mrb[12].mxu0  ;;  %v686_v2 = vpop.f32.mrb[14].mxu1 }
 0x100   : > { %v627_v3 = vadd.f32 %v621_v1, %v561_v61  ;;  %v980_v4 = vpop.f32.mrb[13].mxu0  ;;  %v989_v5 = vpop.f32.mrb[15].mxu1 }
 0x101   : > { %v624_v6 = vpop.f32.mrb[14].mxu0 }
 0x102   : > { %v689_v7 = vadd.f32 %v683_v63, %v627_v3  ;;  %v981_v8 = vpop.f32.mrb[15].mxu0 }
 0x107   : > { %v752_v9 = vpop.f32.mrb[16].mxu0 }
 0x108   : > { %v758_v11 = vadd.f32 %v752_v9, %v689_v7  ;;  %v996_v12 = vpop.f32.mrb[17].mxu0 }
 0x109   : > { %v755_v13 = vpop.f32.mrb[18].mxu0 }
 0x10a   : > { %v766_v14 = vadd.f32 %v896_v10, %v758_v11  ;;  %v997_v15 = vpop.f32.mrb[19].mxu0 }
 0x10c   : > { %v767_v16 = vmax.f32 %v766_v14, 0.0 }
 0x10e   : > { %v768_v17 = vpack.c.bf16 %v767_v16, %v767_v16 }
 0x110   : > { %770 = vst.msk [vmem:[%s168_s7] sm:$0x3] %vm769_vm2, %v768_v17 }
 0x111 PF: > { %s13_s12 = sadd.s32 1, %s1039_s12  }
 0x112   : > { %p10_p4 = scmp.ge.s32.totalorder %s13_s12, 6  }
 0x114   :  { %12 = sbr.rel (!%p10_p4) target bundleno = 1 (0x1), region = 70 }

</bundles_post_ra>
